<compile_context>
chip_gen: v5e
topology: v5e:2x2
jax: 0.10.0
libtpu: 0.0.40
codegen_flags: <defaults>
</compile_context>

<pallas_src>
import numpy as np
import jax
import jax.numpy as jnp
from jax import lax
from jax.experimental import pallas as pl
from jax.experimental.pallas import tpu as pltpu

OC = 7                 # conv output channels
KH = KW = 5
NCH = 1 + OC           # 8 = avg-pool channel + conv channels
BN_EPS = 1e-5


def _build_r_tile(halo_ref, main_ref, r_ref, *, th, wp, owp):
    """Assemble the matmul RHS: 10 column-shifted (th+2, owp) phase windows.

    halo_ref: (4, 2, wp)   padded-phase rows [t*th, t*th+2)
    main_ref: (4, th, wp)  padded-phase rows [t*th+2, t*th+th+2)
    r_ref:    (10*(th+2), owp) scratch; slab s = kw*2 + a (a = row parity).
    """
    w2 = th + 2
    for kw in range(KW):
        b, dw = kw % 2, kw // 2
        for a in (0, 1):
            p = a * 2 + b
            s = kw * 2 + a
            halo = halo_ref[p]                       # (2, wp)
            main = main_ref[p]                       # (th, wp)
            if dw:
                # column tap shift on the XLU; shifted[:, j] = src[:, j + dw]
                halo = pltpu.roll(halo, wp - dw, axis=1)
                main = pltpu.roll(main, wp - dw, axis=1)
            r_ref[s * w2:s * w2 + 2, :] = halo[:, :owp]
            r_ref[s * w2 + 2:(s + 1) * w2, :] = main[:, :owp]


def _make_stats_kernel(th, wp, owp, oh, ow):
    """Pass 1: conv on the MXU, masked per-channel/lane [sum, sum_sq] partials
    accumulated across the row-tile grid axis (output block stays resident)."""

    def kernel(b_ref, halo_ref, main_ref, stats_ref, r_ref):
        t = pl.program_id(1)

        @pl.when(t == 0)
        def _():
            stats_ref[...] = jnp.zeros_like(stats_ref)

        _build_r_tile(halo_ref, main_ref, r_ref, th=th, wp=wp, owp=owp)
        res = jnp.dot(b_ref[...], r_ref[...],
                      precision=lax.Precision.HIGHEST,
                      preferred_element_type=jnp.float32)      # (NCH*th, owp)

        rows = lax.broadcasted_iota(jnp.int32, (th, owp), 0)
        cols = lax.broadcasted_iota(jnp.int32, (th, owp), 1)
        valid = ((rows + t * th) < oh) & (cols < ow)
        for c in range(NCH):
            blk = jnp.where(valid, res[c * th:(c + 1) * th, :], 0.0)
            stats_ref[c:c + 1, :] += jnp.sum(blk, axis=0, keepdims=True)
            stats_ref[NCH + c:NCH + c + 1, :] += jnp.sum(blk * blk, axis=0,
                                                         keepdims=True)

    return kernel


def _make_apply_kernel(th, wp, owp):
    """Pass 2: recompute the conv, apply folded BN scale/shift + ReLU, write the
    final output once.  Affine table arrives through SMEM (scalar reads)."""

    def kernel(b_ref, aff_ref, halo_ref, main_ref, out_ref, r_ref):
        _build_r_tile(halo_ref, main_ref, r_ref, th=th, wp=wp, owp=owp)
        res = jnp.dot(b_ref[...], r_ref[...],
                      precision=lax.Precision.HIGHEST,
                      preferred_element_type=jnp.float32)      # (NCH*th, owp)
        for c in range(NCH):
            y = res[c * th:(c + 1) * th, :] * aff_ref[0, c] + aff_ref[1, c]
            out_ref[c] = jnp.maximum(y, aff_ref[2, c])

    return kernel


def _band_matrix(w8, th):
    """Banded weight matrix B (NCH*th, 10*(th+2)): one 2-D MXU matmul against
    the stacked phase windows realises the whole 5x5 / stride-2 conv."""
    w2 = th + 2
    # placement[kh, kw, i, q, a, r] = 1  iff slab q==kw, parity a==kh%2 and the
    # window row r equals i + kh//2  (output row i reads padded row i+dh).
    t = np.zeros((KH, KW, th, KW, 2, w2), np.float32)
    for kh in range(KH):
        a, dh = kh % 2, kh // 2
        for kw in range(KW):
            for i in range(th):
                t[kh, kw, i, kw, a, i + dh] = 1.0
    b5 = jnp.einsum('chw,hwiqar->ciqar', w8, jnp.asarray(t))
    return b5.reshape(NCH * th, KW * 2 * w2)


@jax.jit
def learn_to_resize_kaggle(img, conv_w, bn_gamma, bn_beta):
    """img: (N, 1, H, W) -> (N, 8, H//2, W//2) float32 (NCHW)."""
    n, c, h, w = img.shape
    assert c == 1 and h % 2 == 0 and w % 2 == 0
    oh, ow = h // 2, w // 2

    # ---- tiling ------------------------------------------------------------
    owp = ((ow + 127) // 128) * 128          # lane-dense output columns
    wp = owp if owp - ow >= 2 else owp + 128 # phase width (needs +2 col halo)
    th = 8 if oh <= 8 else 16                # output rows per grid step
    nt = -(-oh // th)
    ohp = nt * th
    w2 = th + 2
    m = NCH * th
    k = 10 * w2

    # ---- phase decomposition (row/col parity) + zero conv halo --------------
    x = img[:, 0].astype(jnp.float32)
    phs = [jnp.pad(x[:, a::2, b::2],
                   ((0, 0), (1, ohp + 1 - oh), (1, wp - 1 - ow)))
           for a in (0, 1) for b in (0, 1)]
    ph = jnp.stack(phs, axis=1)                          # (n, 4, ohp+2, wp)
    main = ph[:, :, 2:, :]                               # rows [t*th+2, ...+th)
    halo = ph[:, :, :ohp, :].reshape(n, 4, nt, th, wp)[:, :, :, :2, :]

    # ---- weights: channel 0 = 2x2 avg-pool folded in as conv taps -----------
    avg = np.zeros((1, KH, KW), np.float32)
    avg[0, 2:4, 2:4] = 0.25
    w8 = jnp.concatenate([jnp.asarray(avg),
                          conv_w.reshape(OC, KH, KW).astype(jnp.float32)],
                         axis=0)
    band = _band_matrix(w8, th)                          # (m, k)

    # ---- shared specs / compiler params -------------------------------------
    band_spec = pl.BlockSpec((m, k), lambda i, t: (0, 0))
    halo_spec = pl.BlockSpec((None, 4, None, 2, wp),
                             lambda i, t: (i, 0, t, 0, 0))
    main_spec = pl.BlockSpec((None, 4, th, wp), lambda i, t: (i, 0, t, 0))
    scratch = [pltpu.VMEM((k, owp), jnp.float32)]

    step_bytes = 4 * (2 * 4 * th * wp + 2 * 4 * 2 * wp + m * k + k * owp
                      + 2 * m * owp + 2 * NCH * th * owp)
    vlim = int(min(32 * 2 ** 20, max(4 * 2 ** 20, 2 * step_bytes)))

    # ---- pass 1: stats only (no raw-conv HBM round trip) --------------------
    stats = pl.pallas_call(
        _make_stats_kernel(th, wp, owp, oh, ow),
        out_shape=jax.ShapeDtypeStruct((n, 2 * NCH, owp), jnp.float32),
        grid=(n, nt),
        in_specs=[band_spec, halo_spec, main_spec],
        out_specs=pl.BlockSpec((None, 2 * NCH, owp), lambda i, t: (i, 0, 0)),
        scratch_shapes=scratch,
        compiler_params=pltpu.CompilerParams(
            dimension_semantics=("parallel", "arbitrary"),
            vmem_limit_bytes=vlim),
    )(band, halo, main)

    # ---- training-mode BN stats folded into per-channel scale/shift ---------
    tot = stats.sum(axis=(0, 2))                         # (2*NCH,)
    cnt = float(n * oh * ow)
    mean = tot[:NCH] / cnt
    # NOTE: E[x^2]-E[x]^2 in f32 can cancel badly when |mean| >> std (raw 0..255
    # images); for standardized inputs (as here) it is accurate.  A pilot-offset
    # accumulation would fix it without changing the kernel structure.
    var = tot[NCH:] / cnt - mean * mean
    inv = lax.rsqrt(var + BN_EPS)
    gamma8 = jnp.concatenate([jnp.ones((1,), jnp.float32),
                              bn_gamma.astype(jnp.float32)])
    beta8 = jnp.concatenate([jnp.zeros((1,), jnp.float32),
                             bn_beta.astype(jnp.float32)])
    scale8 = (gamma8 * inv).at[0].set(1.0)     # channel 0 (avg-pool): identity
    shift8 = (beta8 - mean * scale8).at[0].set(0.0)
    thr8 = jnp.zeros((NCH,), jnp.float32).at[0].set(-jnp.finfo(jnp.float32).max)
    aff = jnp.stack([scale8, shift8, thr8], axis=0)      # (3, NCH) -> SMEM

    # ---- pass 2: recompute conv + affine + ReLU, single output write --------
    out_full = pl.pallas_call(
        _make_apply_kernel(th, wp, owp),
        out_shape=jax.ShapeDtypeStruct((n, NCH, ohp, owp), jnp.float32),
        grid=(n, nt),
        in_specs=[band_spec,
                  pl.BlockSpec(memory_space=pltpu.MemorySpace.SMEM),
                  halo_spec, main_spec],
        out_specs=pl.BlockSpec((None, NCH, th, owp), lambda i, t: (i, 0, t, 0)),
        scratch_shapes=scratch,
        compiler_params=pltpu.CompilerParams(
            dimension_semantics=("parallel", "parallel"),
            vmem_limit_bytes=vlim),
    )(band, aff, halo, main)

    # drop lane/row padding (no-op when ow % 128 == 0 and oh % th == 0)
    return out_full[:, :, :oh, :ow]


def _reference(img, conv_w, bn_gamma, bn_beta):
    """Plain-JAX reference mirroring the PyTorch forward (training-mode BN)."""
    n, c, h, w = img.shape
    x = img.astype(jnp.float32)
    avg = x.reshape(n, c, h // 2, 2, w // 2, 2).mean(axis=(3, 5))
    conv = lax.conv_general_dilated(
        x, conv_w.astype(jnp.float32), window_strides=(2, 2),
        padding=((2, 2), (2, 2)), dimension_numbers=("NCHW", "OIHW", "NCHW"),
        precision=lax.Precision.HIGHEST)
    mean = conv.mean(axis=(0, 2, 3), keepdims=True)
    var = ((conv - mean) ** 2).mean(axis=(0, 2, 3), keepdims=True)
    y = (conv - mean) * lax.rsqrt(var + BN_EPS)
    y = bn_gamma.reshape(1, OC, 1, 1) * y + bn_beta.reshape(1, OC, 1, 1)
    y = jnp.maximum(y, 0.0)
    return jnp.concatenate([avg, y], axis=1)


if __name__ == "__main__":
    key = jax.random.PRNGKey(0)
    k_img, k_w, k_g, k_b = jax.random.split(key, 4)

    conv_w = 0.2 * jax.random.normal(k_w, (OC, 1, KH, KW), jnp.float32)
    bn_gamma = 1.0 + 0.1 * jax.random.normal(k_g, (OC,), jnp.float32)
    bn_beta = 0.1 * jax.random.normal(k_b, (OC,), jnp.float32)

    # small main test + one multi-tile / masked-edge test
    for (N, H, W) in [(2, 16, 16), (2, 36, 40)]:
        img = jax.random.normal(jax.random.fold_in(k_img, H * 1000 + W),
                                (N, 1, H, W), jnp.float32)
        out = jax.block_until_ready(
            learn_to_resize_kaggle(img, conv_w, bn_gamma, bn_beta))
        assert out.shape == (N, NCH, H // 2, W // 2), out.shape

        ref = _reference(img, conv_w, bn_gamma, bn_beta)
        if not jnp.allclose(out, ref, atol=1e-3, rtol=1e-3):
            raise AssertionError(
                f"mismatch vs reference at {(N, H, W)}: "
                f"max abs err = {jnp.max(jnp.abs(out - ref))}")

    print("KERNEL_OK")
</pallas_src>

<mosaic_0001>
module attributes {stable_mosaic.version = 11 : i64} {
  func.func @kernel(%arg0: i32, %arg1: i32, %arg2: memref<64x100xf32, #tpu.memory_space<vmem>>, %arg3: memref<1x4x1x2x128xf32, #tpu.memory_space<vmem>>, %arg4: memref<1x4x8x128xf32, #tpu.memory_space<vmem>>, %arg5: memref<1x16x128xf32, #tpu.memory_space<vmem>>, %arg6: memref<100x128xf32, #tpu.memory_space<vmem>>) attributes {dimension_semantics = [#tpu.dimension_semantics<parallel>, #tpu.dimension_semantics<arbitrary>], iteration_bounds = array<i64: 2, 1>, scalar_prefetch = 0 : i64, scratch_operands = 1 : i64, tpu.core_type = #tpu.core_type<tc>, window_params = [{pipeline_mode = #tpu.pipeline_mode<synchronous>, transform_indices = @transform_0, window_bounds = array<i64: 64, 100>}, {transform_indices = @transform_1, window_bounds = array<i64: 1, 4, 1, 2, 128>}, {transform_indices = @transform_2, window_bounds = array<i64: 1, 4, 8, 128>}, {transform_indices = @transform_3, window_bounds = array<i64: 1, 16, 128>}]} {
    %c0_i32 = arith.constant 0 : i32
    %0 = arith.cmpi eq, %arg1, %c0_i32 : i32
    %1 = arith.extui %0 : i1 to i32
    %c0_i32_0 = arith.constant 0 : i32
    %2 = arith.cmpi ne, %1, %c0_i32_0 : i32
    scf.if %2 {
      %cst_235 = arith.constant 0.000000e+00 : f32
      %248 = vector.broadcast %cst_235 : f32 to vector<16x128xf32>
      %c0_236 = arith.constant 0 : index
      %c0_237 = arith.constant 0 : index
      %c0_238 = arith.constant 0 : index
      %249 = vector.load %arg5[%c0_236, %c0_237, %c0_238] : memref<1x16x128xf32, #tpu.memory_space<vmem>>, vector<1x16x128xf32>
      %250 = vector.shape_cast %249 : vector<1x16x128xf32> to vector<16x128xf32>
      %251 = vector.shape_cast %248 : vector<16x128xf32> to vector<1x16x128xf32>
      tpu.vector_store %arg5[%c0_236, %c0_237, %c0_238], %251 {strides = array<i32>} : memref<1x16x128xf32, #tpu.memory_space<vmem>>, vector<1x16x128xf32>,
    } else {
    }
    %c0 = arith.constant 0 : index
    %c0_1 = arith.constant 0 : index
    %c0_2 = arith.constant 0 : index
    %c0_3 = arith.constant 0 : index
    %c0_4 = arith.constant 0 : index
    %3 = vector.load %arg3[%c0, %c0_1, %c0_2, %c0_3, %c0_4] : memref<1x4x1x2x128xf32, #tpu.memory_space<vmem>>, vector<1x1x1x2x128xf32>
    %4 = vector.shape_cast %3 : vector<1x1x1x2x128xf32> to vector<2x128xf32>
    %c0_5 = arith.constant 0 : index
    %c0_6 = arith.constant 0 : index
    %c0_7 = arith.constant 0 : index
    %c0_8 = arith.constant 0 : index
    %5 = vector.load %arg4[%c0_5, %c0_6, %c0_7, %c0_8] : memref<1x4x8x128xf32, #tpu.memory_space<vmem>>, vector<1x1x8x128xf32>
    %6 = vector.shape_cast %5 : vector<1x1x8x128xf32> to vector<8x128xf32>
    %c0_9 = arith.constant 0 : index
    %c0_10 = arith.constant 0 : index
    %7 = vector.load %arg6[%c0_9, %c0_10] : memref<100x128xf32, #tpu.memory_space<vmem>>, vector<2x128xf32>
    tpu.vector_store %arg6[%c0_9, %c0_10], %4 {strides = array<i32>} : memref<100x128xf32, #tpu.memory_space<vmem>>, vector<2x128xf32>,
    %c2 = arith.constant 2 : index
    %c0_11 = arith.constant 0 : index
    %8 = vector.load %arg6[%c2, %c0_11] : memref<100x128xf32, #tpu.memory_space<vmem>>, vector<8x128xf32>
    tpu.vector_store %arg6[%c2, %c0_11], %6 {strides = array<i32>} : memref<100x128xf32, #tpu.memory_space<vmem>>, vector<8x128xf32>,
    %c0_12 = arith.constant 0 : index
    %c2_13 = arith.constant 2 : index
    %c0_14 = arith.constant 0 : index
    %c0_15 = arith.constant 0 : index
    %c0_16 = arith.constant 0 : index
    %9 = vector.load %arg3[%c0_12, %c2_13, %c0_14, %c0_15, %c0_16] : memref<1x4x1x2x128xf32, #tpu.memory_space<vmem>>, vector<1x1x1x2x128xf32>
    %10 = vector.shape_cast %9 : vector<1x1x1x2x128xf32> to vector<2x128xf32>
    %c0_17 = arith.constant 0 : index
    %c2_18 = arith.constant 2 : index
    %c0_19 = arith.constant 0 : index
    %c0_20 = arith.constant 0 : index
    %11 = vector.load %arg4[%c0_17, %c2_18, %c0_19, %c0_20] : memref<1x4x8x128xf32, #tpu.memory_space<vmem>>, vector<1x1x8x128xf32>
    %12 = vector.shape_cast %11 : vector<1x1x8x128xf32> to vector<8x128xf32>
    %c10 = arith.constant 10 : index
    %c0_21 = arith.constant 0 : index
    %13 = vector.load %arg6[%c10, %c0_21] : memref<100x128xf32, #tpu.memory_space<vmem>>, vector<2x128xf32>
    tpu.vector_store %arg6[%c10, %c0_21], %10 {strides = array<i32>} : memref<100x128xf32, #tpu.memory_space<vmem>>, vector<2x128xf32>,
    %c12 = arith.constant 12 : index
    %c0_22 = arith.constant 0 : index
    %14 = vector.load %arg6[%c12, %c0_22] : memref<100x128xf32, #tpu.memory_space<vmem>>, vector<8x128xf32>
    tpu.vector_store %arg6[%c12, %c0_22], %12 {strides = array<i32>} : memref<100x128xf32, #tpu.memory_space<vmem>>, vector<8x128xf32>,
    %c0_23 = arith.constant 0 : index
    %c1 = arith.constant 1 : index
    %c0_24 = arith.constant 0 : index
    %c0_25 = arith.constant 0 : index
    %c0_26 = arith.constant 0 : index
    %15 = vector.load %arg3[%c0_23, %c1, %c0_24, %c0_25, %c0_26] : memref<1x4x1x2x128xf32, #tpu.memory_space<vmem>>, vector<1x1x1x2x128xf32>
    %16 = vector.shape_cast %15 : vector<1x1x1x2x128xf32> to vector<2x128xf32>
    %c0_27 = arith.constant 0 : index
    %c1_28 = arith.constant 1 : index
    %c0_29 = arith.constant 0 : index
    %c0_30 = arith.constant 0 : index
    %17 = vector.load %arg4[%c0_27, %c1_28, %c0_29, %c0_30] : memref<1x4x8x128xf32, #tpu.memory_space<vmem>>, vector<1x1x8x128xf32>
    %18 = vector.shape_cast %17 : vector<1x1x8x128xf32> to vector<8x128xf32>
    %c20 = arith.constant 20 : index
    %c0_31 = arith.constant 0 : index
    %19 = vector.load %arg6[%c20, %c0_31] : memref<100x128xf32, #tpu.memory_space<vmem>>, vector<2x128xf32>
    tpu.vector_store %arg6[%c20, %c0_31], %16 {strides = array<i32>} : memref<100x128xf32, #tpu.memory_space<vmem>>, vector<2x128xf32>,
    %c22 = arith.constant 22 : index
    %c0_32 = arith.constant 0 : index
    %20 = vector.load %arg6[%c22, %c0_32] : memref<100x128xf32, #tpu.memory_space<vmem>>, vector<8x128xf32>
    tpu.vector_store %arg6[%c22, %c0_32], %18 {strides = array<i32>} : memref<100x128xf32, #tpu.memory_space<vmem>>, vector<8x128xf32>,
    %c0_33 = arith.constant 0 : index
    %c3 = arith.constant 3 : index
    %c0_34 = arith.constant 0 : index
    %c0_35 = arith.constant 0 : index
    %c0_36 = arith.constant 0 : index
    %21 = vector.load %arg3[%c0_33, %c3, %c0_34, %c0_35, %c0_36] : memref<1x4x1x2x128xf32, #tpu.memory_space<vmem>>, vector<1x1x1x2x128xf32>
    %22 = vector.shape_cast %21 : vector<1x1x1x2x128xf32> to vector<2x128xf32>
    %c0_37 = arith.constant 0 : index
    %c3_38 = arith.constant 3 : index
    %c0_39 = arith.constant 0 : index
    %c0_40 = arith.constant 0 : index
    %23 = vector.load %arg4[%c0_37, %c3_38, %c0_39, %c0_40] : memref<1x4x8x128xf32, #tpu.memory_space<vmem>>, vector<1x1x8x128xf32>
    %24 = vector.shape_cast %23 : vector<1x1x8x128xf32> to vector<8x128xf32>
    %c30 = arith.constant 30 : index
    %c0_41 = arith.constant 0 : index
    %25 = vector.load %arg6[%c30, %c0_41] : memref<100x128xf32, #tpu.memory_space<vmem>>, vector<2x128xf32>
    tpu.vector_store %arg6[%c30, %c0_41], %22 {strides = array<i32>} : memref<100x128xf32, #tpu.memory_space<vmem>>, vector<2x128xf32>,
    %c32 = arith.constant 32 : index
    %c0_42 = arith.constant 0 : index
    %26 = vector.load %arg6[%c32, %c0_42] : memref<100x128xf32, #tpu.memory_space<vmem>>, vector<8x128xf32>
    tpu.vector_store %arg6[%c32, %c0_42], %24 {strides = array<i32>} : memref<100x128xf32, #tpu.memory_space<vmem>>, vector<8x128xf32>,
    %c0_43 = arith.constant 0 : index
    %c0_44 = arith.constant 0 : index
    %c0_45 = arith.constant 0 : index
    %c0_46 = arith.constant 0 : index
    %c0_47 = arith.constant 0 : index
    %27 = vector.load %arg3[%c0_43, %c0_44, %c0_45, %c0_46, %c0_47] : memref<1x4x1x2x128xf32, #tpu.memory_space<vmem>>, vector<1x1x1x2x128xf32>
    %28 = vector.shape_cast %27 : vector<1x1x1x2x128xf32> to vector<2x128xf32>
    %c0_48 = arith.constant 0 : index
    %c0_49 = arith.constant 0 : index
    %c0_50 = arith.constant 0 : index
    %c0_51 = arith.constant 0 : index
    %29 = vector.load %arg4[%c0_48, %c0_49, %c0_50, %c0_51] : memref<1x4x8x128xf32, #tpu.memory_space<vmem>>, vector<1x1x8x128xf32>
    %30 = vector.shape_cast %29 : vector<1x1x8x128xf32> to vector<8x128xf32>
    %c127_i32 = arith.constant 127 : i32
    %31 = tpu.dynamic_rotate %28 by %c127_i32 dim 1 : vector<2x128xf32>, i32 -> vector<2x128xf32>
    %c127_i32_52 = arith.constant 127 : i32
    %32 = tpu.dynamic_rotate %30 by %c127_i32_52 dim 1 : vector<8x128xf32>, i32 -> vector<8x128xf32>
    %c40 = arith.constant 40 : index
    %c0_53 = arith.constant 0 : index
    %33 = vector.load %arg6[%c40, %c0_53] : memref<100x128xf32, #tpu.memory_space<vmem>>, vector<2x128xf32>
    tpu.vector_store %arg6[%c40, %c0_53], %31 {strides = array<i32>} : memref<100x128xf32, #tpu.memory_space<vmem>>, vector<2x128xf32>,
    %c42 = arith.constant 42 : index
    %c0_54 = arith.constant 0 : index
    %34 = vector.load %arg6[%c42, %c0_54] : memref<100x128xf32, #tpu.memory_space<vmem>>, vector<8x128xf32>
    tpu.vector_store %arg6[%c42, %c0_54], %32 {strides = array<i32>} : memref<100x128xf32, #tpu.memory_space<vmem>>, vector<8x128xf32>,
    %c0_55 = arith.constant 0 : index
    %c2_56 = arith.constant 2 : index
    %c0_57 = arith.constant 0 : index
    %c0_58 = arith.constant 0 : index
    %c0_59 = arith.constant 0 : index
    %35 = vector.load %arg3[%c0_55, %c2_56, %c0_57, %c0_58, %c0_59] : memref<1x4x1x2x128xf32, #tpu.memory_space<vmem>>, vector<1x1x1x2x128xf32>
    %36 = vector.shape_cast %35 : vector<1x1x1x2x128xf32> to vector<2x128xf32>
    %c0_60 = arith.constant 0 : index
    %c2_61 = arith.constant 2 : index
    %c0_62 = arith.constant 0 : index
    %c0_63 = arith.constant 0 : index
    %37 = vector.load %arg4[%c0_60, %c2_61, %c0_62, %c0_63] : memref<1x4x8x128xf32, #tpu.memory_space<vmem>>, vector<1x1x8x128xf32>
    %38 = vector.shape_cast %37 : vector<1x1x8x128xf32> to vector<8x128xf32>
    %c127_i32_64 = arith.constant 127 : i32
    %39 = tpu.dynamic_rotate %36 by %c127_i32_64 dim 1 : vector<2x128xf32>, i32 -> vector<2x128xf32>
    %c127_i32_65 = arith.constant 127 : i32
    %40 = tpu.dynamic_rotate %38 by %c127_i32_65 dim 1 : vector<8x128xf32>, i32 -> vector<8x128xf32>
    %c50 = arith.constant 50 : index
    %c0_66 = arith.constant 0 : index
    %41 = vector.load %arg6[%c50, %c0_66] : memref<100x128xf32, #tpu.memory_space<vmem>>, vector<2x128xf32>
    tpu.vector_store %arg6[%c50, %c0_66], %39 {strides = array<i32>} : memref<100x128xf32, #tpu.memory_space<vmem>>, vector<2x128xf32>,
    %c52 = arith.constant 52 : index
    %c0_67 = arith.constant 0 : index
    %42 = vector.load %arg6[%c52, %c0_67] : memref<100x128xf32, #tpu.memory_space<vmem>>, vector<8x128xf32>
    tpu.vector_store %arg6[%c52, %c0_67], %40 {strides = array<i32>} : memref<100x128xf32, #tpu.memory_space<vmem>>, vector<8x128xf32>,
    %c0_68 = arith.constant 0 : index
    %c1_69 = arith.constant 1 : index
    %c0_70 = arith.constant 0 : index
    %c0_71 = arith.constant 0 : index
    %c0_72 = arith.constant 0 : index
    %43 = vector.load %arg3[%c0_68, %c1_69, %c0_70, %c0_71, %c0_72] : memref<1x4x1x2x128xf32, #tpu.memory_space<vmem>>, vector<1x1x1x2x128xf32>
    %44 = vector.shape_cast %43 : vector<1x1x1x2x128xf32> to vector<2x128xf32>
    %c0_73 = arith.constant 0 : index
    %c1_74 = arith.constant 1 : index
    %c0_75 = arith.constant 0 : index
    %c0_76 = arith.constant 0 : index
    %45 = vector.load %arg4[%c0_73, %c1_74, %c0_75, %c0_76] : memref<1x4x8x128xf32, #tpu.memory_space<vmem>>, vector<1x1x8x128xf32>
    %46 = vector.shape_cast %45 : vector<1x1x8x128xf32> to vector<8x128xf32>
    %c127_i32_77 = arith.constant 127 : i32
    %47 = tpu.dynamic_rotate %44 by %c127_i32_77 dim 1 : vector<2x128xf32>, i32 -> vector<2x128xf32>
    %c127_i32_78 = arith.constant 127 : i32
    %48 = tpu.dynamic_rotate %46 by %c127_i32_78 dim 1 : vector<8x128xf32>, i32 -> vector<8x128xf32>
    %c60 = arith.constant 60 : index
    %c0_79 = arith.constant 0 : index
    %49 = vector.load %arg6[%c60, %c0_79] : memref<100x128xf32, #tpu.memory_space<vmem>>, vector<2x128xf32>
    tpu.vector_store %arg6[%c60, %c0_79], %47 {strides = array<i32>} : memref<100x128xf32, #tpu.memory_space<vmem>>, vector<2x128xf32>,
    %c62 = arith.constant 62 : index
    %c0_80 = arith.constant 0 : index
    %50 = vector.load %arg6[%c62, %c0_80] : memref<100x128xf32, #tpu.memory_space<vmem>>, vector<8x128xf32>
    tpu.vector_store %arg6[%c62, %c0_80], %48 {strides = array<i32>} : memref<100x128xf32, #tpu.memory_space<vmem>>, vector<8x128xf32>,
    %c0_81 = arith.constant 0 : index
    %c3_82 = arith.constant 3 : index
    %c0_83 = arith.constant 0 : index
    %c0_84 = arith.constant 0 : index
    %c0_85 = arith.constant 0 : index
    %51 = vector.load %arg3[%c0_81, %c3_82, %c0_83, %c0_84, %c0_85] : memref<1x4x1x2x128xf32, #tpu.memory_space<vmem>>, vector<1x1x1x2x128xf32>
    %52 = vector.shape_cast %51 : vector<1x1x1x2x128xf32> to vector<2x128xf32>
    %c0_86 = arith.constant 0 : index
    %c3_87 = arith.constant 3 : index
    %c0_88 = arith.constant 0 : index
    %c0_89 = arith.constant 0 : index
    %53 = vector.load %arg4[%c0_86, %c3_87, %c0_88, %c0_89] : memref<1x4x8x128xf32, #tpu.memory_space<vmem>>, vector<1x1x8x128xf32>
    %54 = vector.shape_cast %53 : vector<1x1x8x128xf32> to vector<8x128xf32>
    %c127_i32_90 = arith.constant 127 : i32
    %55 = tpu.dynamic_rotate %52 by %c127_i32_90 dim 1 : vector<2x128xf32>, i32 -> vector<2x128xf32>
    %c127_i32_91 = arith.constant 127 : i32
    %56 = tpu.dynamic_rotate %54 by %c127_i32_91 dim 1 : vector<8x128xf32>, i32 -> vector<8x128xf32>
    %c70 = arith.constant 70 : index
    %c0_92 = arith.constant 0 : index
    %57 = vector.load %arg6[%c70, %c0_92] : memref<100x128xf32, #tpu.memory_space<vmem>>, vector<2x128xf32>
    tpu.vector_store %arg6[%c70, %c0_92], %55 {strides = array<i32>} : memref<100x128xf32, #tpu.memory_space<vmem>>, vector<2x128xf32>,
    %c72 = arith.constant 72 : index
    %c0_93 = arith.constant 0 : index
    %58 = vector.load %arg6[%c72, %c0_93] : memref<100x128xf32, #tpu.memory_space<vmem>>, vector<8x128xf32>
    tpu.vector_store %arg6[%c72, %c0_93], %56 {strides = array<i32>} : memref<100x128xf32, #tpu.memory_space<vmem>>, vector<8x128xf32>,
    %c0_94 = arith.constant 0 : index
    %c0_95 = arith.constant 0 : index
    %c0_96 = arith.constant 0 : index
    %c0_97 = arith.constant 0 : index
    %c0_98 = arith.constant 0 : index
    %59 = vector.load %arg3[%c0_94, %c0_95, %c0_96, %c0_97, %c0_98] : memref<1x4x1x2x128xf32, #tpu.memory_space<vmem>>, vector<1x1x1x2x128xf32>
    %60 = vector.shape_cast %59 : vector<1x1x1x2x128xf32> to vector<2x128xf32>
    %c0_99 = arith.constant 0 : index
    %c0_100 = arith.constant 0 : index
    %c0_101 = arith.constant 0 : index
    %c0_102 = arith.constant 0 : index
    %61 = vector.load %arg4[%c0_99, %c0_100, %c0_101, %c0_102] : memref<1x4x8x128xf32, #tpu.memory_space<vmem>>, vector<1x1x8x128xf32>
    %62 = vector.shape_cast %61 : vector<1x1x8x128xf32> to vector<8x128xf32>
    %c126_i32 = arith.constant 126 : i32
    %63 = tpu.dynamic_rotate %60 by %c126_i32 dim 1 : vector<2x128xf32>, i32 -> vector<2x128xf32>
    %c126_i32_103 = arith.constant 126 : i32
    %64 = tpu.dynamic_rotate %62 by %c126_i32_103 dim 1 : vector<8x128xf32>, i32 -> vector<8x128xf32>
    %c80 = arith.constant 80 : index
    %c0_104 = arith.constant 0 : index
    %65 = vector.load %arg6[%c80, %c0_104] : memref<100x128xf32, #tpu.memory_space<vmem>>, vector<2x128xf32>
    tpu.vector_store %arg6[%c80, %c0_104], %63 {strides = array<i32>} : memref<100x128xf32, #tpu.memory_space<vmem>>, vector<2x128xf32>,
    %c82 = arith.constant 82 : index
    %c0_105 = arith.constant 0 : index
    %66 = vector.load %arg6[%c82, %c0_105] : memref<100x128xf32, #tpu.memory_space<vmem>>, vector<8x128xf32>
    tpu.vector_store %arg6[%c82, %c0_105], %64 {strides = array<i32>} : memref<100x128xf32, #tpu.memory_space<vmem>>, vector<8x128xf32>,
    %c0_106 = arith.constant 0 : index
    %c2_107 = arith.constant 2 : index
    %c0_108 = arith.constant 0 : index
    %c0_109 = arith.constant 0 : index
    %c0_110 = arith.constant 0 : index
    %67 = vector.load %arg3[%c0_106, %c2_107, %c0_108, %c0_109, %c0_110] : memref<1x4x1x2x128xf32, #tpu.memory_space<vmem>>, vector<1x1x1x2x128xf32>
    %68 = vector.shape_cast %67 : vector<1x1x1x2x128xf32> to vector<2x128xf32>
    %c0_111 = arith.constant 0 : index
    %c2_112 = arith.constant 2 : index
    %c0_113 = arith.constant 0 : index
    %c0_114 = arith.constant 0 : index
    %69 = vector.load %arg4[%c0_111, %c2_112, %c0_113, %c0_114] : memref<1x4x8x128xf32, #tpu.memory_space<vmem>>, vector<1x1x8x128xf32>
    %70 = vector.shape_cast %69 : vector<1x1x8x128xf32> to vector<8x128xf32>
    %c126_i32_115 = arith.constant 126 : i32
    %71 = tpu.dynamic_rotate %68 by %c126_i32_115 dim 1 : vector<2x128xf32>, i32 -> vector<2x128xf32>
    %c126_i32_116 = arith.constant 126 : i32
    %72 = tpu.dynamic_rotate %70 by %c126_i32_116 dim 1 : vector<8x128xf32>, i32 -> vector<8x128xf32>
    %c90 = arith.constant 90 : index
    %c0_117 = arith.constant 0 : index
    %73 = vector.load %arg6[%c90, %c0_117] : memref<100x128xf32, #tpu.memory_space<vmem>>, vector<2x128xf32>
    tpu.vector_store %arg6[%c90, %c0_117], %71 {strides = array<i32>} : memref<100x128xf32, #tpu.memory_space<vmem>>, vector<2x128xf32>,
    %c92 = arith.constant 92 : index
    %c0_118 = arith.constant 0 : index
    %74 = vector.load %arg6[%c92, %c0_118] : memref<100x128xf32, #tpu.memory_space<vmem>>, vector<8x128xf32>
    tpu.vector_store %arg6[%c92, %c0_118], %72 {strides = array<i32>} : memref<100x128xf32, #tpu.memory_space<vmem>>, vector<8x128xf32>,
    %c0_119 = arith.constant 0 : index
    %c0_120 = arith.constant 0 : index
    %75 = vector.load %arg2[%c0_119, %c0_120] : memref<64x100xf32, #tpu.memory_space<vmem>>, vector<64x100xf32>
    %c0_121 = arith.constant 0 : index
    %c0_122 = arith.constant 0 : index
    %76 = vector.load %arg6[%c0_121, %c0_122] : memref<100x128xf32, #tpu.memory_space<vmem>>, vector<100x128xf32>
    %cst = arith.constant dense<0.000000e+00> : vector<64x128xf32>
    %77 = tpu.matmul %75, %76, %cst {dimension_numbers = #tpu.dot_dimension_numbers<[1], [0], [0], [1], [0, 0, 1, 1], [], []>, precision = #tpu.contract_precision<fp32>} : vector<64x100xf32>, vector<100x128xf32>, vector<64x128xf32> -> vector<64x128xf32>
    %78 = tpu.iota {dimensions = array<i32: 0>} : vector<8x128xi32>
    %79 = tpu.iota {dimensions = array<i32: 1>} : vector<8x128xi32>
    %c8_i32 = arith.constant 8 : i32
    %80 = arith.muli %arg1, %c8_i32 : i32
    %81 = vector.broadcast %80 : i32 to vector<8x128xi32>
    %82 = arith.addi %78, %81 : vector<8x128xi32>
    %c8_i32_123 = arith.constant 8 : i32
    %83 = vector.broadcast %c8_i32_123 : i32 to vector<8x128xi32>
    %84 = arith.cmpi slt, %82, %83 : vector<8x128xi32>
    %c8_i32_124 = arith.constant 8 : i32
    %85 = vector.broadcast %c8_i32_124 : i32 to vector<8x128xi32>
    %86 = arith.cmpi slt, %79, %85 : vector<8x128xi32>
    %87 = arith.andi %84, %86 : vector<8x128xi1>
    %88 = vector.extract_strided_slice %77 {offsets = [0, 0], sizes = [8, 128], strides = [1, 1]} : vector<64x128xf32> to vector<8x128xf32>
    %cst_125 = arith.constant 0.000000e+00 : f32
    %89 = vector.broadcast %cst_125 : f32 to vector<8x128xf32>
    %90 = arith.select %87, %88, %89 : vector<8x128xi1>, vector<8x128xf32>
    %c0_126 = arith.constant 0 : index
    %c0_127 = arith.constant 0 : index
    %c0_128 = arith.constant 0 : index
    %91 = vector.load %arg5[%c0_126, %c0_127, %c0_128] : memref<1x16x128xf32, #tpu.memory_space<vmem>>, vector<1x1x128xf32>
    %92 = vector.shape_cast %91 : vector<1x1x128xf32> to vector<1x128xf32>
    %cst_129 = arith.constant dense<0.000000e+00> : vector<128xf32>
    %93 = vector.multi_reduction <add>, %90, %cst_129 [0] : vector<8x128xf32> to vector<128xf32>
    %94 = vector.shape_cast %93 : vector<128xf32> to vector<1x128xf32>
    %95 = arith.addf %92, %94 : vector<1x128xf32>
    %c0_130 = arith.constant 0 : index
    %c0_131 = arith.constant 0 : index
    %c0_132 = arith.constant 0 : index
    %96 = vector.load %arg5[%c0_130, %c0_131, %c0_132] : memref<1x16x128xf32, #tpu.memory_space<vmem>>, vector<1x1x128xf32>
    %97 = vector.shape_cast %96 : vector<1x1x128xf32> to vector<1x128xf32>
    %98 = vector.shape_cast %95 : vector<1x128xf32> to vector<1x1x128xf32>
    tpu.vector_store %arg5[%c0_130, %c0_131, %c0_132], %98 {strides = array<i32>} : memref<1x16x128xf32, #tpu.memory_space<vmem>>, vector<1x1x128xf32>,
    %c0_133 = arith.constant 0 : index
    %c8 = arith.constant 8 : index
    %c0_134 = arith.constant 0 : index
    %99 = vector.load %arg5[%c0_133, %c8, %c0_134] : memref<1x16x128xf32, #tpu.memory_space<vmem>>, vector<1x1x128xf32>
    %100 = vector.shape_cast %99 : vector<1x1x128xf32> to vector<1x128xf32>
    %101 = arith.mulf %90, %90 : vector<8x128xf32>
    %cst_135 = arith.constant dense<0.000000e+00> : vector<128xf32>
    %102 = vector.multi_reduction <add>, %101, %cst_135 [0] : vector<8x128xf32> to vector<128xf32>
    %103 = vector.shape_cast %102 : vector<128xf32> to vector<1x128xf32>
    %104 = arith.addf %100, %103 : vector<1x128xf32>
    %c0_136 = arith.constant 0 : index
    %c8_137 = arith.constant 8 : index
    %c0_138 = arith.constant 0 : index
    %105 = vector.load %arg5[%c0_136, %c8_137, %c0_138] : memref<1x16x128xf32, #tpu.memory_space<vmem>>, vector<1x1x128xf32>
    %106 = vector.shape_cast %105 : vector<1x1x128xf32> to vector<1x128xf32>
    %107 = vector.shape_cast %104 : vector<1x128xf32> to vector<1x1x128xf32>
    tpu.vector_store %arg5[%c0_136, %c8_137, %c0_138], %107 {strides = array<i32>} : memref<1x16x128xf32, #tpu.memory_space<vmem>>, vector<1x1x128xf32>,
    %108 = vector.extract_strided_slice %77 {offsets = [8, 0], sizes = [8, 128], strides = [1, 1]} : vector<64x128xf32> to vector<8x128xf32>
    %cst_139 = arith.constant 0.000000e+00 : f32
    %109 = vector.broadcast %cst_139 : f32 to vector<8x128xf32>
    %110 = arith.select %87, %108, %109 : vector<8x128xi1>, vector<8x128xf32>
    %c0_140 = arith.constant 0 : index
    %c1_141 = arith.constant 1 : index
    %c0_142 = arith.constant 0 : index
    %111 = vector.load %arg5[%c0_140, %c1_141, %c0_142] : memref<1x16x128xf32, #tpu.memory_space<vmem>>, vector<1x1x128xf32>
    %112 = vector.shape_cast %111 : vector<1x1x128xf32> to vector<1x128xf32>
    %cst_143 = arith.constant dense<0.000000e+00> : vector<128xf32>
    %113 = vector.multi_reduction <add>, %110, %cst_143 [0] : vector<8x128xf32> to vector<128xf32>
    %114 = vector.shape_cast %113 : vector<128xf32> to vector<1x128xf32>
    %115 = arith.addf %112, %114 : vector<1x128xf32>
    %c0_144 = arith.constant 0 : index
    %c1_145 = arith.constant 1 : index
    %c0_146 = arith.constant 0 : index
    %116 = vector.load %arg5[%c0_144, %c1_145, %c0_146] : memref<1x16x128xf32, #tpu.memory_space<vmem>>, vector<1x1x128xf32>
    %117 = vector.shape_cast %116 : vector<1x1x128xf32> to vector<1x128xf32>
    %118 = vector.shape_cast %115 : vector<1x128xf32> to vector<1x1x128xf32>
    tpu.vector_store %arg5[%c0_144, %c1_145, %c0_146], %118 {strides = array<i32>} : memref<1x16x128xf32, #tpu.memory_space<vmem>>, vector<1x1x128xf32>,
    %c0_147 = arith.constant 0 : index
    %c9 = arith.constant 9 : index
    %c0_148 = arith.constant 0 : index
    %119 = vector.load %arg5[%c0_147, %c9, %c0_148] : memref<1x16x128xf32, #tpu.memory_space<vmem>>, vector<1x1x128xf32>
    %120 = vector.shape_cast %119 : vector<1x1x128xf32> to vector<1x128xf32>
    %121 = arith.mulf %110, %110 : vector<8x128xf32>
    %cst_149 = arith.constant dense<0.000000e+00> : vector<128xf32>
    %122 = vector.multi_reduction <add>, %121, %cst_149 [0] : vector<8x128xf32> to vector<128xf32>
    %123 = vector.shape_cast %122 : vector<128xf32> to vector<1x128xf32>
    %124 = arith.addf %120, %123 : vector<1x128xf32>
    %c0_150 = arith.constant 0 : index
    %c9_151 = arith.constant 9 : index
    %c0_152 = arith.constant 0 : index
    %125 = vector.load %arg5[%c0_150, %c9_151, %c0_152] : memref<1x16x128xf32, #tpu.memory_space<vmem>>, vector<1x1x128xf32>
    %126 = vector.shape_cast %125 : vector<1x1x128xf32> to vector<1x128xf32>
    %127 = vector.shape_cast %124 : vector<1x128xf32> to vector<1x1x128xf32>
    tpu.vector_store %arg5[%c0_150, %c9_151, %c0_152], %127 {strides = array<i32>} : memref<1x16x128xf32, #tpu.memory_space<vmem>>, vector<1x1x128xf32>,
    %128 = vector.extract_strided_slice %77 {offsets = [16, 0], sizes = [8, 128], strides = [1, 1]} : vector<64x128xf32> to vector<8x128xf32>
    %cst_153 = arith.constant 0.000000e+00 : f32
    %129 = vector.broadcast %cst_153 : f32 to vector<8x128xf32>
    %130 = arith.select %87, %128, %129 : vector<8x128xi1>, vector<8x128xf32>
    %c0_154 = arith.constant 0 : index
    %c2_155 = arith.constant 2 : index
    %c0_156 = arith.constant 0 : index
    %131 = vector.load %arg5[%c0_154, %c2_155, %c0_156] : memref<1x16x128xf32, #tpu.memory_space<vmem>>, vector<1x1x128xf32>
    %132 = vector.shape_cast %131 : vector<1x1x128xf32> to vector<1x128xf32>
    %cst_157 = arith.constant dense<0.000000e+00> : vector<128xf32>
    %133 = vector.multi_reduction <add>, %130, %cst_157 [0] : vector<8x128xf32> to vector<128xf32>
    %134 = vector.shape_cast %133 : vector<128xf32> to vector<1x128xf32>
    %135 = arith.addf %132, %134 : vector<1x128xf32>
    %c0_158 = arith.constant 0 : index
    %c2_159 = arith.constant 2 : index
    %c0_160 = arith.constant 0 : index
    %136 = vector.load %arg5[%c0_158, %c2_159, %c0_160] : memref<1x16x128xf32, #tpu.memory_space<vmem>>, vector<1x1x128xf32>
    %137 = vector.shape_cast %136 : vector<1x1x128xf32> to vector<1x128xf32>
    %138 = vector.shape_cast %135 : vector<1x128xf32> to vector<1x1x128xf32>
    tpu.vector_store %arg5[%c0_158, %c2_159, %c0_160], %138 {strides = array<i32>} : memref<1x16x128xf32, #tpu.memory_space<vmem>>, vector<1x1x128xf32>,
    %c0_161 = arith.constant 0 : index
    %c10_162 = arith.constant 10 : index
    %c0_163 = arith.constant 0 : index
    %139 = vector.load %arg5[%c0_161, %c10_162, %c0_163] : memref<1x16x128xf32, #tpu.memory_space<vmem>>, vector<1x1x128xf32>
    %140 = vector.shape_cast %139 : vector<1x1x128xf32> to vector<1x128xf32>
    %141 = arith.mulf %130, %130 : vector<8x128xf32>
    %cst_164 = arith.constant dense<0.000000e+00> : vector<128xf32>
    %142 = vector.multi_reduction <add>, %141, %cst_164 [0] : vector<8x128xf32> to vector<128xf32>
    %143 = vector.shape_cast %142 : vector<128xf32> to vector<1x128xf32>
    %144 = arith.addf %140, %143 : vector<1x128xf32>
    %c0_165 = arith.constant 0 : index
    %c10_166 = arith.constant 10 : index
    %c0_167 = arith.constant 0 : index
    %145 = vector.load %arg5[%c0_165, %c10_166, %c0_167] : memref<1x16x128xf32, #tpu.memory_space<vmem>>, vector<1x1x128xf32>
    %146 = vector.shape_cast %145 : vector<1x1x128xf32> to vector<1x128xf32>
    %147 = vector.shape_cast %144 : vector<1x128xf32> to vector<1x1x128xf32>
    tpu.vector_store %arg5[%c0_165, %c10_166, %c0_167], %147 {strides = array<i32>} : memref<1x16x128xf32, #tpu.memory_space<vmem>>, vector<1x1x128xf32>,
    %148 = vector.extract_strided_slice %77 {offsets = [24, 0], sizes = [8, 128], strides = [1, 1]} : vector<64x128xf32> to vector<8x128xf32>
    %cst_168 = arith.constant 0.000000e+00 : f32
    %149 = vector.broadcast %cst_168 : f32 to vector<8x128xf32>
    %150 = arith.select %87, %148, %149 : vector<8x128xi1>, vector<8x128xf32>
    %c0_169 = arith.constant 0 : index
    %c3_170 = arith.constant 3 : index
    %c0_171 = arith.constant 0 : index
    %151 = vector.load %arg5[%c0_169, %c3_170, %c0_171] : memref<1x16x128xf32, #tpu.memory_space<vmem>>, vector<1x1x128xf32>
    %152 = vector.shape_cast %151 : vector<1x1x128xf32> to vector<1x128xf32>
    %cst_172 = arith.constant dense<0.000000e+00> : vector<128xf32>
    %153 = vector.multi_reduction <add>, %150, %cst_172 [0] : vector<8x128xf32> to vector<128xf32>
    %154 = vector.shape_cast %153 : vector<128xf32> to vector<1x128xf32>
    %155 = arith.addf %152, %154 : vector<1x128xf32>
    %c0_173 = arith.constant 0 : index
    %c3_174 = arith.constant 3 : index
    %c0_175 = arith.constant 0 : index
    %156 = vector.load %arg5[%c0_173, %c3_174, %c0_175] : memref<1x16x128xf32, #tpu.memory_space<vmem>>, vector<1x1x128xf32>
    %157 = vector.shape_cast %156 : vector<1x1x128xf32> to vector<1x128xf32>
    %158 = vector.shape_cast %155 : vector<1x128xf32> to vector<1x1x128xf32>
    tpu.vector_store %arg5[%c0_173, %c3_174, %c0_175], %158 {strides = array<i32>} : memref<1x16x128xf32, #tpu.memory_space<vmem>>, vector<1x1x128xf32>,
    %c0_176 = arith.constant 0 : index
    %c11 = arith.constant 11 : index
    %c0_177 = arith.constant 0 : index
    %159 = vector.load %arg5[%c0_176, %c11, %c0_177] : memref<1x16x128xf32, #tpu.memory_space<vmem>>, vector<1x1x128xf32>
    %160 = vector.shape_cast %159 : vector<1x1x128xf32> to vector<1x128xf32>
    %161 = arith.mulf %150, %150 : vector<8x128xf32>
    %cst_178 = arith.constant dense<0.000000e+00> : vector<128xf32>
    %162 = vector.multi_reduction <add>, %161, %cst_178 [0] : vector<8x128xf32> to vector<128xf32>
    %163 = vector.shape_cast %162 : vector<128xf32> to vector<1x128xf32>
    %164 = arith.addf %160, %163 : vector<1x128xf32>
    %c0_179 = arith.constant 0 : index
    %c11_180 = arith.constant 11 : index
    %c0_181 = arith.constant 0 : index
    %165 = vector.load %arg5[%c0_179, %c11_180, %c0_181] : memref<1x16x128xf32, #tpu.memory_space<vmem>>, vector<1x1x128xf32>
    %166 = vector.shape_cast %165 : vector<1x1x128xf32> to vector<1x128xf32>
    %167 = vector.shape_cast %164 : vector<1x128xf32> to vector<1x1x128xf32>
    tpu.vector_store %arg5[%c0_179, %c11_180, %c0_181], %167 {strides = array<i32>} : memref<1x16x128xf32, #tpu.memory_space<vmem>>, vector<1x1x128xf32>,
    %168 = vector.extract_strided_slice %77 {offsets = [32, 0], sizes = [8, 128], strides = [1, 1]} : vector<64x128xf32> to vector<8x128xf32>
    %cst_182 = arith.constant 0.000000e+00 : f32
    %169 = vector.broadcast %cst_182 : f32 to vector<8x128xf32>
    %170 = arith.select %87, %168, %169 : vector<8x128xi1>, vector<8x128xf32>
    %c0_183 = arith.constant 0 : index
    %c4 = arith.constant 4 : index
    %c0_184 = arith.constant 0 : index
    %171 = vector.load %arg5[%c0_183, %c4, %c0_184] : memref<1x16x128xf32, #tpu.memory_space<vmem>>, vector<1x1x128xf32>
    %172 = vector.shape_cast %171 : vector<1x1x128xf32> to vector<1x128xf32>
    %cst_185 = arith.constant dense<0.000000e+00> : vector<128xf32>
    %173 = vector.multi_reduction <add>, %170, %cst_185 [0] : vector<8x128xf32> to vector<128xf32>
    %174 = vector.shape_cast %173 : vector<128xf32> to vector<1x128xf32>
    %175 = arith.addf %172, %174 : vector<1x128xf32>
    %c0_186 = arith.constant 0 : index
    %c4_187 = arith.constant 4 : index
    %c0_188 = arith.constant 0 : index
    %176 = vector.load %arg5[%c0_186, %c4_187, %c0_188] : memref<1x16x128xf32, #tpu.memory_space<vmem>>, vector<1x1x128xf32>
    %177 = vector.shape_cast %176 : vector<1x1x128xf32> to vector<1x128xf32>
    %178 = vector.shape_cast %175 : vector<1x128xf32> to vector<1x1x128xf32>
    tpu.vector_store %arg5[%c0_186, %c4_187, %c0_188], %178 {strides = array<i32>} : memref<1x16x128xf32, #tpu.memory_space<vmem>>, vector<1x1x128xf32>,
    %c0_189 = arith.constant 0 : index
    %c12_190 = arith.constant 12 : index
    %c0_191 = arith.constant 0 : index
    %179 = vector.load %arg5[%c0_189, %c12_190, %c0_191] : memref<1x16x128xf32, #tpu.memory_space<vmem>>, vector<1x1x128xf32>
    %180 = vector.shape_cast %179 : vector<1x1x128xf32> to vector<1x128xf32>
    %181 = arith.mulf %170, %170 : vector<8x128xf32>
    %cst_192 = arith.constant dense<0.000000e+00> : vector<128xf32>
    %182 = vector.multi_reduction <add>, %181, %cst_192 [0] : vector<8x128xf32> to vector<128xf32>
    %183 = vector.shape_cast %182 : vector<128xf32> to vector<1x128xf32>
    %184 = arith.addf %180, %183 : vector<1x128xf32>
    %c0_193 = arith.constant 0 : index
    %c12_194 = arith.constant 12 : index
    %c0_195 = arith.constant 0 : index
    %185 = vector.load %arg5[%c0_193, %c12_194, %c0_195] : memref<1x16x128xf32, #tpu.memory_space<vmem>>, vector<1x1x128xf32>
    %186 = vector.shape_cast %185 : vector<1x1x128xf32> to vector<1x128xf32>
    %187 = vector.shape_cast %184 : vector<1x128xf32> to vector<1x1x128xf32>
    tpu.vector_store %arg5[%c0_193, %c12_194, %c0_195], %187 {strides = array<i32>} : memref<1x16x128xf32, #tpu.memory_space<vmem>>, vector<1x1x128xf32>,
    %188 = vector.extract_strided_slice %77 {offsets = [40, 0], sizes = [8, 128], strides = [1, 1]} : vector<64x128xf32> to vector<8x128xf32>
    %cst_196 = arith.constant 0.000000e+00 : f32
    %189 = vector.broadcast %cst_196 : f32 to vector<8x128xf32>
    %190 = arith.select %87, %188, %189 : vector<8x128xi1>, vector<8x128xf32>
    %c0_197 = arith.constant 0 : index
    %c5 = arith.constant 5 : index
    %c0_198 = arith.constant 0 : index
    %191 = vector.load %arg5[%c0_197, %c5, %c0_198] : memref<1x16x128xf32, #tpu.memory_space<vmem>>, vector<1x1x128xf32>
    %192 = vector.shape_cast %191 : vector<1x1x128xf32> to vector<1x128xf32>
    %cst_199 = arith.constant dense<0.000000e+00> : vector<128xf32>
    %193 = vector.multi_reduction <add>, %190, %cst_199 [0] : vector<8x128xf32> to vector<128xf32>
    %194 = vector.shape_cast %193 : vector<128xf32> to vector<1x128xf32>
    %195 = arith.addf %192, %194 : vector<1x128xf32>
    %c0_200 = arith.constant 0 : index
    %c5_201 = arith.constant 5 : index
    %c0_202 = arith.constant 0 : index
    %196 = vector.load %arg5[%c0_200, %c5_201, %c0_202] : memref<1x16x128xf32, #tpu.memory_space<vmem>>, vector<1x1x128xf32>
    %197 = vector.shape_cast %196 : vector<1x1x128xf32> to vector<1x128xf32>
    %198 = vector.shape_cast %195 : vector<1x128xf32> to vector<1x1x128xf32>
    tpu.vector_store %arg5[%c0_200, %c5_201, %c0_202], %198 {strides = array<i32>} : memref<1x16x128xf32, #tpu.memory_space<vmem>>, vector<1x1x128xf32>,
    %c0_203 = arith.constant 0 : index
    %c13 = arith.constant 13 : index
    %c0_204 = arith.constant 0 : index
    %199 = vector.load %arg5[%c0_203, %c13, %c0_204] : memref<1x16x128xf32, #tpu.memory_space<vmem>>, vector<1x1x128xf32>
    %200 = vector.shape_cast %199 : vector<1x1x128xf32> to vector<1x128xf32>
    %201 = arith.mulf %190, %190 : vector<8x128xf32>
    %cst_205 = arith.constant dense<0.000000e+00> : vector<128xf32>
    %202 = vector.multi_reduction <add>, %201, %cst_205 [0] : vector<8x128xf32> to vector<128xf32>
    %203 = vector.shape_cast %202 : vector<128xf32> to vector<1x128xf32>
    %204 = arith.addf %200, %203 : vector<1x128xf32>
    %c0_206 = arith.constant 0 : index
    %c13_207 = arith.constant 13 : index
    %c0_208 = arith.constant 0 : index
    %205 = vector.load %arg5[%c0_206, %c13_207, %c0_208] : memref<1x16x128xf32, #tpu.memory_space<vmem>>, vector<1x1x128xf32>
    %206 = vector.shape_cast %205 : vector<1x1x128xf32> to vector<1x128xf32>
    %207 = vector.shape_cast %204 : vector<1x128xf32> to vector<1x1x128xf32>
    tpu.vector_store %arg5[%c0_206, %c13_207, %c0_208], %207 {strides = array<i32>} : memref<1x16x128xf32, #tpu.memory_space<vmem>>, vector<1x1x128xf32>,
    %208 = vector.extract_strided_slice %77 {offsets = [48, 0], sizes = [8, 128], strides = [1, 1]} : vector<64x128xf32> to vector<8x128xf32>
    %cst_209 = arith.constant 0.000000e+00 : f32
    %209 = vector.broadcast %cst_209 : f32 to vector<8x128xf32>
    %210 = arith.select %87, %208, %209 : vector<8x128xi1>, vector<8x128xf32>
    %c0_210 = arith.constant 0 : index
    %c6 = arith.constant 6 : index
    %c0_211 = arith.constant 0 : index
    %211 = vector.load %arg5[%c0_210, %c6, %c0_211] : memref<1x16x128xf32, #tpu.memory_space<vmem>>, vector<1x1x128xf32>
    %212 = vector.shape_cast %211 : vector<1x1x128xf32> to vector<1x128xf32>
    %cst_212 = arith.constant dense<0.000000e+00> : vector<128xf32>
    %213 = vector.multi_reduction <add>, %210, %cst_212 [0] : vector<8x128xf32> to vector<128xf32>
    %214 = vector.shape_cast %213 : vector<128xf32> to vector<1x128xf32>
    %215 = arith.addf %212, %214 : vector<1x128xf32>
    %c0_213 = arith.constant 0 : index
    %c6_214 = arith.constant 6 : index
    %c0_215 = arith.constant 0 : index
    %216 = vector.load %arg5[%c0_213, %c6_214, %c0_215] : memref<1x16x128xf32, #tpu.memory_space<vmem>>, vector<1x1x128xf32>
    %217 = vector.shape_cast %216 : vector<1x1x128xf32> to vector<1x128xf32>
    %218 = vector.shape_cast %215 : vector<1x128xf32> to vector<1x1x128xf32>
    tpu.vector_store %arg5[%c0_213, %c6_214, %c0_215], %218 {strides = array<i32>} : memref<1x16x128xf32, #tpu.memory_space<vmem>>, vector<1x1x128xf32>,
    %c0_216 = arith.constant 0 : index
    %c14 = arith.constant 14 : index
    %c0_217 = arith.constant 0 : index
    %219 = vector.load %arg5[%c0_216, %c14, %c0_217] : memref<1x16x128xf32, #tpu.memory_space<vmem>>, vector<1x1x128xf32>
    %220 = vector.shape_cast %219 : vector<1x1x128xf32> to vector<1x128xf32>
    %221 = arith.mulf %210, %210 : vector<8x128xf32>
    %cst_218 = arith.constant dense<0.000000e+00> : vector<128xf32>
    %222 = vector.multi_reduction <add>, %221, %cst_218 [0] : vector<8x128xf32> to vector<128xf32>
    %223 = vector.shape_cast %222 : vector<128xf32> to vector<1x128xf32>
    %224 = arith.addf %220, %223 : vector<1x128xf32>
    %c0_219 = arith.constant 0 : index
    %c14_220 = arith.constant 14 : index
    %c0_221 = arith.constant 0 : index
    %225 = vector.load %arg5[%c0_219, %c14_220, %c0_221] : memref<1x16x128xf32, #tpu.memory_space<vmem>>, vector<1x1x128xf32>
    %226 = vector.shape_cast %225 : vector<1x1x128xf32> to vector<1x128xf32>
    %227 = vector.shape_cast %224 : vector<1x128xf32> to vector<1x1x128xf32>
    tpu.vector_store %arg5[%c0_219, %c14_220, %c0_221], %227 {strides = array<i32>} : memref<1x16x128xf32, #tpu.memory_space<vmem>>, vector<1x1x128xf32>,
    %228 = vector.extract_strided_slice %77 {offsets = [56, 0], sizes = [8, 128], strides = [1, 1]} : vector<64x128xf32> to vector<8x128xf32>
    %cst_222 = arith.constant 0.000000e+00 : f32
    %229 = vector.broadcast %cst_222 : f32 to vector<8x128xf32>
    %230 = arith.select %87, %228, %229 : vector<8x128xi1>, vector<8x128xf32>
    %c0_223 = arith.constant 0 : index
    %c7 = arith.constant 7 : index
    %c0_224 = arith.constant 0 : index
    %231 = vector.load %arg5[%c0_223, %c7, %c0_224] : memref<1x16x128xf32, #tpu.memory_space<vmem>>, vector<1x1x128xf32>
    %232 = vector.shape_cast %231 : vector<1x1x128xf32> to vector<1x128xf32>
    %cst_225 = arith.constant dense<0.000000e+00> : vector<128xf32>
    %233 = vector.multi_reduction <add>, %230, %cst_225 [0] : vector<8x128xf32> to vector<128xf32>
    %234 = vector.shape_cast %233 : vector<128xf32> to vector<1x128xf32>
    %235 = arith.addf %232, %234 : vector<1x128xf32>
    %c0_226 = arith.constant 0 : index
    %c7_227 = arith.constant 7 : index
    %c0_228 = arith.constant 0 : index
    %236 = vector.load %arg5[%c0_226, %c7_227, %c0_228] : memref<1x16x128xf32, #tpu.memory_space<vmem>>, vector<1x1x128xf32>
    %237 = vector.shape_cast %236 : vector<1x1x128xf32> to vector<1x128xf32>
    %238 = vector.shape_cast %235 : vector<1x128xf32> to vector<1x1x128xf32>
    tpu.vector_store %arg5[%c0_226, %c7_227, %c0_228], %238 {strides = array<i32>} : memref<1x16x128xf32, #tpu.memory_space<vmem>>, vector<1x1x128xf32>,
    %c0_229 = arith.constant 0 : index
    %c15 = arith.constant 15 : index
    %c0_230 = arith.constant 0 : index
    %239 = vector.load %arg5[%c0_229, %c15, %c0_230] : memref<1x16x128xf32, #tpu.memory_space<vmem>>, vector<1x1x128xf32>
    %240 = vector.shape_cast %239 : vector<1x1x128xf32> to vector<1x128xf32>
    %241 = arith.mulf %230, %230 : vector<8x128xf32>
    %cst_231 = arith.constant dense<0.000000e+00> : vector<128xf32>
    %242 = vector.multi_reduction <add>, %241, %cst_231 [0] : vector<8x128xf32> to vector<128xf32>
    %243 = vector.shape_cast %242 : vector<128xf32> to vector<1x128xf32>
    %244 = arith.addf %240, %243 : vector<1x128xf32>
    %c0_232 = arith.constant 0 : index
    %c15_233 = arith.constant 15 : index
    %c0_234 = arith.constant 0 : index
    %245 = vector.load %arg5[%c0_232, %c15_233, %c0_234] : memref<1x16x128xf32, #tpu.memory_space<vmem>>, vector<1x1x128xf32>
    %246 = vector.shape_cast %245 : vector<1x1x128xf32> to vector<1x128xf32>
    %247 = vector.shape_cast %244 : vector<1x128xf32> to vector<1x1x128xf32>
    tpu.vector_store %arg5[%c0_232, %c15_233, %c0_234], %247 {strides = array<i32>} : memref<1x16x128xf32, #tpu.memory_space<vmem>>, vector<1x1x128xf32>,
    return
  }
  func.func @transform_0(%arg0: i32, %arg1: i32) -> (i32, i32) {
    %c0_i32 = arith.constant 0 : i32
    %c0_i32_0 = arith.constant 0 : i32
    %c0_i32_1 = arith.constant 0 : i32
    return %c0_i32, %c0_i32_0 : i32, i32
  }
  func.func @transform_1(%arg0: i32, %arg1: i32) -> (i32, i32, i32, i32, i32) {
    %c0_i32 = arith.constant 0 : i32
    %c0_i32_0 = arith.constant 0 : i32
    %c0_i32_1 = arith.constant 0 : i32
    %c0_i32_2 = arith.constant 0 : i32
    return %arg0, %c0_i32, %arg1, %c0_i32_0, %c0_i32_1 : i32, i32, i32, i32, i32
  }
  func.func @transform_2(%arg0: i32, %arg1: i32) -> (i32, i32, i32, i32) {
    %c0_i32 = arith.constant 0 : i32
    %c0_i32_0 = arith.constant 0 : i32
    %c0_i32_1 = arith.constant 0 : i32
    return %arg0, %c0_i32, %arg1, %c0_i32_0 : i32, i32, i32, i32
  }
  func.func @transform_3(%arg0: i32, %arg1: i32) -> (i32, i32, i32) {
    %c0_i32 = arith.constant 0 : i32
    %c0_i32_0 = arith.constant 0 : i32
    %c0_i32_1 = arith.constant 0 : i32
    return %arg0, %c0_i32, %c0_i32_0 : i32, i32, i32
  }
}

module attributes {stable_mosaic.version = 11 : i64} {
  func.func @kernel(%arg0: i32, %arg1: i32, %arg2: memref<64x100xf32, #tpu.memory_space<vmem>>, %arg3: memref<3x8xf32, #tpu.memory_space<smem>>, %arg4: memref<1x4x1x2x128xf32, #tpu.memory_space<vmem>>, %arg5: memref<1x4x8x128xf32, #tpu.memory_space<vmem>>, %arg6: memref<1x8x8x128xf32, #tpu.memory_space<vmem>>, %arg7: memref<100x128xf32, #tpu.memory_space<vmem>>) attributes {dimension_semantics = [#tpu.dimension_semantics<parallel>, #tpu.dimension_semantics<parallel>], iteration_bounds = array<i64: 2, 1>, scalar_prefetch = 0 : i64, scratch_operands = 1 : i64, tpu.core_type = #tpu.core_type<tc>, window_params = [{pipeline_mode = #tpu.pipeline_mode<synchronous>, transform_indices = @transform_0, window_bounds = array<i64: 64, 100>}, {transform_indices = @transform_1, window_bounds = array<i64: 3, 8>}, {transform_indices = @transform_2, window_bounds = array<i64: 1, 4, 1, 2, 128>}, {transform_indices = @transform_3, window_bounds = array<i64: 1, 4, 8, 128>}, {transform_indices = @transform_4, window_bounds = array<i64: 1, 8, 8, 128>}]} {
    %c0 = arith.constant 0 : index
    %c0_0 = arith.constant 0 : index
    %c0_1 = arith.constant 0 : index
    %c0_2 = arith.constant 0 : index
    %c0_3 = arith.constant 0 : index
    %0 = vector.load %arg4[%c0, %c0_0, %c0_1, %c0_2, %c0_3] : memref<1x4x1x2x128xf32, #tpu.memory_space<vmem>>, vector<1x1x1x2x128xf32>
    %1 = vector.shape_cast %0 : vector<1x1x1x2x128xf32> to vector<2x128xf32>
    %c0_4 = arith.constant 0 : index
    %c0_5 = arith.constant 0 : index
    %c0_6 = arith.constant 0 : index
    %c0_7 = arith.constant 0 : index
    %2 = vector.load %arg5[%c0_4, %c0_5, %c0_6, %c0_7] : memref<1x4x8x128xf32, #tpu.memory_space<vmem>>, vector<1x1x8x128xf32>
    %3 = vector.shape_cast %2 : vector<1x1x8x128xf32> to vector<8x128xf32>
    %c0_8 = arith.constant 0 : index
    %c0_9 = arith.constant 0 : index
    %4 = vector.load %arg7[%c0_8, %c0_9] : memref<100x128xf32, #tpu.memory_space<vmem>>, vector<2x128xf32>
    tpu.vector_store %arg7[%c0_8, %c0_9], %1 {strides = array<i32>} : memref<100x128xf32, #tpu.memory_space<vmem>>, vector<2x128xf32>,
    %c2 = arith.constant 2 : index
    %c0_10 = arith.constant 0 : index
    %5 = vector.load %arg7[%c2, %c0_10] : memref<100x128xf32, #tpu.memory_space<vmem>>, vector<8x128xf32>
    tpu.vector_store %arg7[%c2, %c0_10], %3 {strides = array<i32>} : memref<100x128xf32, #tpu.memory_space<vmem>>, vector<8x128xf32>,
    %c0_11 = arith.constant 0 : index
    %c2_12 = arith.constant 2 : index
    %c0_13 = arith.constant 0 : index
    %c0_14 = arith.constant 0 : index
    %c0_15 = arith.constant 0 : index
    %6 = vector.load %arg4[%c0_11, %c2_12, %c0_13, %c0_14, %c0_15] : memref<1x4x1x2x128xf32, #tpu.memory_space<vmem>>, vector<1x1x1x2x128xf32>
    %7 = vector.shape_cast %6 : vector<1x1x1x2x128xf32> to vector<2x128xf32>
    %c0_16 = arith.constant 0 : index
    %c2_17 = arith.constant 2 : index
    %c0_18 = arith.constant 0 : index
    %c0_19 = arith.constant 0 : index
    %8 = vector.load %arg5[%c0_16, %c2_17, %c0_18, %c0_19] : memref<1x4x8x128xf32, #tpu.memory_space<vmem>>, vector<1x1x8x128xf32>
    %9 = vector.shape_cast %8 : vector<1x1x8x128xf32> to vector<8x128xf32>
    %c10 = arith.constant 10 : index
    %c0_20 = arith.constant 0 : index
    %10 = vector.load %arg7[%c10, %c0_20] : memref<100x128xf32, #tpu.memory_space<vmem>>, vector<2x128xf32>
    tpu.vector_store %arg7[%c10, %c0_20], %7 {strides = array<i32>} : memref<100x128xf32, #tpu.memory_space<vmem>>, vector<2x128xf32>,
    %c12 = arith.constant 12 : index
    %c0_21 = arith.constant 0 : index
    %11 = vector.load %arg7[%c12, %c0_21] : memref<100x128xf32, #tpu.memory_space<vmem>>, vector<8x128xf32>
    tpu.vector_store %arg7[%c12, %c0_21], %9 {strides = array<i32>} : memref<100x128xf32, #tpu.memory_space<vmem>>, vector<8x128xf32>,
    %c0_22 = arith.constant 0 : index
    %c1 = arith.constant 1 : index
    %c0_23 = arith.constant 0 : index
    %c0_24 = arith.constant 0 : index
    %c0_25 = arith.constant 0 : index
    %12 = vector.load %arg4[%c0_22, %c1, %c0_23, %c0_24, %c0_25] : memref<1x4x1x2x128xf32, #tpu.memory_space<vmem>>, vector<1x1x1x2x128xf32>
    %13 = vector.shape_cast %12 : vector<1x1x1x2x128xf32> to vector<2x128xf32>
    %c0_26 = arith.constant 0 : index
    %c1_27 = arith.constant 1 : index
    %c0_28 = arith.constant 0 : index
    %c0_29 = arith.constant 0 : index
    %14 = vector.load %arg5[%c0_26, %c1_27, %c0_28, %c0_29] : memref<1x4x8x128xf32, #tpu.memory_space<vmem>>, vector<1x1x8x128xf32>
    %15 = vector.shape_cast %14 : vector<1x1x8x128xf32> to vector<8x128xf32>
    %c20 = arith.constant 20 : index
    %c0_30 = arith.constant 0 : index
    %16 = vector.load %arg7[%c20, %c0_30] : memref<100x128xf32, #tpu.memory_space<vmem>>, vector<2x128xf32>
    tpu.vector_store %arg7[%c20, %c0_30], %13 {strides = array<i32>} : memref<100x128xf32, #tpu.memory_space<vmem>>, vector<2x128xf32>,
    %c22 = arith.constant 22 : index
    %c0_31 = arith.constant 0 : index
    %17 = vector.load %arg7[%c22, %c0_31] : memref<100x128xf32, #tpu.memory_space<vmem>>, vector<8x128xf32>
    tpu.vector_store %arg7[%c22, %c0_31], %15 {strides = array<i32>} : memref<100x128xf32, #tpu.memory_space<vmem>>, vector<8x128xf32>,
    %c0_32 = arith.constant 0 : index
    %c3 = arith.constant 3 : index
    %c0_33 = arith.constant 0 : index
    %c0_34 = arith.constant 0 : index
    %c0_35 = arith.constant 0 : index
    %18 = vector.load %arg4[%c0_32, %c3, %c0_33, %c0_34, %c0_35] : memref<1x4x1x2x128xf32, #tpu.memory_space<vmem>>, vector<1x1x1x2x128xf32>
    %19 = vector.shape_cast %18 : vector<1x1x1x2x128xf32> to vector<2x128xf32>
    %c0_36 = arith.constant 0 : index
    %c3_37 = arith.constant 3 : index
    %c0_38 = arith.constant 0 : index
    %c0_39 = arith.constant 0 : index
    %20 = vector.load %arg5[%c0_36, %c3_37, %c0_38, %c0_39] : memref<1x4x8x128xf32, #tpu.memory_space<vmem>>, vector<1x1x8x128xf32>
    %21 = vector.shape_cast %20 : vector<1x1x8x128xf32> to vector<8x128xf32>
    %c30 = arith.constant 30 : index
    %c0_40 = arith.constant 0 : index
    %22 = vector.load %arg7[%c30, %c0_40] : memref<100x128xf32, #tpu.memory_space<vmem>>, vector<2x128xf32>
    tpu.vector_store %arg7[%c30, %c0_40], %19 {strides = array<i32>} : memref<100x128xf32, #tpu.memory_space<vmem>>, vector<2x128xf32>,
    %c32 = arith.constant 32 : index
    %c0_41 = arith.constant 0 : index
    %23 = vector.load %arg7[%c32, %c0_41] : memref<100x128xf32, #tpu.memory_space<vmem>>, vector<8x128xf32>
    tpu.vector_store %arg7[%c32, %c0_41], %21 {strides = array<i32>} : memref<100x128xf32, #tpu.memory_space<vmem>>, vector<8x128xf32>,
    %c0_42 = arith.constant 0 : index
    %c0_43 = arith.constant 0 : index
    %c0_44 = arith.constant 0 : index
    %c0_45 = arith.constant 0 : index
    %c0_46 = arith.constant 0 : index
    %24 = vector.load %arg4[%c0_42, %c0_43, %c0_44, %c0_45, %c0_46] : memref<1x4x1x2x128xf32, #tpu.memory_space<vmem>>, vector<1x1x1x2x128xf32>
    %25 = vector.shape_cast %24 : vector<1x1x1x2x128xf32> to vector<2x128xf32>
    %c0_47 = arith.constant 0 : index
    %c0_48 = arith.constant 0 : index
    %c0_49 = arith.constant 0 : index
    %c0_50 = arith.constant 0 : index
    %26 = vector.load %arg5[%c0_47, %c0_48, %c0_49, %c0_50] : memref<1x4x8x128xf32, #tpu.memory_space<vmem>>, vector<1x1x8x128xf32>
    %27 = vector.shape_cast %26 : vector<1x1x8x128xf32> to vector<8x128xf32>
    %c127_i32 = arith.constant 127 : i32
    %28 = tpu.dynamic_rotate %25 by %c127_i32 dim 1 : vector<2x128xf32>, i32 -> vector<2x128xf32>
    %c127_i32_51 = arith.constant 127 : i32
    %29 = tpu.dynamic_rotate %27 by %c127_i32_51 dim 1 : vector<8x128xf32>, i32 -> vector<8x128xf32>
    %c40 = arith.constant 40 : index
    %c0_52 = arith.constant 0 : index
    %30 = vector.load %arg7[%c40, %c0_52] : memref<100x128xf32, #tpu.memory_space<vmem>>, vector<2x128xf32>
    tpu.vector_store %arg7[%c40, %c0_52], %28 {strides = array<i32>} : memref<100x128xf32, #tpu.memory_space<vmem>>, vector<2x128xf32>,
    %c42 = arith.constant 42 : index
    %c0_53 = arith.constant 0 : index
    %31 = vector.load %arg7[%c42, %c0_53] : memref<100x128xf32, #tpu.memory_space<vmem>>, vector<8x128xf32>
    tpu.vector_store %arg7[%c42, %c0_53], %29 {strides = array<i32>} : memref<100x128xf32, #tpu.memory_space<vmem>>, vector<8x128xf32>,
    %c0_54 = arith.constant 0 : index
    %c2_55 = arith.constant 2 : index
    %c0_56 = arith.constant 0 : index
    %c0_57 = arith.constant 0 : index
    %c0_58 = arith.constant 0 : index
    %32 = vector.load %arg4[%c0_54, %c2_55, %c0_56, %c0_57, %c0_58] : memref<1x4x1x2x128xf32, #tpu.memory_space<vmem>>, vector<1x1x1x2x128xf32>
    %33 = vector.shape_cast %32 : vector<1x1x1x2x128xf32> to vector<2x128xf32>
    %c0_59 = arith.constant 0 : index
    %c2_60 = arith.constant 2 : index
    %c0_61 = arith.constant 0 : index
    %c0_62 = arith.constant 0 : index
    %34 = vector.load %arg5[%c0_59, %c2_60, %c0_61, %c0_62] : memref<1x4x8x128xf32, #tpu.memory_space<vmem>>, vector<1x1x8x128xf32>
    %35 = vector.shape_cast %34 : vector<1x1x8x128xf32> to vector<8x128xf32>
    %c127_i32_63 = arith.constant 127 : i32
    %36 = tpu.dynamic_rotate %33 by %c127_i32_63 dim 1 : vector<2x128xf32>, i32 -> vector<2x128xf32>
    %c127_i32_64 = arith.constant 127 : i32
    %37 = tpu.dynamic_rotate %35 by %c127_i32_64 dim 1 : vector<8x128xf32>, i32 -> vector<8x128xf32>
    %c50 = arith.constant 50 : index
    %c0_65 = arith.constant 0 : index
    %38 = vector.load %arg7[%c50, %c0_65] : memref<100x128xf32, #tpu.memory_space<vmem>>, vector<2x128xf32>
    tpu.vector_store %arg7[%c50, %c0_65], %36 {strides = array<i32>} : memref<100x128xf32, #tpu.memory_space<vmem>>, vector<2x128xf32>,
    %c52 = arith.constant 52 : index
    %c0_66 = arith.constant 0 : index
    %39 = vector.load %arg7[%c52, %c0_66] : memref<100x128xf32, #tpu.memory_space<vmem>>, vector<8x128xf32>
    tpu.vector_store %arg7[%c52, %c0_66], %37 {strides = array<i32>} : memref<100x128xf32, #tpu.memory_space<vmem>>, vector<8x128xf32>,
    %c0_67 = arith.constant 0 : index
    %c1_68 = arith.constant 1 : index
    %c0_69 = arith.constant 0 : index
    %c0_70 = arith.constant 0 : index
    %c0_71 = arith.constant 0 : index
    %40 = vector.load %arg4[%c0_67, %c1_68, %c0_69, %c0_70, %c0_71] : memref<1x4x1x2x128xf32, #tpu.memory_space<vmem>>, vector<1x1x1x2x128xf32>
    %41 = vector.shape_cast %40 : vector<1x1x1x2x128xf32> to vector<2x128xf32>
    %c0_72 = arith.constant 0 : index
    %c1_73 = arith.constant 1 : index
    %c0_74 = arith.constant 0 : index
    %c0_75 = arith.constant 0 : index
    %42 = vector.load %arg5[%c0_72, %c1_73, %c0_74, %c0_75] : memref<1x4x8x128xf32, #tpu.memory_space<vmem>>, vector<1x1x8x128xf32>
    %43 = vector.shape_cast %42 : vector<1x1x8x128xf32> to vector<8x128xf32>
    %c127_i32_76 = arith.constant 127 : i32
    %44 = tpu.dynamic_rotate %41 by %c127_i32_76 dim 1 : vector<2x128xf32>, i32 -> vector<2x128xf32>
    %c127_i32_77 = arith.constant 127 : i32
    %45 = tpu.dynamic_rotate %43 by %c127_i32_77 dim 1 : vector<8x128xf32>, i32 -> vector<8x128xf32>
    %c60 = arith.constant 60 : index
    %c0_78 = arith.constant 0 : index
    %46 = vector.load %arg7[%c60, %c0_78] : memref<100x128xf32, #tpu.memory_space<vmem>>, vector<2x128xf32>
    tpu.vector_store %arg7[%c60, %c0_78], %44 {strides = array<i32>} : memref<100x128xf32, #tpu.memory_space<vmem>>, vector<2x128xf32>,
    %c62 = arith.constant 62 : index
    %c0_79 = arith.constant 0 : index
    %47 = vector.load %arg7[%c62, %c0_79] : memref<100x128xf32, #tpu.memory_space<vmem>>, vector<8x128xf32>
    tpu.vector_store %arg7[%c62, %c0_79], %45 {strides = array<i32>} : memref<100x128xf32, #tpu.memory_space<vmem>>, vector<8x128xf32>,
    %c0_80 = arith.constant 0 : index
    %c3_81 = arith.constant 3 : index
    %c0_82 = arith.constant 0 : index
    %c0_83 = arith.constant 0 : index
    %c0_84 = arith.constant 0 : index
    %48 = vector.load %arg4[%c0_80, %c3_81, %c0_82, %c0_83, %c0_84] : memref<1x4x1x2x128xf32, #tpu.memory_space<vmem>>, vector<1x1x1x2x128xf32>
    %49 = vector.shape_cast %48 : vector<1x1x1x2x128xf32> to vector<2x128xf32>
    %c0_85 = arith.constant 0 : index
    %c3_86 = arith.constant 3 : index
    %c0_87 = arith.constant 0 : index
    %c0_88 = arith.constant 0 : index
    %50 = vector.load %arg5[%c0_85, %c3_86, %c0_87, %c0_88] : memref<1x4x8x128xf32, #tpu.memory_space<vmem>>, vector<1x1x8x128xf32>
    %51 = vector.shape_cast %50 : vector<1x1x8x128xf32> to vector<8x128xf32>
    %c127_i32_89 = arith.constant 127 : i32
    %52 = tpu.dynamic_rotate %49 by %c127_i32_89 dim 1 : vector<2x128xf32>, i32 -> vector<2x128xf32>
    %c127_i32_90 = arith.constant 127 : i32
    %53 = tpu.dynamic_rotate %51 by %c127_i32_90 dim 1 : vector<8x128xf32>, i32 -> vector<8x128xf32>
    %c70 = arith.constant 70 : index
    %c0_91 = arith.constant 0 : index
    %54 = vector.load %arg7[%c70, %c0_91] : memref<100x128xf32, #tpu.memory_space<vmem>>, vector<2x128xf32>
    tpu.vector_store %arg7[%c70, %c0_91], %52 {strides = array<i32>} : memref<100x128xf32, #tpu.memory_space<vmem>>, vector<2x128xf32>,
    %c72 = arith.constant 72 : index
    %c0_92 = arith.constant 0 : index
    %55 = vector.load %arg7[%c72, %c0_92] : memref<100x128xf32, #tpu.memory_space<vmem>>, vector<8x128xf32>
    tpu.vector_store %arg7[%c72, %c0_92], %53 {strides = array<i32>} : memref<100x128xf32, #tpu.memory_space<vmem>>, vector<8x128xf32>,
    %c0_93 = arith.constant 0 : index
    %c0_94 = arith.constant 0 : index
    %c0_95 = arith.constant 0 : index
    %c0_96 = arith.constant 0 : index
    %c0_97 = arith.constant 0 : index
    %56 = vector.load %arg4[%c0_93, %c0_94, %c0_95, %c0_96, %c0_97] : memref<1x4x1x2x128xf32, #tpu.memory_space<vmem>>, vector<1x1x1x2x128xf32>
    %57 = vector.shape_cast %56 : vector<1x1x1x2x128xf32> to vector<2x128xf32>
    %c0_98 = arith.constant 0 : index
    %c0_99 = arith.constant 0 : index
    %c0_100 = arith.constant 0 : index
    %c0_101 = arith.constant 0 : index
    %58 = vector.load %arg5[%c0_98, %c0_99, %c0_100, %c0_101] : memref<1x4x8x128xf32, #tpu.memory_space<vmem>>, vector<1x1x8x128xf32>
    %59 = vector.shape_cast %58 : vector<1x1x8x128xf32> to vector<8x128xf32>
    %c126_i32 = arith.constant 126 : i32
    %60 = tpu.dynamic_rotate %57 by %c126_i32 dim 1 : vector<2x128xf32>, i32 -> vector<2x128xf32>
    %c126_i32_102 = arith.constant 126 : i32
    %61 = tpu.dynamic_rotate %59 by %c126_i32_102 dim 1 : vector<8x128xf32>, i32 -> vector<8x128xf32>
    %c80 = arith.constant 80 : index
    %c0_103 = arith.constant 0 : index
    %62 = vector.load %arg7[%c80, %c0_103] : memref<100x128xf32, #tpu.memory_space<vmem>>, vector<2x128xf32>
    tpu.vector_store %arg7[%c80, %c0_103], %60 {strides = array<i32>} : memref<100x128xf32, #tpu.memory_space<vmem>>, vector<2x128xf32>,
    %c82 = arith.constant 82 : index
    %c0_104 = arith.constant 0 : index
    %63 = vector.load %arg7[%c82, %c0_104] : memref<100x128xf32, #tpu.memory_space<vmem>>, vector<8x128xf32>
    tpu.vector_store %arg7[%c82, %c0_104], %61 {strides = array<i32>} : memref<100x128xf32, #tpu.memory_space<vmem>>, vector<8x128xf32>,
    %c0_105 = arith.constant 0 : index
    %c2_106 = arith.constant 2 : index
    %c0_107 = arith.constant 0 : index
    %c0_108 = arith.constant 0 : index
    %c0_109 = arith.constant 0 : index
    %64 = vector.load %arg4[%c0_105, %c2_106, %c0_107, %c0_108, %c0_109] : memref<1x4x1x2x128xf32, #tpu.memory_space<vmem>>, vector<1x1x1x2x128xf32>
    %65 = vector.shape_cast %64 : vector<1x1x1x2x128xf32> to vector<2x128xf32>
    %c0_110 = arith.constant 0 : index
    %c2_111 = arith.constant 2 : index
    %c0_112 = arith.constant 0 : index
    %c0_113 = arith.constant 0 : index
    %66 = vector.load %arg5[%c0_110, %c2_111, %c0_112, %c0_113] : memref<1x4x8x128xf32, #tpu.memory_space<vmem>>, vector<1x1x8x128xf32>
    %67 = vector.shape_cast %66 : vector<1x1x8x128xf32> to vector<8x128xf32>
    %c126_i32_114 = arith.constant 126 : i32
    %68 = tpu.dynamic_rotate %65 by %c126_i32_114 dim 1 : vector<2x128xf32>, i32 -> vector<2x128xf32>
    %c126_i32_115 = arith.constant 126 : i32
    %69 = tpu.dynamic_rotate %67 by %c126_i32_115 dim 1 : vector<8x128xf32>, i32 -> vector<8x128xf32>
    %c90 = arith.constant 90 : index
    %c0_116 = arith.constant 0 : index
    %70 = vector.load %arg7[%c90, %c0_116] : memref<100x128xf32, #tpu.memory_space<vmem>>, vector<2x128xf32>
    tpu.vector_store %arg7[%c90, %c0_116], %68 {strides = array<i32>} : memref<100x128xf32, #tpu.memory_space<vmem>>, vector<2x128xf32>,
    %c92 = arith.constant 92 : index
    %c0_117 = arith.constant 0 : index
    %71 = vector.load %arg7[%c92, %c0_117] : memref<100x128xf32, #tpu.memory_space<vmem>>, vector<8x128xf32>
    tpu.vector_store %arg7[%c92, %c0_117], %69 {strides = array<i32>} : memref<100x128xf32, #tpu.memory_space<vmem>>, vector<8x128xf32>,
    %c0_118 = arith.constant 0 : index
    %c0_119 = arith.constant 0 : index
    %72 = vector.load %arg2[%c0_118, %c0_119] : memref<64x100xf32, #tpu.memory_space<vmem>>, vector<64x100xf32>
    %c0_120 = arith.constant 0 : index
    %c0_121 = arith.constant 0 : index
    %73 = vector.load %arg7[%c0_120, %c0_121] : memref<100x128xf32, #tpu.memory_space<vmem>>, vector<100x128xf32>
    %cst = arith.constant dense<0.000000e+00> : vector<64x128xf32>
    %74 = tpu.matmul %72, %73, %cst {dimension_numbers = #tpu.dot_dimension_numbers<[1], [0], [0], [1], [0, 0, 1, 1], [], []>, precision = #tpu.contract_precision<fp32>} : vector<64x100xf32>, vector<100x128xf32>, vector<64x128xf32> -> vector<64x128xf32>
    %75 = vector.extract_strided_slice %74 {offsets = [0, 0], sizes = [8, 128], strides = [1, 1]} : vector<64x128xf32> to vector<8x128xf32>
    %c0_122 = arith.constant 0 : index
    %c0_123 = arith.constant 0 : index
    %76 = memref.load %arg3[%c0_122, %c0_123] : memref<3x8xf32, #tpu.memory_space<smem>>
    %77 = vector.broadcast %76 : f32 to vector<8x128xf32>
    %78 = arith.mulf %75, %77 : vector<8x128xf32>
    %c1_124 = arith.constant 1 : index
    %c0_125 = arith.constant 0 : index
    %79 = memref.load %arg3[%c1_124, %c0_125] : memref<3x8xf32, #tpu.memory_space<smem>>
    %80 = vector.broadcast %79 : f32 to vector<8x128xf32>
    %81 = arith.addf %78, %80 : vector<8x128xf32>
    %c2_126 = arith.constant 2 : index
    %c0_127 = arith.constant 0 : index
    %82 = memref.load %arg3[%c2_126, %c0_127] : memref<3x8xf32, #tpu.memory_space<smem>>
    %83 = vector.broadcast %82 : f32 to vector<8x128xf32>
    %84 = arith.maximumf %81, %83 : vector<8x128xf32>
    %c0_128 = arith.constant 0 : index
    %c0_129 = arith.constant 0 : index
    %c0_130 = arith.constant 0 : index
    %c0_131 = arith.constant 0 : index
    %85 = vector.load %arg6[%c0_128, %c0_129, %c0_130, %c0_131] : memref<1x8x8x128xf32, #tpu.memory_space<vmem>>, vector<1x1x8x128xf32>
    %86 = vector.shape_cast %85 : vector<1x1x8x128xf32> to vector<8x128xf32>
    %87 = vector.shape_cast %84 : vector<8x128xf32> to vector<1x1x8x128xf32>
    tpu.vector_store %arg6[%c0_128, %c0_129, %c0_130, %c0_131], %87 {strides = array<i32>} : memref<1x8x8x128xf32, #tpu.memory_space<vmem>>, vector<1x1x8x128xf32>,
    %88 = vector.extract_strided_slice %74 {offsets = [8, 0], sizes = [8, 128], strides = [1, 1]} : vector<64x128xf32> to vector<8x128xf32>
    %c0_132 = arith.constant 0 : index
    %c1_133 = arith.constant 1 : index
    %89 = memref.load %arg3[%c0_132, %c1_133] : memref<3x8xf32, #tpu.memory_space<smem>>
    %90 = vector.broadcast %89 : f32 to vector<8x128xf32>
    %91 = arith.mulf %88, %90 : vector<8x128xf32>
    %c1_134 = arith.constant 1 : index
    %c1_135 = arith.constant 1 : index
    %92 = memref.load %arg3[%c1_134, %c1_135] : memref<3x8xf32, #tpu.memory_space<smem>>
    %93 = vector.broadcast %92 : f32 to vector<8x128xf32>
    %94 = arith.addf %91, %93 : vector<8x128xf32>
    %c2_136 = arith.constant 2 : index
    %c1_137 = arith.constant 1 : index
    %95 = memref.load %arg3[%c2_136, %c1_137] : memref<3x8xf32, #tpu.memory_space<smem>>
    %96 = vector.broadcast %95 : f32 to vector<8x128xf32>
    %97 = arith.maximumf %94, %96 : vector<8x128xf32>
    %c0_138 = arith.constant 0 : index
    %c1_139 = arith.constant 1 : index
    %c0_140 = arith.constant 0 : index
    %c0_141 = arith.constant 0 : index
    %98 = vector.load %arg6[%c0_138, %c1_139, %c0_140, %c0_141] : memref<1x8x8x128xf32, #tpu.memory_space<vmem>>, vector<1x1x8x128xf32>
    %99 = vector.shape_cast %98 : vector<1x1x8x128xf32> to vector<8x128xf32>
    %100 = vector.shape_cast %97 : vector<8x128xf32> to vector<1x1x8x128xf32>
    tpu.vector_store %arg6[%c0_138, %c1_139, %c0_140, %c0_141], %100 {strides = array<i32>} : memref<1x8x8x128xf32, #tpu.memory_space<vmem>>, vector<1x1x8x128xf32>,
    %101 = vector.extract_strided_slice %74 {offsets = [16, 0], sizes = [8, 128], strides = [1, 1]} : vector<64x128xf32> to vector<8x128xf32>
    %c0_142 = arith.constant 0 : index
    %c2_143 = arith.constant 2 : index
    %102 = memref.load %arg3[%c0_142, %c2_143] : memref<3x8xf32, #tpu.memory_space<smem>>
    %103 = vector.broadcast %102 : f32 to vector<8x128xf32>
    %104 = arith.mulf %101, %103 : vector<8x128xf32>
    %c1_144 = arith.constant 1 : index
    %c2_145 = arith.constant 2 : index
    %105 = memref.load %arg3[%c1_144, %c2_145] : memref<3x8xf32, #tpu.memory_space<smem>>
    %106 = vector.broadcast %105 : f32 to vector<8x128xf32>
    %107 = arith.addf %104, %106 : vector<8x128xf32>
    %c2_146 = arith.constant 2 : index
    %c2_147 = arith.constant 2 : index
    %108 = memref.load %arg3[%c2_146, %c2_147] : memref<3x8xf32, #tpu.memory_space<smem>>
    %109 = vector.broadcast %108 : f32 to vector<8x128xf32>
    %110 = arith.maximumf %107, %109 : vector<8x128xf32>
    %c0_148 = arith.constant 0 : index
    %c2_149 = arith.constant 2 : index
    %c0_150 = arith.constant 0 : index
    %c0_151 = arith.constant 0 : index
    %111 = vector.load %arg6[%c0_148, %c2_149, %c0_150, %c0_151] : memref<1x8x8x128xf32, #tpu.memory_space<vmem>>, vector<1x1x8x128xf32>
    %112 = vector.shape_cast %111 : vector<1x1x8x128xf32> to vector<8x128xf32>
    %113 = vector.shape_cast %110 : vector<8x128xf32> to vector<1x1x8x128xf32>
    tpu.vector_store %arg6[%c0_148, %c2_149, %c0_150, %c0_151], %113 {strides = array<i32>} : memref<1x8x8x128xf32, #tpu.memory_space<vmem>>, vector<1x1x8x128xf32>,
    %114 = vector.extract_strided_slice %74 {offsets = [24, 0], sizes = [8, 128], strides = [1, 1]} : vector<64x128xf32> to vector<8x128xf32>
    %c0_152 = arith.constant 0 : index
    %c3_153 = arith.constant 3 : index
    %115 = memref.load %arg3[%c0_152, %c3_153] : memref<3x8xf32, #tpu.memory_space<smem>>
    %116 = vector.broadcast %115 : f32 to vector<8x128xf32>
    %117 = arith.mulf %114, %116 : vector<8x128xf32>
    %c1_154 = arith.constant 1 : index
    %c3_155 = arith.constant 3 : index
    %118 = memref.load %arg3[%c1_154, %c3_155] : memref<3x8xf32, #tpu.memory_space<smem>>
    %119 = vector.broadcast %118 : f32 to vector<8x128xf32>
    %120 = arith.addf %117, %119 : vector<8x128xf32>
    %c2_156 = arith.constant 2 : index
    %c3_157 = arith.constant 3 : index
    %121 = memref.load %arg3[%c2_156, %c3_157] : memref<3x8xf32, #tpu.memory_space<smem>>
    %122 = vector.broadcast %121 : f32 to vector<8x128xf32>
    %123 = arith.maximumf %120, %122 : vector<8x128xf32>
    %c0_158 = arith.constant 0 : index
    %c3_159 = arith.constant 3 : index
    %c0_160 = arith.constant 0 : index
    %c0_161 = arith.constant 0 : index
    %124 = vector.load %arg6[%c0_158, %c3_159, %c0_160, %c0_161] : memref<1x8x8x128xf32, #tpu.memory_space<vmem>>, vector<1x1x8x128xf32>
    %125 = vector.shape_cast %124 : vector<1x1x8x128xf32> to vector<8x128xf32>
    %126 = vector.shape_cast %123 : vector<8x128xf32> to vector<1x1x8x128xf32>
    tpu.vector_store %arg6[%c0_158, %c3_159, %c0_160, %c0_161], %126 {strides = array<i32>} : memref<1x8x8x128xf32, #tpu.memory_space<vmem>>, vector<1x1x8x128xf32>,
    %127 = vector.extract_strided_slice %74 {offsets = [32, 0], sizes = [8, 128], strides = [1, 1]} : vector<64x128xf32> to vector<8x128xf32>
    %c0_162 = arith.constant 0 : index
    %c4 = arith.constant 4 : index
    %128 = memref.load %arg3[%c0_162, %c4] : memref<3x8xf32, #tpu.memory_space<smem>>
    %129 = vector.broadcast %128 : f32 to vector<8x128xf32>
    %130 = arith.mulf %127, %129 : vector<8x128xf32>
    %c1_163 = arith.constant 1 : index
    %c4_164 = arith.constant 4 : index
    %131 = memref.load %arg3[%c1_163, %c4_164] : memref<3x8xf32, #tpu.memory_space<smem>>
    %132 = vector.broadcast %131 : f32 to vector<8x128xf32>
    %133 = arith.addf %130, %132 : vector<8x128xf32>
    %c2_165 = arith.constant 2 : index
    %c4_166 = arith.constant 4 : index
    %134 = memref.load %arg3[%c2_165, %c4_166] : memref<3x8xf32, #tpu.memory_space<smem>>
    %135 = vector.broadcast %134 : f32 to vector<8x128xf32>
    %136 = arith.maximumf %133, %135 : vector<8x128xf32>
    %c0_167 = arith.constant 0 : index
    %c4_168 = arith.constant 4 : index
    %c0_169 = arith.constant 0 : index
    %c0_170 = arith.constant 0 : index
    %137 = vector.load %arg6[%c0_167, %c4_168, %c0_169, %c0_170] : memref<1x8x8x128xf32, #tpu.memory_space<vmem>>, vector<1x1x8x128xf32>
    %138 = vector.shape_cast %137 : vector<1x1x8x128xf32> to vector<8x128xf32>
    %139 = vector.shape_cast %136 : vector<8x128xf32> to vector<1x1x8x128xf32>
    tpu.vector_store %arg6[%c0_167, %c4_168, %c0_169, %c0_170], %139 {strides = array<i32>} : memref<1x8x8x128xf32, #tpu.memory_space<vmem>>, vector<1x1x8x128xf32>,
    %140 = vector.extract_strided_slice %74 {offsets = [40, 0], sizes = [8, 128], strides = [1, 1]} : vector<64x128xf32> to vector<8x128xf32>
    %c0_171 = arith.constant 0 : index
    %c5 = arith.constant 5 : index
    %141 = memref.load %arg3[%c0_171, %c5] : memref<3x8xf32, #tpu.memory_space<smem>>
    %142 = vector.broadcast %141 : f32 to vector<8x128xf32>
    %143 = arith.mulf %140, %142 : vector<8x128xf32>
    %c1_172 = arith.constant 1 : index
    %c5_173 = arith.constant 5 : index
    %144 = memref.load %arg3[%c1_172, %c5_173] : memref<3x8xf32, #tpu.memory_space<smem>>
    %145 = vector.broadcast %144 : f32 to vector<8x128xf32>
    %146 = arith.addf %143, %145 : vector<8x128xf32>
    %c2_174 = arith.constant 2 : index
    %c5_175 = arith.constant 5 : index
    %147 = memref.load %arg3[%c2_174, %c5_175] : memref<3x8xf32, #tpu.memory_space<smem>>
    %148 = vector.broadcast %147 : f32 to vector<8x128xf32>
    %149 = arith.maximumf %146, %148 : vector<8x128xf32>
    %c0_176 = arith.constant 0 : index
    %c5_177 = arith.constant 5 : index
    %c0_178 = arith.constant 0 : index
    %c0_179 = arith.constant 0 : index
    %150 = vector.load %arg6[%c0_176, %c5_177, %c0_178, %c0_179] : memref<1x8x8x128xf32, #tpu.memory_space<vmem>>, vector<1x1x8x128xf32>
    %151 = vector.shape_cast %150 : vector<1x1x8x128xf32> to vector<8x128xf32>
    %152 = vector.shape_cast %149 : vector<8x128xf32> to vector<1x1x8x128xf32>
    tpu.vector_store %arg6[%c0_176, %c5_177, %c0_178, %c0_179], %152 {strides = array<i32>} : memref<1x8x8x128xf32, #tpu.memory_space<vmem>>, vector<1x1x8x128xf32>,
    %153 = vector.extract_strided_slice %74 {offsets = [48, 0], sizes = [8, 128], strides = [1, 1]} : vector<64x128xf32> to vector<8x128xf32>
    %c0_180 = arith.constant 0 : index
    %c6 = arith.constant 6 : index
    %154 = memref.load %arg3[%c0_180, %c6] : memref<3x8xf32, #tpu.memory_space<smem>>
    %155 = vector.broadcast %154 : f32 to vector<8x128xf32>
    %156 = arith.mulf %153, %155 : vector<8x128xf32>
    %c1_181 = arith.constant 1 : index
    %c6_182 = arith.constant 6 : index
    %157 = memref.load %arg3[%c1_181, %c6_182] : memref<3x8xf32, #tpu.memory_space<smem>>
    %158 = vector.broadcast %157 : f32 to vector<8x128xf32>
    %159 = arith.addf %156, %158 : vector<8x128xf32>
    %c2_183 = arith.constant 2 : index
    %c6_184 = arith.constant 6 : index
    %160 = memref.load %arg3[%c2_183, %c6_184] : memref<3x8xf32, #tpu.memory_space<smem>>
    %161 = vector.broadcast %160 : f32 to vector<8x128xf32>
    %162 = arith.maximumf %159, %161 : vector<8x128xf32>
    %c0_185 = arith.constant 0 : index
    %c6_186 = arith.constant 6 : index
    %c0_187 = arith.constant 0 : index
    %c0_188 = arith.constant 0 : index
    %163 = vector.load %arg6[%c0_185, %c6_186, %c0_187, %c0_188] : memref<1x8x8x128xf32, #tpu.memory_space<vmem>>, vector<1x1x8x128xf32>
    %164 = vector.shape_cast %163 : vector<1x1x8x128xf32> to vector<8x128xf32>
    %165 = vector.shape_cast %162 : vector<8x128xf32> to vector<1x1x8x128xf32>
    tpu.vector_store %arg6[%c0_185, %c6_186, %c0_187, %c0_188], %165 {strides = array<i32>} : memref<1x8x8x128xf32, #tpu.memory_space<vmem>>, vector<1x1x8x128xf32>,
    %166 = vector.extract_strided_slice %74 {offsets = [56, 0], sizes = [8, 128], strides = [1, 1]} : vector<64x128xf32> to vector<8x128xf32>
    %c0_189 = arith.constant 0 : index
    %c7 = arith.constant 7 : index
    %167 = memref.load %arg3[%c0_189, %c7] : memref<3x8xf32, #tpu.memory_space<smem>>
    %168 = vector.broadcast %167 : f32 to vector<8x128xf32>
    %169 = arith.mulf %166, %168 : vector<8x128xf32>
    %c1_190 = arith.constant 1 : index
    %c7_191 = arith.constant 7 : index
    %170 = memref.load %arg3[%c1_190, %c7_191] : memref<3x8xf32, #tpu.memory_space<smem>>
    %171 = vector.broadcast %170 : f32 to vector<8x128xf32>
    %172 = arith.addf %169, %171 : vector<8x128xf32>
    %c2_192 = arith.constant 2 : index
    %c7_193 = arith.constant 7 : index
    %173 = memref.load %arg3[%c2_192, %c7_193] : memref<3x8xf32, #tpu.memory_space<smem>>
    %174 = vector.broadcast %173 : f32 to vector<8x128xf32>
    %175 = arith.maximumf %172, %174 : vector<8x128xf32>
    %c0_194 = arith.constant 0 : index
    %c7_195 = arith.constant 7 : index
    %c0_196 = arith.constant 0 : index
    %c0_197 = arith.constant 0 : index
    %176 = vector.load %arg6[%c0_194, %c7_195, %c0_196, %c0_197] : memref<1x8x8x128xf32, #tpu.memory_space<vmem>>, vector<1x1x8x128xf32>
    %177 = vector.shape_cast %176 : vector<1x1x8x128xf32> to vector<8x128xf32>
    %178 = vector.shape_cast %175 : vector<8x128xf32> to vector<1x1x8x128xf32>
    tpu.vector_store %arg6[%c0_194, %c7_195, %c0_196, %c0_197], %178 {strides = array<i32>} : memref<1x8x8x128xf32, #tpu.memory_space<vmem>>, vector<1x1x8x128xf32>,
    return
  }
  func.func @transform_0(%arg0: i32, %arg1: i32) -> (i32, i32) {
    %c0_i32 = arith.constant 0 : i32
    %c0_i32_0 = arith.constant 0 : i32
    %c0_i32_1 = arith.constant 0 : i32
    return %c0_i32, %c0_i32_0 : i32, i32
  }
  func.func @transform_1(%arg0: i32, %arg1: i32) -> (i32, i32) {
    %c0_i32 = arith.constant 0 : i32
    %c0_i32_0 = arith.constant 0 : i32
    %c0_i32_1 = arith.constant 0 : i32
    return %c0_i32, %c0_i32_0 : i32, i32
  }
  func.func @transform_2(%arg0: i32, %arg1: i32) -> (i32, i32, i32, i32, i32) {
    %c0_i32 = arith.constant 0 : i32
    %c0_i32_0 = arith.constant 0 : i32
    %c0_i32_1 = arith.constant 0 : i32
    %c0_i32_2 = arith.constant 0 : i32
    return %arg0, %c0_i32, %arg1, %c0_i32_0, %c0_i32_1 : i32, i32, i32, i32, i32
  }
  func.func @transform_3(%arg0: i32, %arg1: i32) -> (i32, i32, i32, i32) {
    %c0_i32 = arith.constant 0 : i32
    %c0_i32_0 = arith.constant 0 : i32
    %c0_i32_1 = arith.constant 0 : i32
    return %arg0, %c0_i32, %arg1, %c0_i32_0 : i32, i32, i32, i32
  }
  func.func @transform_4(%arg0: i32, %arg1: i32) -> (i32, i32, i32, i32) {
    %c0_i32 = arith.constant 0 : i32
    %c0_i32_0 = arith.constant 0 : i32
    %c0_i32_1 = arith.constant 0 : i32
    return %arg0, %c0_i32, %arg1, %c0_i32_0 : i32, i32, i32, i32
  }
}

</mosaic_0001>

<bundles_post_ra>
// kernel: learn_to_resize_kaggle.2
= control target key start
LH: loop header
LB: loop body
LE: loop exit
PB: predicated region body
PF: predicated region fallthrough
CT: control target
= control target key end

     0   :  { %s1257_s12 = smov 0   ;;  %s1259_s13 = smov 0   ;;  %s1730_s0 = inlined_call_operand.vmem [shape: f32[64,100], index: 0, kind: input, shape index: {}]   ;;  %s1731_s1 = inlined_call_operand.vmem [shape: f32[2,4,1,2,128], index: 1, kind: input, shape index: {}]   ;;  %s1732_s2 = inlined_call_operand.vmem [shape: f32[2,4,8,128], index: 2, kind: input, shape index: {}]   ;;  %s1733_s3 = inlined_call_operand.vmem [shape: f32[2,16,128], index: 3, kind: output, shape index: {}]  }
   0x1   :  { %s1261_s14 = smov 0  }
   0x2 LB: > { %s25_s15 = sadd.s32 1, %s1228_s13  ;;  %p1131_p0 = scmp.ge.s32.totalorder %s1232_s14, 1  ;;  %s1232_s14 = sphi %s1261_s14, %s13_s14   ;;  %s1228_s13 = sphi %s1259_s13, %s1735_s13   ;;  %s1224_s12 = sphi %s1257_s12, %s1734_s12  }
   0x3   : > { %p27_p1 = scmp.ge.s32.totalorder %s25_s15, 2  ;;  %p169_p2 = scmp.lt.s32.totalorder %s1232_s14, 3 }
   0x5   : > { %s1737_s15 = smov (%p27_p1, %s25_s15), 0  ;;  %p170_p3 = pnand %p1131_p0, %p169_p2 }
   0x6   : > { %p204_p4 = scmp.lt.s32.totalorder (!%p170_p3), %s1224_s12, 1  ;;  %s1234_s21 = smov (!%p170_p3), 126  }
   0x7   : > { %173 = sbr.rel (%p170_p3) target bundleno = 435 (0x1b3), region = 32  ;;  %s1235_s25 = smov (!%p170_p3), 127  }
   0xc   : > { %s1739_s12 = smov (!%p204_p4, %s1224_s12), 1  ;;  %vm347_vm0 = vcmask 1043456   ;;  %v305_v48 = vld [vmem:[%s1730_s0 + $0x20] sm:$0xff]  ;;  %vm322_vm1 = vcmask 818176  }
   0xd   : > { %s1155_s16 = sshll.u32 %s1739_s12, 5  ;;  %s1154_s20 = sshll.u32 %s1739_s12, 3  ;;  %v336_v55 = vsel %vm322_vm1, %v305_v48, 0 }
   0xe   : > { %s219_s19 = scalar_lea.vmem %s1732_s2, %s1155_s16  ;;  %s1287_s24 = scalar_lea.vmem %s1731_s1, %s1154_s20 }
   0xf   : > { %v1151_v0 = vld [vmem:[%s219_s19 + $0x10] sm:$0xff]  ;;  %v1282_v1 = vld [vmem:[%s219_s19 + $0x18] sm:$0xff]  ;;  %v1150_v2 = vld [vmem:[%s1287_s24 + $0x4] sm:$0x3] }
  0x10   : > { %297 = vrot.lane.b32.xlu0 %v1151_v0, %s1234_s21  ;;  %281 = vrot.lane.b32.xlu2 %v1282_v1, %s1235_s25  ;;  %v1147_v3 = vld [vmem:[%s219_s19 + $0x8] sm:$0xff]  ;;  %v286_v4 = vld [vmem:[%s219_s19] sm:$0xff]  ;;  %240 = vst [vmem:[#allocation2 + $0xc] sm:$0xff] %v1151_v0  ;;  %v1364_v58 = vand.u32 4294901760, %v1282_v1  ;;  %s1156_s19 = sshll.u32 %s1739_s12, 4 }
  0x11   : > { %295 = vrot.lane.b32.xlu1 %v1150_v2, %s1234_s21  ;;  %246 = vst [vmem:[#allocation2 + $0x16] sm:$0xff] %v1147_v3  ;;  %v285_v5 = vld [vmem:[%s1287_s24] sm:$0x3]  ;;  %v1148_v6 = vld [vmem:[%s1287_s24 + $0x6] sm:$0x3]  ;;  %s1648_s22 = scalar_lea.vmem %s1733_s3, %s1156_s19 }
  0x12   : > { %234 = vst [vmem:[#allocation2 + $0x2] sm:$0xff] %v286_v4  ;;  %v1146_v7 = vld [vmem:[%s1287_s24 + $0x2] sm:$0x3]  ;;  %v253_v8 = vld [vmem:[%s1287_s24] sm:$0x3] }
  0x13   : > { %v1144_v9 = vld [vmem:[%s1287_s24 + $0x4] sm:$0x3]  ;;  %v1142_v15 = vld [vmem:[%s1287_s24 + $0x6] sm:$0x3]  ;;  %v1140_v17 = vld [vmem:[%s1287_s24 + $0x2] sm:$0x3] }
  0x14   : > { %251 = vst [vmem:[#allocation2 + $0x1e] sm:$0x3] %v1142_v15  ;;  %v1138_v18 = vld [vmem:[%s1287_s24 + $0x4] sm:$0x3]  ;;  %v231_v19 = vld [vmem:[%s1287_s24] sm:$0x3] }
  0x15   : > { %245 = vst [vmem:[#allocation2 + $0x14] sm:$0x3] %v1140_v17 }
  0x16   : > { %239 = vst [vmem:[#allocation2 + $0xa] sm:$0x3] %v1138_v18 }
  0x17   : > { %233 = vst [vmem:[#allocation2] sm:$0x3] %v231_v19 }
  0x18   : > { %289 = vrot.lane.b32.xlu0 %v286_v4, %s1234_s21  ;;  %273 = vrot.lane.b32.xlu2 %v1147_v3, %s1235_s25 }
  0x19   : > { %287 = vrot.lane.b32.xlu1 %v285_v5, %s1234_s21 }
  0x1b   : > { %v312_v59 = vld [vmem:[#allocation2 + $0x18] sm:$0xff] }
  0x1c   : > { %v311_v63 = vld [vmem:[#allocation2 + $0x10] sm:$0xff]  ;;  %v1372_v3 = vand.u32 4294901760, %v312_v59 }
  0x1e   : > { %v1399_v17 = vsub.f32 %v312_v59, %v1372_v3 }
  0x20   : > { %279 = vrot.lane.b32.xlu0 %v1148_v6, %s1235_s25  ;;  %271 = vrot.lane.b32.xlu2 %v1146_v7, %s1235_s25  ;;  %v310_v7 = vld [vmem:[#allocation2 + $0x8] sm:$0xff] }
  0x21   : > { %265 = vrot.lane.b32.xlu1 %v1151_v0, %s1235_s25  ;;  %v1370_v0 = vand.u32 4294901760, %v336_v55 }
  0x23   : > { %v1394_v15 = vsub.f32 %v336_v55, %v1370_v0 }
  0x28   : > { %257 = vrot.lane.b32.xlu0 %v286_v4, %s1235_s25  ;;  %255 = vrot.lane.b32.xlu2 %v253_v8, %s1235_s25  ;;  %v1381_v8 = vsub.f32 %v1282_v1, %v1364_v58 }
  0x29   : > { %263 = vrot.lane.b32.xlu1 %v1144_v9, %s1235_s25  ;;  %v306_v9 = vld [vmem:[%s1730_s0 + $0x28] sm:$0xff] }
  0x2a   : > { %v339_v18 = vsel %vm322_vm1, %v306_v9, 0 }
  0x6a   : > { %v282_v10 = vpop.permute.xlu2 %281 }
  0x6b   : > { %v1308_v27 = vand.u32 4294901760, %v282_v10 }
  0x6d   : > { %v1316_v35 = vsub.f32 %v282_v10, %v1308_v27 }
  0x6f   : > { %v468_v40 = vand.u32 4294901760, %v1316_v35 }
  0x71   : > { %v469_v51 = vsub.f32 %v1316_v35, %v468_v40 }
  0x72   : > { %v274_v11 = vpop.permute.xlu2 %273 }
  0x73   : > { %276 = vst [vmem:[#allocation2 + $0x3e] sm:$0xff] %v274_v11  ;;  %v470_v60 = vand.u32 4294901760, %v469_v51  ;;  %v1386_v11 = vand.u32 4294901760, %v311_v63  ;;  %v307_v51 = vld [vmem:[%s1730_s0 + $0x30] sm:$0xff] }
  0x7a   : > { %v272_v12 = vpop.permute.xlu2 %271 }
  0x7b   : > { %275 = vst [vmem:[#allocation2 + $0x3c] sm:$0x3] %v272_v12 }
  0x82   : > { %v298_v13 = vpop.permute.xlu0 %297  ;;  %v256_v14 = vpop.permute.xlu2 %255 }
  0x83   : > { %300 = vst [vmem:[#allocation2 + $0x5c] sm:$0xff] %v298_v13  ;;  %v296_v16 = vpop.permute.xlu1 %295 }
  0x84   : > { %259 = vst [vmem:[#allocation2 + $0x28] sm:$0x3] %v256_v14  ;;  %v309_v14 = vld [vmem:[#allocation2] sm:$0xff] }
  0x85   : > { %299 = vst [vmem:[#allocation2 + $0x5a] sm:$0x3] %v296_v16  ;;  %v1396_v16 = vand.u32 4294901760, %v310_v7 }
  0x8a   : > { %v290_v20 = vpop.permute.xlu0 %289  ;;  %v321_v21 = vld [vmem:[#allocation2 + $0x60] sm:$0xf] }
  0x8b   : > { %292 = vst [vmem:[#allocation2 + $0x52] sm:$0xff] %v290_v20  ;;  %v349_v22 = vsel %vm347_vm0, %v321_v21, 0  ;;  %v288_v23 = vpop.permute.xlu1 %287  ;;  %v498_v20 = vand.u32 4294901760, %v1381_v8 }
  0x8c   : > { %v1300_v24 = vand.u32 4294901760, %v349_v22  ;;  %291 = vst [vmem:[#allocation2 + $0x50] sm:$0x3] %v288_v23  ;;  %v1412_v23 = vsub.f32 %v311_v63, %v1386_v11 }
  0x8e   : > { %355 = vmatpush.msra.mxu0 %v1300_v24  ;;  %1157 = vmatpush.msra.mxu2 %v1300_v24  ;;  %v1305_v25 = vsub.f32 %v349_v22, %v1300_v24  ;;  %v1409_v22 = vand.u32 4294901760, %v309_v14 }
  0x90   : > { %v450_v26 = vand.u32 4294901760, %v1305_v25 }
  0x92   : > { %v280_v28 = vpop.permute.xlu0 %279  ;;  %v320_v29 = vld [vmem:[#allocation2 + $0x58] sm:$0xff]  ;;  %v451_v30 = vsub.f32 %v1305_v25, %v450_v26 }
  0x93   : > { %283 = vst [vmem:[#allocation2 + $0x46] sm:$0x3] %v280_v28  ;;  %v1313_v31 = vand.u32 4294901760, %v320_v29  ;;  %v266_v32 = vpop.permute.xlu1 %265  ;;  %v319_v34 = vld [vmem:[#allocation2 + $0x50] sm:$0xff] }
  0x94   : > { %v452_v33 = vand.u32 4294901760, %v451_v30  ;;  %268 = vst [vmem:[#allocation2 + $0x34] sm:$0xff] %v266_v32  ;;  %v1320_v36 = vand.u32 4294901760, %v319_v34  ;;  %v1418_v30 = vand.u32 4294901760, %v339_v18  ;;  %v504_v32 = vand.u32 4294901760, %v1399_v17 }
  0x95   : > { %357 = vmatpush.msra.mxu0 %v1313_v31  ;;  %1158 = vmatpush.msra.mxu2 %v1313_v31  ;;  %v1323_v37 = vsub.f32 %v320_v29, %v1313_v31  ;;  %v414_v29 = vand.u32 4294901760, %v1394_v15 }
  0x96   : > { %453 = vmatpush.msra.mxu1 %v452_v33  ;;  %1170 = vmatpush.msra.mxu3 %v452_v33  ;;  %v1329_v39 = vsub.f32 %v319_v34, %v1320_v36  ;;  %v1422_v33 = vsub.f32 %v310_v7, %v1396_v16 }
  0x97   : > { %359 = vmatpush.msra.mxu0 %v1320_v36  ;;  %1159 = vmatpush.msra.mxu2 %v1320_v36  ;;  %v456_v38 = vand.u32 4294901760, %v1323_v37 }
  0x98   : > { %v462_v42 = vand.u32 4294901760, %v1329_v39  ;;  %v516_v55 = vand.u32 4294901760, %v1422_v33 }
  0x99   : > { %361 = vmatpush.msra.mxu0 %v1308_v27  ;;  %1160 = vmatpush.msra.mxu2 %v1308_v27  ;;  %v457_v41 = vsub.f32 %v1323_v37, %v456_v38 }
  0x9a   : > { %v258_v43 = vpop.permute.xlu0 %257  ;;  %v317_v44 = vld [vmem:[#allocation2 + $0x40] sm:$0xff]  ;;  %v463_v47 = vsub.f32 %v1329_v39, %v462_v42 }
  0x9b   : > { %260 = vst [vmem:[#allocation2 + $0x2a] sm:$0xff] %v258_v43  ;;  %v1338_v45 = vand.u32 4294901760, %v317_v44  ;;  %v458_v46 = vand.u32 4294901760, %v457_v41  ;;  %v264_v49 = vpop.permute.xlu1 %263  ;;  %v316_v50 = vld [vmem:[#allocation2 + $0x38] sm:$0xff]  ;;  %v499_v41 = vsub.f32 %v1381_v8, %v498_v20 }
  0x9c   : > { %267 = vst [vmem:[#allocation2 + $0x32] sm:$0x3] %v264_v49  ;;  %v1351_v52 = vand.u32 4294901760, %v316_v50  ;;  %v464_v54 = vand.u32 4294901760, %v463_v47  ;;  %v301_v47 = vld [vmem:[%s1730_s0] sm:$0xff]  ;;  %v415_v49 = vsub.f32 %v1394_v15, %v414_v29 }
  0x9d   : > { %363 = vmatpush.msra.mxu0 %v1338_v45  ;;  %1161 = vmatpush.msra.mxu2 %v1338_v45  ;;  %v1354_v53 = vsub.f32 %v317_v44, %v1338_v45  ;;  %v510_v44 = vand.u32 4294901760, %v1412_v23  ;;  %v500_v59 = vand.u32 4294901760, %v499_v41  ;;  %v302_v41 = vld [vmem:[%s1730_s0 + $0x8] sm:$0xff] }
  0x9e   : > { %459 = vmatpush.msra.mxu1 %v458_v46  ;;  %1171 = vmatpush.msra.mxu3 %v458_v46  ;;  %v1361_v57 = vsub.f32 %v316_v50, %v1351_v52  ;;  %v1437_v46 = vsub.f32 %v309_v14, %v1409_v22  ;;  %v1448_v50 = vsub.f32 %v339_v18, %v1418_v30 }
  0x9f   : > { %365 = vmatpush.msra.mxu0 %v1351_v52  ;;  %1162 = vmatpush.msra.mxu2 %v1351_v52  ;;  %v474_v56 = vand.u32 4294901760, %v1354_v53  ;;  %v511_v63 = vsub.f32 %v1412_v23, %v510_v44 }
  0xa0   : > { %465 = vmatpush.msra.mxu1 %v464_v54  ;;  %1172 = vmatpush.msra.mxu3 %v464_v54  ;;  %v480_v62 = vand.u32 4294901760, %v1361_v57  ;;  %v505_v54 = vsub.f32 %v1399_v17, %v504_v32  ;;  %v422_v7 = vand.u32 4294901760, %v1448_v50 }
  0xa1   : > { %v475_v61 = vsub.f32 %v1354_v53, %v474_v56  ;;  %v512_v18 = vand.u32 4294901760, %v511_v63 }
  0xa2   : > { %471 = vmatpush.msra.mxu1 %v470_v60  ;;  %1173 = vmatpush.msra.mxu3 %v470_v60  ;;  %v314_v2 = vld [vmem:[#allocation2 + $0x28] sm:$0xff]  ;;  %v481_v6 = vsub.f32 %v1361_v57, %v480_v62  ;;  %v324_v60 = vsel %vm322_vm1, %v301_v47, 0  ;;  %v506_v9 = vand.u32 4294901760, %v505_v54  ;;  %v308_v47 = vld [vmem:[%s1730_s0 + $0x38] sm:$0xff] }
  0xa3   : > { %v476_v4 = vand.u32 4294901760, %v475_v61  ;;  %v1374_v5 = vand.u32 4294901760, %v314_v2  ;;  %v315_v10 = vld [vmem:[#allocation2 + $0x30] sm:$0xff]  ;;  %v1471_v14 = vand.u32 4294901760, %v324_v60 }
  0xa4   : > { %v1388_v12 = vand.u32 4294901760, %v315_v10  ;;  %v482_v1 = vand.u32 4294901760, %v481_v6  ;;  %v416_v6 = vand.u32 4294901760, %v415_v49 }
  0xa5   : > { %477 = vmatpush.msra.mxu1 %v476_v4  ;;  %1174 = vmatpush.msra.mxu3 %v476_v4  ;;  %v1391_v13 = vsub.f32 %v314_v2, %v1374_v5  ;;  %v522_v2 = vand.u32 4294901760, %v1437_v46  ;;  %v342_v4 = vsel %vm322_vm1, %v307_v51, 0  ;;  %v1493_v49 = vsub.f32 %v324_v60, %v1471_v14 }
  0xa6   : > { %367 = vmatpush.msra.mxu0 %v1388_v12  ;;  %1163 = vmatpush.msra.mxu2 %v1388_v12  ;;  %v1405_v19 = vsub.f32 %v315_v10, %v1388_v12  ;;  %v517_v10 = vsub.f32 %v1422_v33, %v516_v55  ;;  %v327_v51 = vsel %vm322_vm1, %v302_v41, 0 }
  0xa7   : > { %483 = vmatpush.msra.mxu1 %v482_v1  ;;  %1175 = vmatpush.msra.mxu3 %v482_v1  ;;  %v492_v21 = vand.u32 4294901760, %v1391_v13  ;;  %v1475_v1 = vand.u32 4294901760, %v342_v4  ;;  %v1507_v60 = vand.u32 4294901760, %v327_v51 }
  0xa8   : > { %369 = vmatpush.msra.mxu0 %v1374_v5  ;;  %1164 = vmatpush.msra.mxu2 %v1374_v5  ;;  %v486_v28 = vand.u32 4294901760, %v1405_v19 }
  0xa9   : > { %v493_v43 = vsub.f32 %v1391_v13, %v492_v21 }
  0xaa   : > { %371 = vmatpush.msra.mxu0 %v1364_v58  ;;  %1165 = vmatpush.msra.mxu2 %v1364_v58  ;;  %v487_v34 = vsub.f32 %v1405_v19, %v486_v28 }
  0xab   : > { %v494_v61 = vand.u32 4294901760, %v493_v43  ;;  %v423_v43 = vsub.f32 %v1448_v50, %v422_v7 }
  0xac   : > { %373 = vmatpush.msra.mxu0 %v1372_v3  ;;  %1166 = vmatpush.msra.mxu2 %v1372_v3  ;;  %v488_v48 = vand.u32 4294901760, %v487_v34  ;;  %v523_v34 = vsub.f32 %v1437_v46, %v522_v2 }
  0xae   : > { %375 = vmatpush.msra.mxu0 %v1386_v11  ;;  %1167 = vmatpush.msra.mxu2 %v1386_v11  ;;  %v524_v54 = vand.u32 4294901760, %v523_v34 }
  0xaf   : > { %489 = vmatpush.msra.mxu1 %v488_v48  ;;  %1176 = vmatpush.msra.mxu3 %v488_v48  ;;  %v518_v48 = vand.u32 4294901760, %v517_v10 }
  0xb0   : > { %377 = vmatpush.msra.mxu0 %v1396_v16  ;;  %1168 = vmatpush.msra.mxu2 %v1396_v16 }
  0xb1   : > { %495 = vmatpush.msra.mxu1 %v494_v61  ;;  %1177 = vmatpush.msra.mxu3 %v494_v61 }
  0xb2   : > { %379 = vmatpush.msra.mxu0 %v1409_v22  ;;  %1169 = vmatpush.msra.mxu2 %v1409_v22 }
  0xb3   : > { %501 = vmatpush.msra.mxu1 %v500_v59  ;;  %1178 = vmatpush.msra.mxu3 %v500_v59  ;;  %v424_v59 = vand.u32 4294901760, %v423_v43 }
  0xb4   : > { %417 = vmatmul.f32.vlgmr.msra.gmra.mxu2 %v416_v6  ;;  %726 = vmatpush.msrb.mxu0 %v450_v26  ;;  %v1498_v26 = vsub.f32 %v342_v4, %v1475_v1 }
  0xb5   : > { %564 = vmatpush.msrb.mxu2 %v1305_v25  ;;  %507 = vmatpush.msra.mxu1 %v506_v9  ;;  %v345_v25 = vsel %vm322_vm1, %v308_v47, 0 }
  0xb6   : > { %1179 = vmatpush.msra.mxu3 %v506_v9  ;;  %730 = vmatpush.msrb.mxu0 %v456_v38  ;;  %v382_v38 = vand.u32 4294901760, %v1493_v49  ;;  %v1512_v61 = vand.u32 4294901760, %v345_v25 }
  0xb7   : > { %567 = vmatpush.msrb.mxu2 %v1323_v37  ;;  %513 = vmatpush.msra.mxu1 %v512_v18  ;;  %v430_v37 = vand.u32 4294901760, %v1498_v26 }
  0xb8   : > { %1180 = vmatpush.msra.mxu3 %v512_v18  ;;  %734 = vmatpush.msrb.mxu0 %v462_v42  ;;  %v1524_v42 = vsub.f32 %v327_v51, %v1507_v60  ;;  %v1533_v63 = vsub.f32 %v345_v25, %v1512_v61 }
  0xb9   : > { %570 = vmatpush.msrb.mxu2 %v1329_v39  ;;  %519 = vmatpush.msra.mxu1 %v518_v48  ;;  %v303_v39 = vld [vmem:[%s1730_s0 + $0x10] sm:$0xff] }
  0xba   : > { %1181 = vmatpush.msra.mxu3 %v518_v48  ;;  %738 = vmatpush.msrb.mxu0 %v468_v40  ;;  %v383_v40 = vsub.f32 %v1493_v49, %v382_v38  ;;  %v330_v4 = vsel %vm322_vm1, %v303_v39, 0  ;;  %v438_v9 = vand.u32 4294901760, %v1533_v63 }
  0xbb   : > { %573 = vmatpush.msrb.mxu2 %v1316_v35  ;;  %525 = vmatpush.msra.mxu1 %v524_v54  ;;  %v431_v35 = vsub.f32 %v1498_v26, %v430_v37  ;;  %v1544_v6 = vand.u32 4294901760, %v330_v4 }
  0xbc   : > { %1182 = vmatpush.msra.mxu3 %v524_v54  ;;  %425 = vmatmul.f32.gmra.mxu2 %v424_v59 }
  0xbd   : > { %543 = vmatmul.f32.vlgmr.msra.gmra.mxu3 %v1370_v0  ;;  %576 = vmatpush.msrb.mxu2 %v1354_v53  ;;  %v384_v53 = vand.u32 4294901760, %v383_v40 }
  0xbe   : > { %646 = vmatpush.msrb.mxu3 %v1300_v24  ;;  %742 = vmatpush.msrb.mxu0 %v474_v56  ;;  %v390_v56 = vand.u32 4294901760, %v1524_v42 }
  0xbf   : > { %812 = vmatpush.msrb.mxu1 %v1300_v24  ;;  %579 = vmatpush.msrb.mxu2 %v1361_v57  ;;  %v432_v24 = vand.u32 4294901760, %v431_v35 }
  0xc0   : > { %648 = vmatpush.msrb.mxu3 %v1313_v31  ;;  %746 = vmatpush.msrb.mxu0 %v480_v62  ;;  %v391_v57 = vsub.f32 %v1524_v42, %v390_v56  ;;  %v439_v62 = vsub.f32 %v1533_v63, %v438_v9 }
  0xc1   : > { %814 = vmatpush.msrb.mxu1 %v1313_v31  ;;  %582 = vmatpush.msrb.mxu2 %v1405_v19  ;;  %v304_v31 = vld [vmem:[%s1730_s0 + $0x18] sm:$0xff] }
  0xc2   : > { %650 = vmatpush.msrb.mxu3 %v1320_v36  ;;  %750 = vmatpush.msrb.mxu0 %v486_v28  ;;  %v333_v19 = vsel %vm322_vm1, %v304_v31, 0  ;;  %v440_v28 = vand.u32 4294901760, %v439_v62 }
  0xc3   : > { %816 = vmatpush.msrb.mxu1 %v1320_v36  ;;  %585 = vmatpush.msrb.mxu2 %v1391_v13  ;;  %v397_v36 = vsub.f32 %v330_v4, %v1544_v6 }
  0xc4   : > { %652 = vmatpush.msrb.mxu3 %v1308_v27  ;;  %754 = vmatpush.msrb.mxu0 %v492_v21  ;;  %v404_v21 = vand.u32 4294901760, %v333_v19 }
  0xc5   : > { %818 = vmatpush.msrb.mxu1 %v1308_v27  ;;  %385 = vmatmul.f32.vlgmr.msra.gmra.mxu0 %v384_v53  ;;  %v392_v27 = vand.u32 4294901760, %v391_v57  ;;  %v398_v13 = vand.u32 4294901760, %v397_v36 }
  0xc6   : > { %433 = vmatmul.f32.gmra.mxu2 %v432_v24  ;;  %527 = vmatmul.f32.vlgmr.msra.gmra.mxu1 %v1471_v14 }
  0xc7   : > { %547 = vmatmul.f32.gmra.mxu3 %v1418_v30  ;;  %820 = vmatpush.msrb.mxu1 %v1338_v45 }
  0xc8   : > { %654 = vmatpush.msrb.mxu3 %v1338_v45  ;;  %588 = vmatpush.msrb.mxu2 %v1381_v8  ;;  %v399_v45 = vsub.f32 %v397_v36, %v398_v13  ;;  %v405_v8 = vsub.f32 %v333_v19, %v404_v21 }
  0xc9   : > { %822 = vmatpush.msrb.mxu1 %v1351_v52  ;;  %758 = vmatpush.msrb.mxu0 %v498_v20 }
  0xca   : > { %656 = vmatpush.msrb.mxu3 %v1351_v52  ;;  %591 = vmatpush.msrb.mxu2 %v1399_v17  ;;  %v400_v52 = vand.u32 4294901760, %v399_v45  ;;  %v1236_v17 = vmov 0.0  }
  0xcb   : > { %824 = vmatpush.msrb.mxu1 %v1388_v12  ;;  %762 = vmatpush.msrb.mxu0 %v504_v32  ;;  %229 = vst [vmem:[%s1648_s22] sm:$0xff] %v1236_v17 }
  0xcc   : > { %658 = vmatpush.msrb.mxu3 %v1388_v12  ;;  %594 = vmatpush.msrb.mxu2 %v1412_v23  ;;  %v406_v12 = vand.u32 4294901760, %v405_v8  ;;  %230 = vst [vmem:[%s1648_s22 + $0x8] sm:$0xff] %v1236_v17 }
  0xcd   : > { %826 = vmatpush.msrb.mxu1 %v1374_v5  ;;  %393 = vmatmul.f32.gmra.mxu0 %v392_v27 }
  0xce   : > { %660 = vmatpush.msrb.mxu3 %v1374_v5  ;;  %441 = vmatmul.f32.gmra.mxu2 %v440_v28  ;;  %v407_v5 = vsub.f32 %v405_v8, %v406_v12 }
  0xcf   : > { %531 = vmatmul.f32.gmra.mxu1 %v1507_v60  ;;  %551 = vmatmul.f32.gmra.mxu3 %v1475_v1 }
  0xd0   : > { %662 = vmatpush.msrb.mxu3 %v1364_v58  ;;  %597 = vmatpush.msrb.mxu2 %v1422_v33 }
  0xd1   : > { %828 = vmatpush.msrb.mxu1 %v1364_v58  ;;  %766 = vmatpush.msrb.mxu0 %v510_v44  ;;  %v408_v58 = vand.u32 4294901760, %v407_v5 }
  0xd2   : > { %600 = vmatpush.msrb.mxu2 %v1437_v46  ;;  %664 = vmatpush.msrb.mxu3 %v1372_v3  ;;  %v881_v28 = vld [vmem:[%s1648_s22] sm:$0x1] }
  0xd3   : > { %830 = vmatpush.msrb.mxu1 %v1372_v3  ;;  %770 = vmatpush.msrb.mxu0 %v516_v55 }
  0xd4   : > { %666 = vmatpush.msrb.mxu3 %v1386_v11 }
  0xd5   : > { %401 = vmatmul.f32.gmra.mxu0 %v400_v52  ;;  %832 = vmatpush.msrb.mxu1 %v1386_v11 }
  0xd6   : > { %603 = vmatmul.f32.vlgmr.msrb.gmra.mxu2 %v1493_v49  ;;  %668 = vmatpush.msrb.mxu3 %v1396_v16 }
  0xd7   : > { %535 = vmatmul.f32.gmra.mxu1 %v1544_v6  ;;  %555 = vmatmul.f32.gmra.mxu3 %v1512_v61 }
  0xd8   : > { %670 = vmatpush.msrb.mxu3 %v1409_v22  ;;  %774 = vmatpush.msrb.mxu0 %v522_v2 }
  0xd9   : > { %834 = vmatpush.msrb.mxu1 %v1396_v16 }
  0xdb   : > { %836 = vmatpush.msrb.mxu1 %v1409_v22 }
  0xdd   : > { %409 = vmatmul.f32.gmra.mxu0 %v408_v58 }
  0xde   : > { %608 = vmatmul.f32.gmra.mxu2 %v1524_v42 }
  0xdf   : > { %539 = vmatmul.f32.gmra.mxu1 %v404_v21  ;;  %674 = vmatmul.f32.vlgmr.msrb.gmra.mxu3 %v382_v38 }
  0xe5   : > { %776 = vmatmul.f32.vlgmr.msrb.gmra.mxu0 %v1471_v14 }
  0xe6   : > { %613 = vmatmul.f32.gmra.mxu2 %v397_v36 }
  0xe7   : > { %680 = vmatmul.f32.gmra.mxu3 %v390_v56  ;;  %838 = vmatmul.f32.vlgmr.msrb.gmra.mxu1 %v1471_v14 }
  0xed   : > { %780 = vmatmul.f32.gmra.mxu0 %v1507_v60 }
  0xee   : > { %618 = vmatmul.f32.gmra.mxu2 %v405_v8 }
  0xef   : > { %686 = vmatmul.f32.gmra.mxu3 %v398_v13  ;;  %842 = vmatmul.f32.gmra.mxu1 %v1507_v60 }
  0xf5   : > { %784 = vmatmul.f32.gmra.mxu0 %v1544_v6 }
  0xf6   : > { %623 = vmatmul.f32.gmra.mxu2 %v1394_v15 }
  0xf7   : > { %692 = vmatmul.f32.gmra.mxu3 %v406_v12  ;;  %846 = vmatmul.f32.gmra.mxu1 %v1544_v6 }
  0xfd   : > { %788 = vmatmul.f32.gmra.mxu0 %v404_v21 }
  0xfe   : > { %628 = vmatmul.f32.gmra.mxu2 %v1448_v50 }
  0xff   : > { %698 = vmatmul.f32.gmra.mxu3 %v414_v29  ;;  %850 = vmatmul.f32.gmra.mxu1 %v404_v21 }
 0x105   : > { %792 = vmatmul.f32.gmra.mxu0 %v1370_v0 }
 0x106   : > { %633 = vmatmul.f32.gmra.mxu2 %v1498_v26 }
 0x107   : > { %704 = vmatmul.f32.gmra.mxu3 %v422_v7  ;;  %854 = vmatmul.f32.gmra.mxu1 %v1370_v0  ;;  %v872_v7 = vlaneseq }
 0x109   : > { %v1662_v41 = vand.u32 127, %v872_v7 }
 0x10b   : > { %vm878_vm2 = vcmp.lt.s32.totalorder %v1662_v41, 8 }
 0x10d   : > { %796 = vmatmul.f32.gmra.mxu0 %v1418_v30 }
 0x10e   : > { %638 = vmatmul.f32.gmra.mxu2 %v1533_v63 }
 0x10f   : > { %710 = vmatmul.f32.gmra.mxu3 %v430_v37  ;;  %858 = vmatmul.f32.gmra.mxu1 %v1418_v30 }
 0x115   : > { %800 = vmatmul.f32.gmra.mxu0 %v1475_v1 }
 0x117   : > { %716 = vmatmul.f32.gmra.mxu3 %v438_v9  ;;  %862 = vmatmul.f32.gmra.mxu1 %v1475_v1 }
 0x11d   : > { %804 = vmatmul.f32.gmra.mxu0 %v1512_v61 }
 0x11f   : > { %866 = vmatmul.f32.gmra.mxu1 %v1512_v61 }
 0x137   : > { %v1638_v0 = vpop.f32.mrf.mxu2 }
 0x13f   : > { %v1640_v3 = vpop.f32.mrf.mxu2 }
 0x140   : > { %v1643_v11 = vpop.f32.mrf.mxu3 }
 0x142   : > { %v386_v15 = vpop.f32.mrf.mxu0 }
 0x143   : > { %v528_v16 = vpop.f32.mrf.mxu1 }
 0x144   : > { %v529_v10 = vadd.f32 %v528_v16, %v386_v15  ;;  %v890_v15 = vld [vmem:[%s1648_s22 + $0x8] sm:$0x1] }
 0x149   : > { %v1652_v20 = vpop.f32.mrf.mxu2 }
 0x14a   : > { %v1654_v22 = vpop.f32.mrf.mxu3  ;;  %v394_v23 = vpop.f32.mrf.mxu0 }
 0x14c   : > { %v532_v29 = vpop.f32.mrf.mxu1 }
 0x14d   : > { %v533_v49 = vadd.f32 %v532_v29, %v394_v23 }
 0x151   : > { %v1656_v30 = vpop.f32.mrf.mxu2 }
 0x152   : > { %v1658_v32 = vpop.f32.mrf.mxu3  ;;  %v402_v33 = vpop.f32.mrf.mxu0 }
 0x154   : > { %v536_v44 = vpop.f32.mrf.mxu1 }
 0x155   : > { %v537_v53 = vadd.f32 %v536_v44, %v402_v33 }
 0x159   : > { %v604_v46 = vpop.f32.mrf.mxu2 }
 0x15a   : > { %v1660_v50 = vpop.f32.mrf.mxu3  ;;  %v410_v55 = vpop.f32.mrf.mxu0  ;;  %v605_v14 = vadd.f32 %v604_v46, %v529_v10 }
 0x15c   : > { %v540_v2 = vpop.f32.mrf.mxu1 }
 0x15d   : > { %v541_v44 = vadd.f32 %v540_v2, %v410_v55  ;;  %v901_v55 = vld [vmem:[%s1648_s22 + $0x1] sm:$0x1] }
 0x161   : > { %v609_v1 = vpop.f32.mrf.mxu2 }
 0x162   : > { %v675_v18 = vpop.f32.mrf.mxu3  ;;  %v777_v34 = vpop.f32.mrf.mxu0  ;;  %v610_v51 = vadd.f32 %v609_v1, %v533_v49 }
 0x163   : > { %v676_v43 = vadd.f32 %v675_v18, %v605_v14 }
 0x164   : > { %v839_v47 = vpop.f32.mrf.mxu1 }
 0x165   : > { %v778_v48 = vadd.f32 %v777_v34, %v676_v43 }
 0x167   : > { %v840_v26 = vadd.f32 %v839_v47, %v778_v48 }
 0x169   : > { %v880_v54 = vsel %vm878_vm2, %v840_v26, 0.0  ;;  %v614_v25 = vpop.f32.mrf.mxu2 }
 0x16a   : > { %v882_v59 = vrot.slane %v880_v54, 4  ;;  %v891_v38 = vmul.f32 %v880_v54, %v880_v54  ;;  %v681_v60 = vpop.f32.mrf.mxu3  ;;  %v781_v37 = vpop.f32.mrf.mxu0  ;;  %v615_v9 = vadd.f32 %v614_v25, %v537_v53 }
 0x16b   : > { %v682_v61 = vadd.f32 %v681_v60, %v610_v51 }
 0x16c   : > { %v883_v39 = vadd.f32 %v882_v59, %v880_v54  ;;  %v892_v40 = vrot.slane %v891_v38, 4  ;;  %v843_v42 = vpop.f32.mrf.mxu1 }
 0x16d   : > { %v782_v35 = vadd.f32 %v781_v37, %v682_v61  ;;  %v910_v37 = vld [vmem:[%s1648_s22 + $0x9] sm:$0x1] }
 0x16e   : > { %v884_v63 = vrot.slane %v883_v39, 2  ;;  %v893_v4 = vadd.f32 %v892_v40, %v891_v38 }
 0x16f   : > { %v844_v56 = vadd.f32 %v843_v42, %v782_v35 }
 0x170   : > { %v885_v6 = vadd.f32 %v884_v63, %v883_v39  ;;  %v894_v24 = vrot.slane %v893_v4, 2  ;;  %v545_v63 = vadd.f32 %v1643_v11, %v1638_v0  ;;  %v921_v0 = vld [vmem:[%s1648_s22 + $0x2] sm:$0x1] }
 0x171   : > { %v900_v31 = vsel %vm878_vm2, %v844_v56, 0.0  ;;  %v619_v57 = vpop.f32.mrf.mxu2 }
 0x172   : > { %v886_v36 = vrot.slane %v885_v6, 1  ;;  %v895_v62 = vadd.f32 %v894_v24, %v893_v4  ;;  %v902_v19 = vrot.slane %v900_v31, 4  ;;  %v911_v27 = vmul.f32 %v900_v31, %v900_v31  ;;  %v687_v13 = vpop.f32.mrf.mxu3  ;;  %v785_v21 = vpop.f32.mrf.mxu0 }
 0x173   : > { %v688_v45 = vadd.f32 %v687_v13, %v615_v9  ;;  %v620_v1 = vadd.f32 %v619_v57, %v541_v44 }
 0x174   : > { %v887_v8 = vadd.f32 %v886_v36, %v885_v6  ;;  %v896_v52 = vrot.slane %v895_v62, 1  ;;  %v903_v12 = vadd.f32 %v902_v19, %v900_v31  ;;  %v912_v5 = vrot.slane %v911_v27, 4  ;;  %v847_v58 = vpop.f32.mrf.mxu1 }
 0x175   : > { %v786_v16 = vadd.f32 %v785_v21, %v688_v45 }
 0x176   : > { %v888_v17 = vadd.f32 %v887_v8, %v881_v28  ;;  %v897_v23 = vadd.f32 %v896_v52, %v895_v62  ;;  %v904_v29 = vrot.slane %v903_v12, 2  ;;  %v913_v33 = vadd.f32 %v912_v5, %v911_v27 }
 0x177   : > { %v848_v46 = vadd.f32 %v847_v58, %v786_v16 }
 0x178   : > { %889 = vst [vmem:[%s1648_s22] sm:$0x1] %v888_v17  ;;  %v898_v7 = vadd.f32 %v897_v23, %v890_v15  ;;  %v905_v10 = vadd.f32 %v904_v29, %v903_v12  ;;  %v914_v14 = vrot.slane %v913_v33, 2  ;;  %v930_v12 = vld [vmem:[%s1648_s22 + $0xa] sm:$0x1]  ;;  %v549_v23 = vadd.f32 %v1654_v22, %v1640_v3 }
 0x179   : > { %v920_v18 = vsel %vm878_vm2, %v848_v46, 0.0  ;;  %v624_v34 = vpop.f32.mrf.mxu2 }
 0x17a   : > { %899 = vst [vmem:[%s1648_s22 + $0x8] sm:$0x1] %v898_v7  ;;  %v906_v43 = vrot.slane %v905_v10, 1  ;;  %v915_v47 = vadd.f32 %v914_v14, %v913_v33  ;;  %v922_v48 = vrot.slane %v920_v18, 4  ;;  %v931_v49 = vmul.f32 %v920_v18, %v920_v18  ;;  %v693_v26 = vpop.f32.mrf.mxu3  ;;  %v789_v51 = vpop.f32.mrf.mxu0 }
 0x17b   : > { %v694_v2 = vadd.f32 %v693_v26, %v620_v1  ;;  %v625_v24 = vadd.f32 %v624_v34, %v545_v63 }
 0x17c   : > { %v907_v54 = vadd.f32 %v906_v43, %v905_v10  ;;  %v916_v25 = vrot.slane %v915_v47, 1  ;;  %v923_v59 = vadd.f32 %v922_v48, %v920_v18  ;;  %v932_v38 = vrot.slane %v931_v49, 4  ;;  %v851_v60 = vpop.f32.mrf.mxu1  ;;  %v941_v48 = vld [vmem:[%s1648_s22 + $0x3] sm:$0x1] }
 0x17d   : > { %v790_v61 = vadd.f32 %v789_v51, %v694_v2 }
 0x17e   : > { %v908_v39 = vadd.f32 %v907_v54, %v901_v55  ;;  %v917_v40 = vadd.f32 %v916_v25, %v915_v47  ;;  %v924_v42 = vrot.slane %v923_v59, 2  ;;  %v933_v35 = vadd.f32 %v932_v38, %v931_v49  ;;  %v950_v54 = vld [vmem:[%s1648_s22 + $0xb] sm:$0x1] }
 0x17f   : > { %v852_v4 = vadd.f32 %v851_v60, %v790_v61  ;;  %v553_v61 = vadd.f32 %v1658_v32, %v1652_v20 }
 0x180   : > { %909 = vst [vmem:[%s1648_s22 + $0x1] sm:$0x1] %v908_v39  ;;  %v918_v53 = vadd.f32 %v917_v40, %v910_v37  ;;  %v925_v56 = vadd.f32 %v924_v42, %v923_v59  ;;  %v934_v6 = vrot.slane %v933_v35, 2 }
 0x181   : > { %v940_v9 = vsel %vm878_vm2, %v852_v4, 0.0  ;;  %v629_v31 = vpop.f32.mrf.mxu2 }
 0x182   : > { %919 = vst [vmem:[%s1648_s22 + $0x9] sm:$0x1] %v918_v53  ;;  %v926_v57 = vrot.slane %v925_v56, 1  ;;  %v935_v36 = vadd.f32 %v934_v6, %v933_v35  ;;  %v942_v62 = vrot.slane %v940_v9, 4  ;;  %v951_v19 = vmul.f32 %v940_v9, %v940_v9  ;;  %v699_v27 = vpop.f32.mrf.mxu3  ;;  %v793_v13 = vpop.f32.mrf.mxu0 }
 0x183   : > { %v700_v11 = vadd.f32 %v699_v27, %v625_v24  ;;  %v630_v7 = vadd.f32 %v629_v31, %v549_v23 }
 0x184   : > { %v927_v21 = vadd.f32 %v926_v57, %v925_v56  ;;  %v936_v28 = vrot.slane %v935_v36, 1  ;;  %v943_v45 = vadd.f32 %v942_v62, %v940_v9  ;;  %v952_v8 = vrot.slane %v951_v19, 4  ;;  %v855_v52 = vpop.f32.mrf.mxu1  ;;  %v961_v57 = vld [vmem:[%s1648_s22 + $0x4] sm:$0x1] }
 0x185   : > { %v794_v5 = vadd.f32 %v793_v13, %v700_v11  ;;  %v970_v13 = vld [vmem:[%s1648_s22 + $0xc] sm:$0x1] }
 0x186   : > { %v928_v58 = vadd.f32 %v927_v21, %v921_v0  ;;  %v937_v15 = vadd.f32 %v936_v28, %v935_v36  ;;  %v944_v16 = vrot.slane %v943_v45, 2  ;;  %v953_v17 = vadd.f32 %v952_v8, %v951_v19 }
 0x187   : > { %v856_v29 = vadd.f32 %v855_v52, %v794_v5  ;;  %v557_v52 = vadd.f32 %v1660_v50, %v1656_v30 }
 0x188   : > { %929 = vst [vmem:[%s1648_s22 + $0x2] sm:$0x1] %v928_v58  ;;  %v938_v33 = vadd.f32 %v937_v15, %v930_v12  ;;  %v945_v44 = vadd.f32 %v944_v16, %v943_v45  ;;  %v954_v46 = vrot.slane %v953_v17, 2 }
 0x189   : > { %v960_v10 = vsel %vm878_vm2, %v856_v29, 0.0  ;;  %v634_v55 = vpop.f32.mrf.mxu2 }
 0x18a   : > { %939 = vst [vmem:[%s1648_s22 + $0xa] sm:$0x1] %v938_v33  ;;  %v946_v14 = vrot.slane %v945_v44, 1  ;;  %v955_v1 = vadd.f32 %v954_v46, %v953_v17  ;;  %v962_v18 = vrot.slane %v960_v10, 4  ;;  %v971_v34 = vmul.f32 %v960_v10, %v960_v10  ;;  %v705_v43 = vpop.f32.mrf.mxu3  ;;  %v797_v47 = vpop.f32.mrf.mxu0 }
 0x18b   : > { %v706_v3 = vadd.f32 %v705_v43, %v630_v7  ;;  %v635_v63 = vadd.f32 %v634_v55, %v553_v61  ;;  %v990_v43 = vld [vmem:[%s1648_s22 + $0xd] sm:$0x1] }
 0x18c   : > { %v947_v22 = vadd.f32 %v946_v14, %v945_v44  ;;  %v956_v49 = vrot.slane %v955_v1, 1  ;;  %v963_v26 = vadd.f32 %v962_v18, %v960_v10  ;;  %v972_v51 = vrot.slane %v971_v34, 4  ;;  %v859_v2 = vpop.f32.mrf.mxu1  ;;  %v981_v10 = vld [vmem:[%s1648_s22 + $0x5] sm:$0x1] }
 0x18d   : > { %v798_v25 = vadd.f32 %v797_v47, %v706_v3 }
 0x18e   : > { %v948_v59 = vadd.f32 %v947_v22, %v941_v48  ;;  %v957_v38 = vadd.f32 %v956_v49, %v955_v1  ;;  %v964_v60 = vrot.slane %v963_v26, 2  ;;  %v973_v37 = vadd.f32 %v972_v51, %v971_v34 }
 0x18f   : > { %v860_v39 = vadd.f32 %v859_v2, %v798_v25 }
 0x190   : > { %949 = vst [vmem:[%s1648_s22 + $0x3] sm:$0x1] %v948_v59  ;;  %v958_v40 = vadd.f32 %v957_v38, %v950_v54  ;;  %v965_v42 = vadd.f32 %v964_v60, %v963_v26  ;;  %v974_v35 = vrot.slane %v973_v37, 2 }
 0x191   : > { %v980_v4 = vsel %vm878_vm2, %v860_v39, 0.0  ;;  %v639_v8 = vpop.f32.mrf.mxu2 }
 0x192   : > { %959 = vst [vmem:[%s1648_s22 + $0xb] sm:$0x1] %v958_v40  ;;  %v966_v53 = vrot.slane %v965_v42, 1  ;;  %v975_v56 = vadd.f32 %v974_v35, %v973_v37  ;;  %v982_v6 = vrot.slane %v980_v4, 4  ;;  %v991_v24 = vmul.f32 %v980_v4, %v980_v4  ;;  %v711_v9 = vpop.f32.mrf.mxu3  ;;  %v801_v31 = vpop.f32.mrf.mxu0  ;;  %v1001_v37 = vld [vmem:[%s1648_s22 + $0x6] sm:$0x1] }
 0x193   : > { %v712_v20 = vadd.f32 %v711_v9, %v635_v63  ;;  %v640_v16 = vadd.f32 %v639_v8, %v557_v52  ;;  %v1010_v35 = vld [vmem:[%s1648_s22 + $0xe] sm:$0x1] }
 0x194   : > { %v967_v32 = vadd.f32 %v966_v53, %v965_v42  ;;  %v976_v36 = vrot.slane %v975_v56, 1  ;;  %v983_v62 = vadd.f32 %v982_v6, %v980_v4  ;;  %v992_v19 = vrot.slane %v991_v24, 4  ;;  %v863_v27 = vpop.f32.mrf.mxu1 }
 0x195   : > { %v802_v0 = vadd.f32 %v801_v31, %v712_v20 }
 0x196   : > { %v968_v11 = vadd.f32 %v967_v32, %v961_v57  ;;  %v977_v21 = vadd.f32 %v976_v36, %v975_v56  ;;  %v984_v28 = vrot.slane %v983_v62, 2  ;;  %v993_v45 = vadd.f32 %v992_v19, %v991_v24  ;;  %v1021_v57 = vld [vmem:[%s1648_s22 + $0x7] sm:$0x1]  ;;  %v1030_v36 = vld [vmem:[%s1648_s22 + $0xf] sm:$0x1] }
 0x197   : > { %v864_v12 = vadd.f32 %v863_v27, %v802_v0 }
 0x198   : > { %969 = vst [vmem:[%s1648_s22 + $0x4] sm:$0x1] %v968_v11  ;;  %v978_v5 = vadd.f32 %v977_v21, %v970_v13  ;;  %v985_v58 = vadd.f32 %v984_v28, %v983_v62  ;;  %v994_v15 = vrot.slane %v993_v45, 2 }
 0x199   : > { %v1000_v17 = vsel %vm878_vm2, %v864_v12, 0.0 }
 0x19a   : > { %979 = vst [vmem:[%s1648_s22 + $0xc] sm:$0x1] %v978_v5  ;;  %v986_v23 = vrot.slane %v985_v58, 1  ;;  %v995_v29 = vadd.f32 %v994_v15, %v993_v45  ;;  %v1002_v33 = vrot.slane %v1000_v17, 4  ;;  %v1011_v44 = vmul.f32 %v1000_v17, %v1000_v17  ;;  %v717_v46 = vpop.f32.mrf.mxu3  ;;  %v805_v7 = vpop.f32.mrf.mxu0 }
 0x19b   : > { %v718_v30 = vadd.f32 %v717_v46, %v640_v16 }
 0x19c   : > { %v987_v50 = vadd.f32 %v986_v23, %v985_v58  ;;  %v996_v14 = vrot.slane %v995_v29, 1  ;;  %v1003_v1 = vadd.f32 %v1002_v33, %v1000_v17  ;;  %v1012_v18 = vrot.slane %v1011_v44, 4  ;;  %v867_v34 = vpop.f32.mrf.mxu1 }
 0x19d   : > { %v806_v47 = vadd.f32 %v805_v7, %v718_v30 }
 0x19e   : > { %v988_v48 = vadd.f32 %v987_v50, %v981_v10  ;;  %v997_v3 = vadd.f32 %v996_v14, %v995_v29  ;;  %v1004_v22 = vrot.slane %v1003_v1, 2  ;;  %v1013_v49 = vadd.f32 %v1012_v18, %v1011_v44 }
 0x19f   : > { %v868_v26 = vadd.f32 %v867_v34, %v806_v47 }
 0x1a0   : > { %989 = vst [vmem:[%s1648_s22 + $0x5] sm:$0x1] %v988_v48  ;;  %v998_v51 = vadd.f32 %v997_v3, %v990_v43  ;;  %v1005_v55 = vadd.f32 %v1004_v22, %v1003_v1  ;;  %v1014_v2 = vrot.slane %v1013_v49, 2 }
 0x1a1   : > { %v1020_v54 = vsel %vm878_vm2, %v868_v26, 0.0 }
 0x1a2   : > { %999 = vst [vmem:[%s1648_s22 + $0xd] sm:$0x1] %v998_v51  ;;  %v1006_v25 = vrot.slane %v1005_v55, 1  ;;  %v1015_v59 = vadd.f32 %v1014_v2, %v1013_v49  ;;  %v1022_v38 = vrot.slane %v1020_v54, 4  ;;  %v1031_v60 = vmul.f32 %v1020_v54, %v1020_v54 }
 0x1a4   : > { %v1007_v61 = vadd.f32 %v1006_v25, %v1005_v55  ;;  %v1016_v39 = vrot.slane %v1015_v59, 1  ;;  %v1023_v40 = vadd.f32 %v1022_v38, %v1020_v54  ;;  %v1032_v42 = vrot.slane %v1031_v60, 4 }
 0x1a6   : > { %v1008_v63 = vadd.f32 %v1007_v61, %v1001_v37  ;;  %v1017_v4 = vadd.f32 %v1016_v39, %v1015_v59  ;;  %v1024_v41 = vrot.slane %v1023_v40, 2  ;;  %v1033_v53 = vadd.f32 %v1032_v42, %v1031_v60 }
 0x1a8   : > { %1009 = vst [vmem:[%s1648_s22 + $0x6] sm:$0x1] %v1008_v63  ;;  %v1018_v56 = vadd.f32 %v1017_v4, %v1010_v35  ;;  %v1025_v6 = vadd.f32 %v1024_v41, %v1023_v40  ;;  %v1034_v24 = vrot.slane %v1033_v53, 2 }
 0x1aa   : > { %1019 = vst [vmem:[%s1648_s22 + $0xe] sm:$0x1] %v1018_v56  ;;  %v1026_v9 = vrot.slane %v1025_v6, 1  ;;  %v1035_v31 = vadd.f32 %v1034_v24, %v1033_v53 }
 0x1ac   : > { %v1027_v20 = vadd.f32 %v1026_v9, %v1025_v6  ;;  %v1036_v32 = vrot.slane %v1035_v31, 1 }
 0x1ae   : > { %v1028_v62 = vadd.f32 %v1027_v20, %v1021_v57  ;;  %v1037_v19 = vadd.f32 %v1036_v32, %v1035_v31 }
 0x1b0   : > { %1029 = vst [vmem:[%s1648_s22 + $0x7] sm:$0x1] %v1028_v62  ;;  %v1038_v27 = vadd.f32 %v1037_v19, %v1030_v36 }
 0x1b2   : > { %1039 = vst [vmem:[%s1648_s22 + $0xf] sm:$0x1] %v1038_v27 }
 0x1b3 PF: > { %s13_s14 = sadd.s32 1, %s1232_s14   ;;  %s1734_s12 = smov %s1228_s13 }
 0x1b4   : > { %p10_p5 = scmp.ge.s32.totalorder %s13_s14, 4   ;;  %s1735_s13 = smov %s1737_s15 }
 0x1b6   :  { %12 = sbr.rel (!%p10_p5) target bundleno = 2 (0x2), region = 75 }

// kernel: learn_to_resize_kaggle.3
= control target key start
LH: loop header
LB: loop body
LE: loop exit
PB: predicated region body
PF: predicated region fallthrough
CT: control target
= control target key end

     0   :  { %9 = vsyncpa [#allocation5], 0  ;;  %s1901_s0 = inlined_call_operand.vmem [shape: f32[64,100], index: 0, kind: input, shape index: {}]   ;;  %s1902_s1 = inlined_call_operand.vmem [shape: f32[3,8], index: 1, kind: input, shape index: {}]   ;;  %s1903_s2 = inlined_call_operand.vmem [shape: f32[2,4,1,2,128], index: 2, kind: input, shape index: {}]   ;;  %s1904_s3 = inlined_call_operand.vmem [shape: f32[2,4,8,128], index: 3, kind: input, shape index: {}]   ;;  %s1905_s4 = inlined_call_operand.hbm [shape: f32[2,8,8,128], index: 4, kind: output, shape index: {}]  }
   0x1   :  { %10 = vsyncpa [#allocation4], 0 }
   0x2   :  { %12 = vsyncpa [#allocation4 + $0x1], 0  ;;  %s1406_s15 = smov 0   ;;  %s1408_s16 = smov 0  }
   0x3   :  { %s1410_s17 = smov 0   ;;  %s1412_s18 = smov 0  }
   0x4   :  { %s1414_s19 = smov 0   ;;  %s1416_s20 = smov 0  }
   0x5 LB: > { %s1117_s21 = sadd.s32 4294967295, %s1374_s20   ;;  %s1118_s22 = sadd.s32 4294967294, %s1374_s20   ;;  %s1374_s20 = sphi %s1416_s20, %s18_s20   ;;  %s1370_s19 = sphi %s1414_s19, %s1912_s19   ;;  %s1366_s18 = sphi %s1412_s18, %s1911_s18   ;;  %s1362_s17 = sphi %s1410_s17, %s1910_s17   ;;  %s1358_s16 = sphi %s1408_s16, %s1909_s16   ;;  %s1354_s15 = sphi %s1406_s15, %s1908_s15  }
   0x6   : > { %s30_s23 = sadd.s32 1, %s1370_s19  ;;  %s137_s24 = sadd.s32 1, %s1362_s17 }
   0x7   : > { %p32_p0 = scmp.ge.s32.totalorder %s30_s23, 2  ;;  %p147_p1 = scmp.ne.s32.totalorder %s1362_s17, %s1358_s16 }
   0x8   : > { %p148_p2 = scmp.eq.s32.totalorder %s1117_s21, 1  ;;  %p153_p3 = scmp.ne.s32.totalorder %s1358_s16, %s1354_s15 }
   0x9   : > { %s1914_s23 = smov (%p32_p0, %s30_s23), 0  ;;  %p154_p5 = scmp.eq.s32.totalorder %s1118_s22, 1 }
   0xa   : > { %p1446_p4 = por %p148_p2, %p147_p1  ;;  %s132_s26 = ssub.s32 %s1370_s19, %s1914_s23 }
   0xb   : > { %p1119_p6 = scmp.ge.s32.totalorder %s1374_s20, 1  ;;  %p135_p7 = scmp.eq.s32.totalorder %s132_s26, 0 }
   0xc   : > { %p1453_p8 = por %p154_p5, %p153_p3  ;;  %p161_p9 = scmp.lt.s32.totalorder %s1374_s20, 3 }
   0xd   : > { %s1459_s28 = scalar_select %p135_p7, %s1362_s17, %s137_s24  }
   0xe   : > { %p162_p10 = pnand %p1119_p6, %p161_p9  ;;  %p1221_p11 = scmp.eq.s32.totalorder %s1117_s21, 0 }
   0xf   : > { %s176_s5 = sshll.u32 %s1902_s1, 4  ;;  %s1376_s6 = smov [#allocation3]   ;;  %s177_s5 = int_to_ptr.vmem [resolvable:$true] %s176_s5 }
  0x10   : > { %p1213_p12 = pneg %p162_p10  ;;  %211 = sbr.rel (%p162_p10) target bundleno = 442 (0x1ba), region = 36 }
  0x12   : > { %p1214_p13 = pnand %p1221_p11, %p1213_p12 }
  0x14   : > { %1216 = dma.vmem_to_smem (!%p1214_p13), %s177_s5, 64, %s1376_s6, [#allocation5]  }
  0x15   : > { %1345 = dma.done.wait (%p1221_p11), [#allocation5], 64  }
  0x16   : > { %1347 = vsyncadd (%p1221_p11), [#allocation5], 4294967232 }
  0x17   : > { %218 = sfence }
  0x18   : > { %p250_p0 = scmp.lt.s32.totalorder %s1366_s18, 1  ;;  %s1377_s22 = smov 126   ;;  %vm382_vm0 = vcmask 1043456   ;;  %v340_v47 = vld [vmem:[%s1901_s0 + $0x20] sm:$0xff]  ;;  %vm357_vm1 = vcmask 818176  }
  0x19   : > { %s1378_s24 = smov 127   ;;  %v371_v55 = vsel %vm357_vm1, %v340_v47, 0  ;;  %s905_s26 = sld [smem:[#allocation3]] }
  0x1a   : > { %s251_s7 = scalar_select %p250_p0, %s1366_s18, 1  ;;  %v1554_v63 = vand.u32 4294901760, %v371_v55 }
  0x1b   : > { %s1143_s29 = sld [smem:[#allocation3 + $0x80]]  ;;  %s247_s5 = sand.u32 1, %s1358_s16  }
  0x1c   : > { %s1179_s8 = sshll.u32 %s251_s7, 5  ;;  %s1178_s9 = sshll.u32 %s251_s7, 3 }
  0x1d   : > { %s265_s12 = scalar_lea.vmem %s1904_s3, %s1179_s8  ;;  %s1472_s21 = scalar_lea.vmem %s1903_s2, %s1178_s9 }
  0x1e   : > { %v1142_v0 = vld [vmem:[%s265_s12 + $0x10] sm:$0xff]  ;;  %v1141_v1 = vld [vmem:[%s1472_s21 + $0x4] sm:$0x3]  ;;  %v1475_v3 = vld [vmem:[%s265_s12 + $0x18] sm:$0xff]  ;;  %s1144_s30 = sld [smem:[#allocation3 + $0x100]]  ;;  %s1124_s8 = sshll.u32 %s247_s5, 6 }
  0x1f   : > { %332 = vrot.lane.b32.xlu0 %v1142_v0, %s1377_s22  ;;  %330 = vrot.lane.b32.xlu1 %v1141_v1, %s1377_s22  ;;  %v321_v2 = vld [vmem:[%s265_s12] sm:$0xff]  ;;  %275 = vst [vmem:[#allocation2 + $0xc] sm:$0xff] %v1142_v0  ;;  %v1138_v4 = vld [vmem:[%s265_s12 + $0x8] sm:$0xff]  ;;  %v1548_v57 = vand.u32 4294901760, %v1475_v3  ;;  %s1145_s6 = sld [smem:[#allocation3 + $0x1]]  ;;  %s1844_s11 = scalar_lea.vmem [#allocation6], %s1124_s8 }
  0x20   : > { %269 = vst [vmem:[#allocation2 + $0x2] sm:$0xff] %v321_v2  ;;  %316 = vrot.lane.b32.xlu2 %v1475_v3, %s1378_s24  ;;  %v320_v5 = vld [vmem:[%s1472_s21] sm:$0x3]  ;;  %v1139_v6 = vld [vmem:[%s1472_s21 + $0x6] sm:$0x3]  ;;  %s1146_s7 = sld [smem:[#allocation3 + $0x81]] }
  0x21   : > { %281 = vst [vmem:[#allocation2 + $0x16] sm:$0xff] %v1138_v4  ;;  %v1137_v7 = vld [vmem:[%s1472_s21 + $0x2] sm:$0x3]  ;;  %v1135_v8 = vld [vmem:[%s1472_s21 + $0x4] sm:$0x3]  ;;  %s1147_s9 = sld [smem:[#allocation3 + $0x101]] }
  0x22   : > { %v288_v9 = vld [vmem:[%s1472_s21] sm:$0x3]  ;;  %v1133_v15 = vld [vmem:[%s1472_s21 + $0x6] sm:$0x3]  ;;  %v1131_v17 = vld [vmem:[%s1472_s21 + $0x2] sm:$0x3] }
  0x23   : > { %286 = vst [vmem:[#allocation2 + $0x1e] sm:$0x3] %v1133_v15  ;;  %v1129_v18 = vld [vmem:[%s1472_s21 + $0x4] sm:$0x3]  ;;  %v266_v19 = vld [vmem:[%s1472_s21] sm:$0x3] }
  0x24   : > { %280 = vst [vmem:[#allocation2 + $0x14] sm:$0x3] %v1131_v17  ;;  %s1149_s10 = sld [smem:[#allocation3 + $0x2]] }
  0x25   : > { %274 = vst [vmem:[#allocation2 + $0xa] sm:$0x3] %v1129_v18  ;;  %s1150_s12 = sld [smem:[#allocation3 + $0x82]] }
  0x26   : > { %268 = vst [vmem:[#allocation2] sm:$0x3] %v266_v19  ;;  %s1151_s13 = sld [smem:[#allocation3 + $0x102]] }
  0x27   : > { %324 = vrot.lane.b32.xlu0 %v321_v2, %s1377_s22  ;;  %322 = vrot.lane.b32.xlu1 %v320_v5, %s1377_s22  ;;  %v1563_v5 = vsub.f32 %v1475_v3, %v1548_v57  ;;  %v1578_v3 = vsub.f32 %v371_v55, %v1554_v63  ;;  %s1153_s14 = sld [smem:[#allocation3 + $0x3]] }
  0x28   : > { %308 = vrot.lane.b32.xlu2 %v1138_v4, %s1378_s24  ;;  %s1154_s21 = sld [smem:[#allocation3 + $0x83]] }
  0x29   : > { %v533_v19 = vand.u32 4294901760, %v1563_v5  ;;  %s1155_s22 = sld [smem:[#allocation3 + $0x103]] }
  0x2a   : > { %v347_v58 = vld [vmem:[#allocation2 + $0x18] sm:$0xff]  ;;  %s1165_s8 = sld [smem:[#allocation3 + $0x6]] }
  0x2b   : > { %v346_v62 = vld [vmem:[#allocation2 + $0x10] sm:$0xff] }
  0x2c   : > { %v345_v4 = vld [vmem:[#allocation2 + $0x8] sm:$0xff] }
  0x2f   : > { %300 = vrot.lane.b32.xlu1 %v1142_v0, %s1378_s24  ;;  %314 = vrot.lane.b32.xlu0 %v1139_v6, %s1378_s24  ;;  %v1556_v0 = vand.u32 4294901760, %v347_v58  ;;  %v341_v6 = vld [vmem:[%s1901_s0 + $0x28] sm:$0xff] }
  0x30   : > { %306 = vrot.lane.b32.xlu2 %v1137_v7, %s1378_s24  ;;  %v374_v17 = vsel %vm357_vm1, %v341_v6, 0 }
  0x37   : > { %292 = vrot.lane.b32.xlu0 %v321_v2, %s1378_s24  ;;  %298 = vrot.lane.b32.xlu1 %v1135_v8, %s1378_s24 }
  0x38   : > { %290 = vrot.lane.b32.xlu2 %v288_v9, %s1378_s24  ;;  %s1157_s24 = sld [smem:[#allocation3 + $0x4]] }
  0x7a   : > { %v317_v10 = vpop.permute.xlu2 %316 }
  0x7b   : > { %v1494_v26 = vand.u32 4294901760, %v317_v10 }
  0x7d   : > { %v1503_v34 = vsub.f32 %v317_v10, %v1494_v26  ;;  %v1573_v10 = vand.u32 4294901760, %v346_v62 }
  0x7f   : > { %v503_v40 = vand.u32 4294901760, %v1503_v34 }
  0x81   : > { %v504_v51 = vsub.f32 %v1503_v34, %v503_v40 }
  0x82   : > { %v309_v11 = vpop.permute.xlu2 %308 }
  0x83   : > { %311 = vst [vmem:[#allocation2 + $0x3e] sm:$0xff] %v309_v11  ;;  %v505_v59 = vand.u32 4294901760, %v504_v51  ;;  %v342_v51 = vld [vmem:[%s1901_s0 + $0x30] sm:$0xff] }
  0x8a   : > { %v307_v12 = vpop.permute.xlu2 %306 }
  0x8b   : > { %310 = vst [vmem:[#allocation2 + $0x3c] sm:$0x3] %v307_v12 }
  0x91   : > { %v333_v13 = vpop.permute.xlu0 %332  ;;  %v331_v14 = vpop.permute.xlu1 %330 }
  0x92   : > { %335 = vst [vmem:[#allocation2 + $0x5c] sm:$0xff] %v333_v13  ;;  %v291_v16 = vpop.permute.xlu2 %290  ;;  %v344_v13 = vld [vmem:[#allocation2] sm:$0xff] }
  0x93   : > { %334 = vst [vmem:[#allocation2 + $0x5a] sm:$0x3] %v331_v14  ;;  %v1580_v14 = vand.u32 4294901760, %v345_v4 }
  0x94   : > { %294 = vst [vmem:[#allocation2 + $0x28] sm:$0x3] %v291_v16  ;;  %v1586_v16 = vsub.f32 %v347_v58, %v1556_v0 }
  0x99   : > { %v325_v20 = vpop.permute.xlu0 %324  ;;  %v323_v21 = vpop.permute.xlu1 %322  ;;  %v356_v22 = vld [vmem:[#allocation2 + $0x60] sm:$0xf] }
  0x9a   : > { %327 = vst [vmem:[#allocation2 + $0x52] sm:$0xff] %v325_v20  ;;  %v384_v23 = vsel %vm382_vm0, %v356_v22, 0  ;;  %v1596_v22 = vand.u32 4294901760, %v344_v13 }
  0x9b   : > { %326 = vst [vmem:[#allocation2 + $0x50] sm:$0x3] %v323_v21  ;;  %v1487_v24 = vand.u32 4294901760, %v384_v23 }
  0x9d   : > { %390 = vmatpush.msra.mxu0 %v1487_v24  ;;  %1181 = vmatpush.msra.mxu2 %v1487_v24  ;;  %v1492_v25 = vsub.f32 %v384_v23, %v1487_v24  ;;  %v1599_v23 = vsub.f32 %v346_v62, %v1573_v10 }
  0x9f   : > { %v485_v27 = vand.u32 4294901760, %v1492_v25 }
  0xa1   : > { %v301_v28 = vpop.permute.xlu1 %300  ;;  %v315_v29 = vpop.permute.xlu0 %314  ;;  %v355_v30 = vld [vmem:[#allocation2 + $0x58] sm:$0xff]  ;;  %v486_v31 = vsub.f32 %v1492_v25, %v485_v27 }
  0xa2   : > { %303 = vst [vmem:[#allocation2 + $0x34] sm:$0xff] %v301_v28  ;;  %v1500_v32 = vand.u32 4294901760, %v355_v30  ;;  %v354_v33 = vld [vmem:[#allocation2 + $0x50] sm:$0xff] }
  0xa3   : > { %318 = vst [vmem:[#allocation2 + $0x46] sm:$0x3] %v315_v29  ;;  %v487_v35 = vand.u32 4294901760, %v486_v31  ;;  %v1505_v36 = vand.u32 4294901760, %v354_v33  ;;  %v449_v29 = vand.u32 4294901760, %v1578_v3  ;;  %v539_v31 = vand.u32 4294901760, %v1586_v16 }
  0xa4   : > { %392 = vmatpush.msra.mxu0 %v1500_v32  ;;  %1182 = vmatpush.msra.mxu2 %v1500_v32  ;;  %v1510_v37 = vsub.f32 %v355_v30, %v1500_v32  ;;  %v1605_v30 = vand.u32 4294901760, %v374_v17 }
  0xa5   : > { %488 = vmatpush.msra.mxu1 %v487_v35  ;;  %1194 = vmatpush.msra.mxu3 %v487_v35  ;;  %v1513_v38 = vsub.f32 %v354_v33, %v1505_v36  ;;  %v1609_v33 = vsub.f32 %v345_v4, %v1580_v14  ;;  %v377_v4 = vsel %vm357_vm1, %v342_v51, 0 }
  0xa6   : > { %394 = vmatpush.msra.mxu0 %v1505_v36  ;;  %1183 = vmatpush.msra.mxu2 %v1505_v36  ;;  %v491_v39 = vand.u32 4294901760, %v1510_v37 }
  0xa7   : > { %v497_v41 = vand.u32 4294901760, %v1513_v38  ;;  %v551_v55 = vand.u32 4294901760, %v1609_v33 }
  0xa8   : > { %396 = vmatpush.msra.mxu0 %v1494_v26  ;;  %1184 = vmatpush.msra.mxu2 %v1494_v26  ;;  %v492_v42 = vsub.f32 %v1510_v37, %v491_v39 }
  0xa9   : > { %v293_v43 = vpop.permute.xlu0 %292  ;;  %v299_v44 = vpop.permute.xlu1 %298  ;;  %v351_v45 = vld [vmem:[#allocation2 + $0x38] sm:$0xff]  ;;  %v498_v46 = vsub.f32 %v1513_v38, %v497_v41 }
  0xaa   : > { %295 = vst [vmem:[#allocation2 + $0x2a] sm:$0xff] %v293_v43  ;;  %v352_v48 = vld [vmem:[#allocation2 + $0x40] sm:$0xff]  ;;  %v493_v49 = vand.u32 4294901760, %v492_v42  ;;  %v1531_v50 = vand.u32 4294901760, %v351_v45  ;;  %v534_v42 = vsub.f32 %v1563_v5, %v533_v19 }
  0xab   : > { %302 = vst [vmem:[#allocation2 + $0x32] sm:$0x3] %v299_v44  ;;  %v1536_v52 = vand.u32 4294901760, %v352_v48  ;;  %v499_v53 = vand.u32 4294901760, %v498_v46  ;;  %v545_v44 = vand.u32 4294901760, %v1599_v23  ;;  %v336_v46 = vld [vmem:[%s1901_s0] sm:$0xff] }
  0xac   : > { %494 = vmatpush.msra.mxu1 %v493_v49  ;;  %1195 = vmatpush.msra.mxu3 %v493_v49  ;;  %v1539_v54 = vsub.f32 %v351_v45, %v1531_v50  ;;  %v1624_v45 = vsub.f32 %v344_v13, %v1596_v22  ;;  %v1635_v49 = vsub.f32 %v374_v17, %v1605_v30  ;;  %v535_v58 = vand.u32 4294901760, %v534_v42  ;;  %v337_v42 = vld [vmem:[%s1901_s0 + $0x8] sm:$0xff] }
  0xad   : > { %398 = vmatpush.msra.mxu0 %v1536_v52  ;;  %1185 = vmatpush.msra.mxu2 %v1536_v52  ;;  %v1545_v56 = vsub.f32 %v352_v48, %v1536_v52  ;;  %v450_v48 = vsub.f32 %v1578_v3, %v449_v29  ;;  %v1662_v17 = vand.u32 4294901760, %v377_v4  ;;  %v362_v51 = vsel %vm357_vm1, %v337_v42, 0 }
  0xae   : > { %500 = vmatpush.msra.mxu1 %v499_v53  ;;  %1196 = vmatpush.msra.mxu3 %v499_v53  ;;  %v515_v60 = vand.u32 4294901760, %v1539_v54  ;;  %v540_v53 = vsub.f32 %v1586_v16, %v539_v31 }
  0xaf   : > { %400 = vmatpush.msra.mxu0 %v1531_v50  ;;  %1186 = vmatpush.msra.mxu2 %v1531_v50  ;;  %v509_v61 = vand.u32 4294901760, %v1545_v56  ;;  %v451_v6 = vand.u32 4294901760, %v450_v48 }
  0xb0   : > { %506 = vmatpush.msra.mxu1 %v505_v59  ;;  %1197 = vmatpush.msra.mxu3 %v505_v59  ;;  %v516_v9 = vsub.f32 %v1539_v54, %v515_v60  ;;  %v359_v59 = vsel %vm357_vm1, %v336_v46, 0  ;;  %v343_v46 = vld [vmem:[%s1901_s0 + $0x38] sm:$0xff] }
  0xb1   : > { %v510_v1 = vsub.f32 %v1545_v56, %v509_v61  ;;  %v349_v2 = vld [vmem:[#allocation2 + $0x28] sm:$0xff]  ;;  %v1658_v13 = vand.u32 4294901760, %v359_v59 }
  0xb2   : > { %v350_v7 = vld [vmem:[#allocation2 + $0x30] sm:$0xff]  ;;  %v1568_v8 = vand.u32 4294901760, %v349_v2  ;;  %v517_v20 = vand.u32 4294901760, %v516_v9  ;;  %v541_v9 = vand.u32 4294901760, %v540_v53 }
  0xb3   : > { %v1575_v11 = vand.u32 4294901760, %v350_v7  ;;  %v511_v12 = vand.u32 4294901760, %v510_v1  ;;  %v546_v1 = vsub.f32 %v1599_v23, %v545_v44  ;;  %v1680_v48 = vsub.f32 %v359_v59, %v1658_v13 }
  0xb4   : > { %v1583_v15 = vsub.f32 %v349_v2, %v1568_v8  ;;  %v557_v2 = vand.u32 4294901760, %v1624_v45  ;;  %v1694_v59 = vand.u32 4294901760, %v362_v51 }
  0xb5   : > { %402 = vmatpush.msra.mxu0 %v1575_v11  ;;  %1187 = vmatpush.msra.mxu2 %v1575_v11  ;;  %v1592_v18 = vsub.f32 %v350_v7, %v1575_v11  ;;  %v457_v7 = vand.u32 4294901760, %v1635_v49 }
  0xb6   : > { %512 = vmatpush.msra.mxu1 %v511_v12  ;;  %1198 = vmatpush.msra.mxu3 %v511_v12  ;;  %v527_v21 = vand.u32 4294901760, %v1583_v15  ;;  %v552_v12 = vsub.f32 %v1609_v33, %v551_v55 }
  0xb7   : > { %404 = vmatpush.msra.mxu0 %v1568_v8  ;;  %1188 = vmatpush.msra.mxu2 %v1568_v8  ;;  %v521_v28 = vand.u32 4294901760, %v1592_v18 }
  0xb8   : > { %518 = vmatpush.msra.mxu1 %v517_v20  ;;  %1199 = vmatpush.msra.mxu3 %v517_v20  ;;  %v528_v43 = vsub.f32 %v1583_v15, %v527_v21  ;;  %v547_v20 = vand.u32 4294901760, %v546_v1 }
  0xb9   : > { %406 = vmatpush.msra.mxu0 %v1548_v57  ;;  %1189 = vmatpush.msra.mxu2 %v1548_v57  ;;  %v522_v35 = vsub.f32 %v1592_v18, %v521_v28 }
  0xba   : > { %v529_v62 = vand.u32 4294901760, %v528_v43  ;;  %v458_v43 = vsub.f32 %v1635_v49, %v457_v7 }
  0xbb   : > { %408 = vmatpush.msra.mxu0 %v1556_v0  ;;  %1190 = vmatpush.msra.mxu2 %v1556_v0  ;;  %v523_v47 = vand.u32 4294901760, %v522_v35  ;;  %v558_v35 = vsub.f32 %v1624_v45, %v557_v2 }
  0xbd   : > { %410 = vmatpush.msra.mxu0 %v1573_v10  ;;  %1191 = vmatpush.msra.mxu2 %v1573_v10  ;;  %v559_v53 = vand.u32 4294901760, %v558_v35 }
  0xbe   : > { %524 = vmatpush.msra.mxu1 %v523_v47  ;;  %1200 = vmatpush.msra.mxu3 %v523_v47  ;;  %v553_v47 = vand.u32 4294901760, %v552_v12 }
  0xbf   : > { %412 = vmatpush.msra.mxu0 %v1580_v14  ;;  %1192 = vmatpush.msra.mxu2 %v1580_v14 }
  0xc0   : > { %530 = vmatpush.msra.mxu1 %v529_v62  ;;  %1201 = vmatpush.msra.mxu3 %v529_v62 }
  0xc1   : > { %414 = vmatpush.msra.mxu0 %v1596_v22  ;;  %1193 = vmatpush.msra.mxu2 %v1596_v22 }
  0xc2   : > { %536 = vmatpush.msra.mxu1 %v535_v58  ;;  %1202 = vmatpush.msra.mxu3 %v535_v58  ;;  %v459_v58 = vand.u32 4294901760, %v458_v43  ;;  %v906_v43 = vstv %s905_s26  ;;  %s1158_s26 = sld [smem:[#allocation3 + $0x84]] }
  0xc3   : > { %452 = vmatmul.f32.vlgmr.msra.gmra.mxu2 %v451_v6  ;;  %761 = vmatpush.msrb.mxu0 %v485_v27  ;;  %v1685_v27 = vsub.f32 %v377_v4, %v1662_v17 }
  0xc4   : > { %599 = vmatpush.msrb.mxu2 %v1492_v25  ;;  %542 = vmatpush.msra.mxu1 %v541_v9  ;;  %v380_v25 = vsel %vm357_vm1, %v343_v46, 0 }
  0xc5   : > { %1203 = vmatpush.msra.mxu3 %v541_v9  ;;  %765 = vmatpush.msrb.mxu0 %v491_v39  ;;  %v417_v39 = vand.u32 4294901760, %v1680_v48  ;;  %v1699_v62 = vand.u32 4294901760, %v380_v25 }
  0xc6   : > { %602 = vmatpush.msrb.mxu2 %v1510_v37  ;;  %548 = vmatpush.msra.mxu1 %v547_v20  ;;  %v465_v37 = vand.u32 4294901760, %v1685_v27 }
  0xc7   : > { %1204 = vmatpush.msra.mxu3 %v547_v20  ;;  %769 = vmatpush.msrb.mxu0 %v497_v41  ;;  %v1711_v41 = vsub.f32 %v362_v51, %v1694_v59  ;;  %v1720_v1 = vsub.f32 %v380_v25, %v1699_v62  ;;  %v912_v25 = vstv %s1144_s30  ;;  %s1161_s30 = sld [smem:[#allocation3 + $0x5]] }
  0xc8   : > { %605 = vmatpush.msrb.mxu2 %v1513_v38  ;;  %554 = vmatpush.msra.mxu1 %v553_v47  ;;  %v338_v38 = vld [vmem:[%s1901_s0 + $0x10] sm:$0xff] }
  0xc9   : > { %1205 = vmatpush.msra.mxu3 %v553_v47  ;;  %773 = vmatpush.msrb.mxu0 %v503_v40  ;;  %v418_v40 = vsub.f32 %v1680_v48, %v417_v39  ;;  %v365_v4 = vsel %vm357_vm1, %v338_v38, 0  ;;  %v473_v9 = vand.u32 4294901760, %v1720_v1 }
  0xca   : > { %608 = vmatpush.msrb.mxu2 %v1503_v34  ;;  %560 = vmatpush.msra.mxu1 %v559_v53  ;;  %v466_v34 = vsub.f32 %v1685_v27, %v465_v37  ;;  %v1731_v6 = vand.u32 4294901760, %v365_v4 }
  0xcb   : > { %1206 = vmatpush.msra.mxu3 %v559_v53  ;;  %460 = vmatmul.f32.gmra.mxu2 %v459_v58 }
  0xcc   : > { %578 = vmatmul.f32.vlgmr.msra.gmra.mxu3 %v1554_v63  ;;  %611 = vmatpush.msrb.mxu2 %v1545_v56  ;;  %v419_v56 = vand.u32 4294901760, %v418_v40 }
  0xcd   : > { %681 = vmatpush.msrb.mxu3 %v1487_v24  ;;  %777 = vmatpush.msrb.mxu0 %v509_v61  ;;  %v425_v61 = vand.u32 4294901760, %v1711_v41 }
  0xce   : > { %847 = vmatpush.msrb.mxu1 %v1487_v24  ;;  %614 = vmatpush.msrb.mxu2 %v1539_v54  ;;  %v467_v24 = vand.u32 4294901760, %v466_v34 }
  0xcf   : > { %683 = vmatpush.msrb.mxu3 %v1500_v32  ;;  %781 = vmatpush.msrb.mxu0 %v515_v60  ;;  %v426_v54 = vsub.f32 %v1711_v41, %v425_v61  ;;  %v474_v60 = vsub.f32 %v1720_v1, %v473_v9 }
  0xd0   : > { %849 = vmatpush.msrb.mxu1 %v1500_v32  ;;  %617 = vmatpush.msrb.mxu2 %v1592_v18  ;;  %v339_v32 = vld [vmem:[%s1901_s0 + $0x18] sm:$0xff] }
  0xd1   : > { %685 = vmatpush.msrb.mxu3 %v1505_v36  ;;  %785 = vmatpush.msrb.mxu0 %v521_v28  ;;  %v368_v18 = vsel %vm357_vm1, %v339_v32, 0  ;;  %v475_v28 = vand.u32 4294901760, %v474_v60 }
  0xd2   : > { %851 = vmatpush.msrb.mxu1 %v1505_v36  ;;  %620 = vmatpush.msrb.mxu2 %v1583_v15  ;;  %v432_v36 = vsub.f32 %v365_v4, %v1731_v6  ;;  %v919_v4 = vstv %s1146_s7  ;;  %s1163_s7 = sld [smem:[#allocation3 + $0x105]] }
  0xd3   : > { %687 = vmatpush.msrb.mxu3 %v1494_v26  ;;  %789 = vmatpush.msrb.mxu0 %v527_v21  ;;  %v439_v21 = vand.u32 4294901760, %v368_v18 }
  0xd4   : > { %853 = vmatpush.msrb.mxu1 %v1494_v26  ;;  %420 = vmatmul.f32.vlgmr.msra.gmra.mxu0 %v419_v56  ;;  %v427_v26 = vand.u32 4294901760, %v426_v54  ;;  %v433_v15 = vand.u32 4294901760, %v432_v36 }
  0xd5   : > { %468 = vmatmul.f32.gmra.mxu2 %v467_v24  ;;  %562 = vmatmul.f32.vlgmr.msra.gmra.mxu1 %v1658_v13  ;;  %v922_v24 = vstv %s1147_s9  ;;  %s1166_s9 = sld [smem:[#allocation3 + $0x86]] }
  0xd6   : > { %582 = vmatmul.f32.gmra.mxu3 %v1605_v30  ;;  %855 = vmatpush.msrb.mxu1 %v1536_v52 }
  0xd7   : > { %689 = vmatpush.msrb.mxu3 %v1536_v52  ;;  %623 = vmatpush.msrb.mxu2 %v1563_v5  ;;  %v434_v52 = vsub.f32 %v432_v36, %v433_v15  ;;  %v440_v5 = vsub.f32 %v368_v18, %v439_v21 }
  0xd8   : > { %857 = vmatpush.msrb.mxu1 %v1531_v50  ;;  %793 = vmatpush.msrb.mxu0 %v533_v19 }
  0xd9   : > { %691 = vmatpush.msrb.mxu3 %v1531_v50  ;;  %626 = vmatpush.msrb.mxu2 %v1586_v16  ;;  %v435_v50 = vand.u32 4294901760, %v434_v52  ;;  %v930_v52 = vstv %s1150_s12  ;;  %s1169_s12 = sld [smem:[#allocation3 + $0x7]] }
  0xda   : > { %859 = vmatpush.msrb.mxu1 %v1575_v11  ;;  %797 = vmatpush.msrb.mxu0 %v539_v31 }
  0xdb   : > { %693 = vmatpush.msrb.mxu3 %v1575_v11  ;;  %629 = vmatpush.msrb.mxu2 %v1599_v23  ;;  %v441_v11 = vand.u32 4294901760, %v440_v5 }
  0xdc   : > { %861 = vmatpush.msrb.mxu1 %v1568_v8  ;;  %428 = vmatmul.f32.gmra.mxu0 %v427_v26 }
  0xdd   : > { %695 = vmatpush.msrb.mxu3 %v1568_v8  ;;  %476 = vmatmul.f32.gmra.mxu2 %v475_v28  ;;  %v442_v8 = vsub.f32 %v440_v5, %v441_v11 }
  0xde   : > { %566 = vmatmul.f32.gmra.mxu1 %v1694_v59  ;;  %586 = vmatmul.f32.gmra.mxu3 %v1662_v17 }
  0xdf   : > { %697 = vmatpush.msrb.mxu3 %v1548_v57  ;;  %632 = vmatpush.msrb.mxu2 %v1609_v33 }
  0xe0   : > { %863 = vmatpush.msrb.mxu1 %v1548_v57  ;;  %801 = vmatpush.msrb.mxu0 %v545_v44  ;;  %v443_v57 = vand.u32 4294901760, %v442_v8  ;;  %v933_v8 = vstv %s1151_s13  ;;  %s1170_s13 = sld [smem:[#allocation3 + $0x87]] }
  0xe1   : > { %635 = vmatpush.msrb.mxu2 %v1624_v45  ;;  %699 = vmatpush.msrb.mxu3 %v1556_v0 }
  0xe2   : > { %865 = vmatpush.msrb.mxu1 %v1556_v0  ;;  %805 = vmatpush.msrb.mxu0 %v551_v55 }
  0xe3   : > { %701 = vmatpush.msrb.mxu3 %v1573_v10 }
  0xe4   : > { %436 = vmatmul.f32.gmra.mxu0 %v435_v50  ;;  %867 = vmatpush.msrb.mxu1 %v1573_v10 }
  0xe5   : > { %638 = vmatmul.f32.vlgmr.msrb.gmra.mxu2 %v1680_v48  ;;  %703 = vmatpush.msrb.mxu3 %v1580_v14  ;;  %v909_v48 = vstv %s1143_s29  ;;  %s1159_s29 = sld [smem:[#allocation3 + $0x104]] }
  0xe6   : > { %570 = vmatmul.f32.gmra.mxu1 %v1731_v6  ;;  %590 = vmatmul.f32.gmra.mxu3 %v1699_v62 }
  0xe7   : > { %705 = vmatpush.msrb.mxu3 %v1596_v22  ;;  %809 = vmatpush.msrb.mxu0 %v557_v2 }
  0xe8   : > { %869 = vmatpush.msrb.mxu1 %v1580_v14 }
  0xea   : > { %871 = vmatpush.msrb.mxu1 %v1596_v22 }
  0xec   : > { %444 = vmatmul.f32.gmra.mxu0 %v443_v57 }
  0xed   : > { %643 = vmatmul.f32.gmra.mxu2 %v1711_v41  ;;  %v916_v41 = vstv %s1145_s6  ;;  %s1162_s6 = sld [smem:[#allocation3 + $0x85]] }
  0xee   : > { %574 = vmatmul.f32.gmra.mxu1 %v439_v21  ;;  %709 = vmatmul.f32.vlgmr.msrb.gmra.mxu3 %v417_v39 }
  0xf4   : > { %811 = vmatmul.f32.vlgmr.msrb.gmra.mxu0 %v1658_v13 }
  0xf5   : > { %648 = vmatmul.f32.gmra.mxu2 %v432_v36 }
  0xf6   : > { %715 = vmatmul.f32.gmra.mxu3 %v425_v61  ;;  %873 = vmatmul.f32.vlgmr.msrb.gmra.mxu1 %v1658_v13 }
  0xfc   : > { %815 = vmatmul.f32.gmra.mxu0 %v1694_v59 }
  0xfd   : > { %653 = vmatmul.f32.gmra.mxu2 %v440_v5 }
  0xfe   : > { %721 = vmatmul.f32.gmra.mxu3 %v433_v15  ;;  %877 = vmatmul.f32.gmra.mxu1 %v1694_v59  ;;  %v927_v15 = vstv %s1149_s10  ;;  %s1167_s10 = sld [smem:[#allocation3 + $0x106]] }
 0x104   : > { %819 = vmatmul.f32.gmra.mxu0 %v1731_v6 }
 0x105   : > { %658 = vmatmul.f32.gmra.mxu2 %v1578_v3 }
 0x106   : > { %727 = vmatmul.f32.gmra.mxu3 %v441_v11  ;;  %881 = vmatmul.f32.gmra.mxu1 %v1731_v6 }
 0x10c   : > { %823 = vmatmul.f32.gmra.mxu0 %v439_v21 }
 0x10d   : > { %663 = vmatmul.f32.gmra.mxu2 %v1635_v49 }
 0x10e   : > { %733 = vmatmul.f32.gmra.mxu3 %v449_v29  ;;  %885 = vmatmul.f32.gmra.mxu1 %v439_v21 }
 0x114   : > { %827 = vmatmul.f32.gmra.mxu0 %v1554_v63 }
 0x115   : > { %668 = vmatmul.f32.gmra.mxu2 %v1685_v27 }
 0x116   : > { %739 = vmatmul.f32.gmra.mxu3 %v457_v7  ;;  %889 = vmatmul.f32.gmra.mxu1 %v1554_v63 }
 0x11c   : > { %831 = vmatmul.f32.gmra.mxu0 %v1605_v30 }
 0x11d   : > { %673 = vmatmul.f32.gmra.mxu2 %v1720_v1 }
 0x11e   : > { %745 = vmatmul.f32.gmra.mxu3 %v465_v37  ;;  %893 = vmatmul.f32.gmra.mxu1 %v1605_v30 }
 0x124   : > { %835 = vmatmul.f32.gmra.mxu0 %v1662_v17 }
 0x126   : > { %751 = vmatmul.f32.gmra.mxu3 %v473_v9  ;;  %897 = vmatmul.f32.gmra.mxu1 %v1662_v17 }
 0x12c   : > { %839 = vmatmul.f32.gmra.mxu0 %v1699_v62 }
 0x12e   : > { %901 = vmatmul.f32.gmra.mxu1 %v1699_v62 }
 0x146   : > { %v1825_v63 = vpop.f32.mrf.mxu2 }
 0x14e   : > { %v1827_v0 = vpop.f32.mrf.mxu2 }
 0x14f   : > { %v1829_v10 = vpop.f32.mrf.mxu3 }
 0x151   : > { %v421_v3 = vpop.f32.mrf.mxu0 }
 0x152   : > { %v563_v14 = vpop.f32.mrf.mxu1 }
 0x153   : > { %v564_v2 = vadd.f32 %v563_v14, %v421_v3 }
 0x158   : > { %v1831_v16 = vpop.f32.mrf.mxu2 }
 0x159   : > { %v1833_v19 = vpop.f32.mrf.mxu3  ;;  %v429_v22 = vpop.f32.mrf.mxu0 }
 0x15b   : > { %v567_v23 = vpop.f32.mrf.mxu1 }
 0x15c   : > { %v568_v46 = vadd.f32 %v567_v23, %v429_v22 }
 0x160   : > { %v1835_v29 = vpop.f32.mrf.mxu2 }
 0x161   : > { %v1837_v30 = vpop.f32.mrf.mxu3  ;;  %v437_v31 = vpop.f32.mrf.mxu0 }
 0x163   : > { %v571_v33 = vpop.f32.mrf.mxu1 }
 0x164   : > { %v572_v34 = vadd.f32 %v571_v33, %v437_v31 }
 0x168   : > { %v639_v44 = vpop.f32.mrf.mxu2 }
 0x169   : > { %v1839_v45 = vpop.f32.mrf.mxu3  ;;  %v445_v49 = vpop.f32.mrf.mxu0  ;;  %v640_v7 = vadd.f32 %v639_v44, %v564_v2  ;;  %v938_v44 = vstv %s1153_s14  ;;  %v941_v2 = vstv %s1154_s21  ;;  %s1171_s14 = sld [smem:[#allocation3 + $0x107]]  ;;  %s1180_s21 = sshll.u32 %s1366_s18, 6 }
 0x16a   : > { %s993_s18 = scalar_lea.sflag [#allocation4], %s247_s5 }
 0x16b   : > { %v575_v55 = vpop.f32.mrf.mxu1 }
 0x16c   : > { %v576_v21 = vadd.f32 %v575_v55, %v445_v49  ;;  %v580_v49 = vadd.f32 %v1829_v10, %v1825_v63  ;;  %v584_v63 = vadd.f32 %v1833_v19, %v1827_v0  ;;  %v588_v0 = vadd.f32 %v1837_v30, %v1831_v16 }
 0x16d   : > { %v592_v16 = vadd.f32 %v1839_v45, %v1835_v29  ;;  %v982_v45 = vstv %s1169_s12 }
 0x170   : > { %v644_v12 = vpop.f32.mrf.mxu2 }
 0x171   : > { %v710_v13 = vpop.f32.mrf.mxu3  ;;  %v812_v17 = vpop.f32.mrf.mxu0  ;;  %v645_v27 = vadd.f32 %v644_v12, %v568_v46 }
 0x172   : > { %v711_v20 = vadd.f32 %v710_v13, %v640_v7 }
 0x173   : > { %v874_v35 = vpop.f32.mrf.mxu1 }
 0x174   : > { %v813_v42 = vadd.f32 %v812_v17, %v711_v20  ;;  %v944_v17 = vstv %s1155_s22 }
 0x176   : > { %v875_v47 = vadd.f32 %v874_v35, %v813_v42 }
 0x178   : > { %v907_v51 = vmul.f32 %v906_v43, %v875_v47  ;;  %v649_v53 = vpop.f32.mrf.mxu2 }
 0x179   : > { %v716_v58 = vpop.f32.mrf.mxu3  ;;  %v816_v39 = vpop.f32.mrf.mxu0  ;;  %v650_v56 = vadd.f32 %v649_v53, %v572_v34 }
 0x17a   : > { %v910_v59 = vadd.f32 %v909_v48, %v907_v51  ;;  %v717_v37 = vadd.f32 %v716_v58, %v645_v27  ;;  %v949_v27 = vstv %s1157_s24  ;;  %v952_v51 = vstv %s1158_s26  ;;  %s1005_s26 = scalar_lea.hbm %s1905_s4, %s1180_s21 }
 0x17b   : > { %v878_v62 = vpop.f32.mrf.mxu1  ;;  %v955_v58 = vstv %s1159_s29  ;;  %s1006_s29 = sshll.u32 %s1844_s11, 4  ;;  %s1007_s29 = int_to_ptr.vmem [resolvable:$true] %s1006_s29 }
 0x17c   : > { %v913_v38 = vmax.f32 %v910_v59, %v912_v25  ;;  %v817_v40 = vadd.f32 %v816_v39, %v717_v37 }
 0x17e   : > { %914 = vst [vmem:[%s1844_s11] sm:$0xff] %v913_v38  ;;  %v879_v1 = vadd.f32 %v878_v62, %v817_v40 }
 0x180   : > { %v917_v61 = vmul.f32 %v916_v41, %v879_v1  ;;  %v654_v6 = vpop.f32.mrf.mxu2  ;;  %v960_v1 = vstv %s1161_s30  ;;  %s1008_s30 = sshll.u32 %s1005_s26, 4  ;;  %s1009_s30 = int_to_ptr.hbm [resolvable:$true] %s1008_s30 }
 0x181   : > { %v722_v9 = vpop.f32.mrf.mxu3  ;;  %v820_v32 = vpop.f32.mrf.mxu0  ;;  %v655_v5 = vadd.f32 %v654_v6, %v576_v21  ;;  %v966_v6 = vstv %s1163_s7  ;;  %v974_v21 = vstv %s1166_s9 }
 0x182   : > { %v920_v54 = vadd.f32 %v919_v4, %v917_v61  ;;  %v723_v36 = vadd.f32 %v722_v9, %v650_v56  ;;  %v963_v4 = vstv %s1162_s6  ;;  %s1306_s6 = sshra.s32 %s1009_s30, 4  ;;  %s1307_s6 = int_to_ptr.hbm [resolvable:$true] %s1306_s6 }
 0x183   : > { %v882_v60 = vpop.f32.mrf.mxu1  ;;  %s1308_s7 = scalar_lea.hbm %s1307_s6, 64  ;;  %p1313_p5 = scmp.lt.s32.totalorder %s1307_s6, %s1905_s4 }
 0x184   : > { %v923_v18 = vmax.f32 %v920_v54, %v922_v24  ;;  %v821_v26 = vadd.f32 %v820_v32, %v723_v36  ;;  %p1309_p1 = scmp.ne.s32.totalorder %s1307_s6, %s1308_s7 }
 0x186   : > { %1148 = vst [vmem:[%s1844_s11 + $0x8] sm:$0xff] %v923_v18  ;;  %v883_v28 = vadd.f32 %v882_v60, %v821_v26  ;;  %p1310_p2 = pnand %p1309_p1, %p1446_p4 }
 0x188   : > { %v928_v50 = vmul.f32 %v927_v15, %v883_v28  ;;  %v659_v11 = vpop.f32.mrf.mxu2  ;;  %v971_v15 = vstv %s1165_s8  ;;  %p1311_p3 = pneg %p1310_p2 }
 0x189   : > { %v728_v57 = vpop.f32.mrf.mxu3  ;;  %v824_v3 = vpop.f32.mrf.mxu0  ;;  %v660_v7 = vadd.f32 %v659_v11, %v580_v49 }
 0x18a   : > { %v931_v14 = vadd.f32 %v930_v52, %v928_v50  ;;  %v729_v22 = vadd.f32 %v728_v57, %v655_v5  ;;  %v977_v5 = vstv %s1167_s10  ;;  %s1312_s10 = scalar_lea.hbm %s1905_s4, 128 }
 0x18b   : > { %v886_v23 = vpop.f32.mrf.mxu1  ;;  %p1314_p6 = scmp.lt.s32.totalorder %s1312_s10, %s1308_s7 }
 0x18c   : > { %v934_v31 = vmax.f32 %v931_v14, %v933_v8  ;;  %v825_v33 = vadd.f32 %v824_v3, %v729_v22 }
 0x18d   : > { %p1315_p7 = por %p1314_p6, %p1313_p5 }
 0x18e   : > { %1152 = vst [vmem:[%s1844_s11 + $0x10] sm:$0xff] %v934_v31  ;;  %v887_v55 = vadd.f32 %v886_v23, %v825_v33  ;;  %v985_v23 = vstv %s1170_s13  ;;  %v988_v33 = vstv %s1171_s14 }
 0x18f   : > { %p1316_p9 = pnand %p1315_p7, %p1311_p3 }
 0x190   : > { %v939_v12 = vmul.f32 %v938_v44, %v887_v55  ;;  %v664_v13 = vpop.f32.mrf.mxu2 }
 0x191   : > { %v734_v20 = vpop.f32.mrf.mxu3  ;;  %v828_v35 = vpop.f32.mrf.mxu0  ;;  %v665_v53 = vadd.f32 %v664_v13, %v584_v63 }
 0x192   : > { %v942_v42 = vadd.f32 %v941_v2, %v939_v12  ;;  %v735_v43 = vadd.f32 %v734_v20, %v660_v7 }
 0x193   : > { %v890_v46 = vpop.f32.mrf.mxu1 }
 0x194   : > { %v945_v47 = vmax.f32 %v942_v42, %v944_v17  ;;  %v829_v48 = vadd.f32 %v828_v35, %v735_v43 }
 0x196   : > { %1156 = vst [vmem:[%s1844_s11 + $0x18] sm:$0xff] %v945_v47  ;;  %v891_v10 = vadd.f32 %v890_v46, %v829_v48 }
 0x198   : > { %v950_v25 = vmul.f32 %v949_v27, %v891_v10  ;;  %v669_v38 = vpop.f32.mrf.mxu2 }
 0x199   : > { %v740_v39 = vpop.f32.mrf.mxu3  ;;  %v832_v59 = vpop.f32.mrf.mxu0  ;;  %v670_v56 = vadd.f32 %v669_v38, %v588_v0 }
 0x19a   : > { %v953_v37 = vadd.f32 %v952_v51, %v950_v25  ;;  %v741_v62 = vadd.f32 %v740_v39, %v665_v53 }
 0x19b   : > { %v894_v40 = vpop.f32.mrf.mxu1 }
 0x19c   : > { %v956_v41 = vmax.f32 %v953_v37, %v955_v58  ;;  %v833_v34 = vadd.f32 %v832_v59, %v741_v62 }
 0x19e   : > { %1160 = vst [vmem:[%s1844_s11 + $0x20] sm:$0xff] %v956_v41  ;;  %v895_v19 = vadd.f32 %v894_v40, %v833_v34 }
 0x1a0   : > { %v961_v61 = vmul.f32 %v960_v1, %v895_v19  ;;  %v674_v26 = vpop.f32.mrf.mxu2 }
 0x1a1   : > { %v746_v24 = vpop.f32.mrf.mxu3  ;;  %v836_v9 = vpop.f32.mrf.mxu0  ;;  %v675_v28 = vadd.f32 %v674_v26, %v592_v16 }
 0x1a2   : > { %v964_v32 = vadd.f32 %v963_v4, %v961_v61  ;;  %v747_v54 = vadd.f32 %v746_v24, %v670_v56 }
 0x1a3   : > { %v898_v36 = vpop.f32.mrf.mxu1 }
 0x1a4   : > { %v967_v60 = vmax.f32 %v964_v32, %v966_v6  ;;  %v837_v18 = vadd.f32 %v836_v9, %v747_v54 }
 0x1a6   : > { %1164 = vst [vmem:[%s1844_s11 + $0x28] sm:$0xff] %v967_v60  ;;  %v899_v30 = vadd.f32 %v898_v36, %v837_v18 }
 0x1a8   : > { %v972_v52 = vmul.f32 %v971_v15, %v899_v30 }
 0x1a9   : > { %v752_v50 = vpop.f32.mrf.mxu3  ;;  %v840_v11 = vpop.f32.mrf.mxu0 }
 0x1aa   : > { %v975_v8 = vadd.f32 %v974_v21, %v972_v52  ;;  %v753_v57 = vadd.f32 %v752_v50, %v675_v28 }
 0x1ab   : > { %v902_v3 = vpop.f32.mrf.mxu1 }
 0x1ac   : > { %v978_v14 = vmax.f32 %v975_v8, %v977_v5  ;;  %v841_v29 = vadd.f32 %v840_v11, %v753_v57 }
 0x1ae   : > { %1168 = vst [vmem:[%s1844_s11 + $0x30] sm:$0xff] %v978_v14  ;;  %v903_v22 = vadd.f32 %v902_v3, %v841_v29 }
 0x1b0   : > { %v983_v31 = vmul.f32 %v982_v45, %v903_v22 }
 0x1b2   : > { %v986_v44 = vadd.f32 %v985_v23, %v983_v31 }
 0x1b4   : > { %v989_v49 = vmax.f32 %v986_v44, %v988_v33 }
 0x1b6   : > { %1172 = vst [vmem:[%s1844_s11 + $0x38] sm:$0xff] %v989_v49 }
 0x1b7   : > { %1319 = shalt.err (!%p1316_p9)
}
 0x1b8   : > { %s1379_s5 = smov 128   ;;  %s1380_s11 = smov 8  }
 0x1b9   : > { %1211 = dma.vmem_to_hbm [thread:$0]  (%p1446_p4), %s1007_s29, 1024, %s1009_s30, %s993_s18, %s1379_s5, %s1379_s5, %s1380_s11  }
 0x1ba PF: > { %p1223_p10 = scmp.ge.s32.totalorder %s1374_s20, 2  ;;  %s1023_s14 = sand.u32 1, %s1354_s15  }
 0x1bb   : > { %s1024_s21 = scalar_lea.sflag [#allocation4], %s1023_s14 }
 0x1bc   : > { %p1218_p11 = pnand %p1223_p10, %p1453_p8 }
 0x1be   : > { %p1219_p12 = pneg %p1218_p11 }
 0x1c0   : > { %1349 = dma.done.wait (%p1219_p12), %s1024_s21, 1024  }
 0x1c1   : > { %1351 = vsyncadd (%p1219_p12), %s1024_s21, 4294966272  ;;  %s18_s20 = sadd.s32 1, %s1374_s20   ;;  %s1908_s15 = smov %s1358_s16 }
 0x1c2   : > { %p15_p13 = scmp.ge.s32.totalorder %s18_s20, 4   ;;  %s1909_s16 = smov %s1362_s17 }
 0x1c3   : > { %s1910_s17 = smov %s1459_s28  ;;  %s1911_s18 = smov %s1370_s19 }
 0x1c4   : > { %s1912_s19 = smov %s1914_s23  ;;  %17 = sbr.rel (!%p15_p13) target bundleno = 5 (0x5), region = 92 }
 0x1c9   :  { %1030 = vsyncpa [#allocation4], 1 }
 0x1ca   :  { %1032 = vsyncpa [#allocation4 + $0x1], 1 }
 0x1cb   :  { %1033 = vsyncpa [#allocation5], 1 }
 0x1cc   :  { %1035 = vsyncpa [#allocation5 + $0x1], 1 }

</bundles_post_ra>
